<compile_context>
chip_gen: v5e
topology: v5e:2x2
jax: 0.10.0
libtpu: 0.0.40
codegen_flags: <defaults>
</compile_context>

<pallas_src>
import jax
import jax.numpy as jnp
from jax import lax
from jax.experimental import pallas as pl
from jax.experimental.pallas import tpu as pltpu

# ---------------- model dimensions (small, consistent with the module) -----
B = 2            # batch per view
C_IN = 4         # input channels
H = W = 16       # spatial
FEAT = 32        # backbone feature dim (prev_dim of the projector fc)
OUT_DIM = 128    # SimSiamNet out_dim (default)
PRED_DIM = 64    # SimSiamNet pred_dim (default)
EPS = 1e-5

NUM_VIEWS = 2
HW = H * W
ROWS = NUM_VIEWS * B * HW   # 1024 im2col rows (both views stacked)
LANE = 128                  # lane-padded channel width for every intermediate
K_RAW = C_IN * 9            # im2col K (36) — kept UNPADDED for the input DMA


# ---------------------------- Pallas kernel --------------------------------
def _simsiam_kernel(
    patches_ref,   # (ROWS, 36)    bf16  im2col rows of BOTH views
    conv_w_ref,    # (36, 128)     bf16  conv3x3 weight (out-dim lane-padded)
    w_ref,         # (5, 128, 128) bf16  packed weights: w0,w1,w2,pw1,pw2
    vec_ref,       # (9, 128)      f32   packed BN gammas/betas + predictor bias
    p_out_ref,     # (2B, OUT_DIM) f32
    z_out_ref,     # (2B, OUT_DIM) f32
):
    vec = vec_ref[...]            # (9,128) f32 — loaded ONCE (≈2 vregs)

    def bn(x, gamma=None, beta=None, relu=False):
        # Training-mode BatchNorm (biased variance), statistics PER VIEW,
        # fused to a single scale/shift (+ReLU) elementwise pass.
        # Padded lanes stay exactly 0 because packed gamma/beta are 0 there.
        rows = x.shape[0] // NUM_VIEWS
        xv = x.reshape(NUM_VIEWS, rows, x.shape[1])
        mu = jnp.mean(xv, axis=1, keepdims=True)
        var = jnp.maximum(jnp.mean(xv * xv, axis=1, keepdims=True) - mu * mu, 0.0)
        scale = lax.rsqrt(var + EPS)                    # EUP slot (free-ish)
        if gamma is not None:
            scale = scale * gamma
        shift = -mu * scale if beta is None else beta - mu * scale
        out = xv * scale + shift
        if relu:
            out = jnp.maximum(out, 0.0)
        return out.reshape(x.shape)

    # --- backbone stem: conv3x3 (im2col matmul, both views) + BN2d + ReLU ---
    y = jnp.dot(patches_ref[...], conv_w_ref[...],
                preferred_element_type=jnp.float32)     # (1024, 128) f32
    y = bn(y, vec[0:1], vec[1:2], relu=True)

    # global average pool: lane-preserving reshape + one XLU reduce
    h = jnp.mean(y.reshape(NUM_VIEWS * B, HW, LANE), axis=1)   # (2B, 128)

    # --- projector (encoder.fc): L->BN->ReLU->L->BN->ReLU->L->BN(no affine) --
    # Views stay stacked as one (2B, 128) LHS; BN stats are per-view inside bn().
    t = jnp.dot(h.astype(jnp.bfloat16), w_ref[0],
                preferred_element_type=jnp.float32)
    t = bn(t, vec[2:3], vec[3:4], relu=True)
    t = jnp.dot(t.astype(jnp.bfloat16), w_ref[1],
                preferred_element_type=jnp.float32)
    t = bn(t, vec[4:5], vec[5:6], relu=True)
    t = jnp.dot(t.astype(jnp.bfloat16), w_ref[2],
                preferred_element_type=jnp.float32)
    # NOTE: projector layer-2 bias omitted — cancelled exactly by the
    # mean-subtraction of the affine-free BatchNorm below (dead compute).
    z = bn(t)                                   # BatchNorm1d(out_dim, affine=False)

    # --- predictor: L(no bias) -> BN -> ReLU -> L(+bias) --------------------
    q = jnp.dot(z.astype(jnp.bfloat16), w_ref[3],
                preferred_element_type=jnp.float32)
    q = bn(q, vec[6:7], vec[7:8], relu=True)
    p = jnp.dot(q.astype(jnp.bfloat16), w_ref[4],
                preferred_element_type=jnp.float32) + vec[8:9]

    p_out_ref[...] = p
    z_out_ref[...] = z


# ------------------------------ wrapper -------------------------------------
def _im2col_3x3(x_nchw):
    """(N,C,H,W) -> (N*H*W, C*9) rows matching PyTorch conv2d(pad=1,stride=1)."""
    n, c, h, w = x_nchw.shape
    xp = jnp.pad(x_nchw, ((0, 0), (0, 0), (1, 1), (1, 1)))
    # index kh*3+kw on axis 2 — matches the (FEAT, C_IN*9) weight flatten order
    patches = jnp.stack(
        [xp[:, :, kh:kh + h, kw:kw + w] for kh in range(3) for kw in range(3)],
        axis=2,
    )
    patches = patches.reshape(n, c * 9, h, w)
    patches = jnp.transpose(patches, (0, 2, 3, 1)).reshape(n * h * w, c * 9)
    return patches


_VMEM = pl.BlockSpec(memory_space=pltpu.MemorySpace.VMEM)


def _encode_views(patches, conv_w, w_packed, vec_packed):
    # Single grid-less invocation: all operands (<0.3 MiB) live whole in VMEM.
    return pl.pallas_call(
        _simsiam_kernel,
        out_shape=(jax.ShapeDtypeStruct((NUM_VIEWS * B, OUT_DIM), jnp.float32),
                   jax.ShapeDtypeStruct((NUM_VIEWS * B, OUT_DIM), jnp.float32)),
        in_specs=[_VMEM, _VMEM, _VMEM, _VMEM],
        out_specs=(_VMEM, _VMEM),
    )(patches, conv_w, w_packed, vec_packed)


@jax.jit
def simsiam_forward(x1, x2, params):
    # TODO(synk): for the real ResNet18 backbone move im2col in-kernel
    # (9 shifted accumulated matmuls) and grid-tile the row dimension.
    x = jnp.concatenate([x1, x2], axis=0).astype(jnp.float32)   # (2B, C, H, W)
    patches = _im2col_3x3(x).astype(jnp.bfloat16)               # (2B*H*W, 36)

    p, z = _encode_views(patches, params["conv_w"], params["w_packed"],
                         params["vec_packed"])
    # .detach() == stop_gradient (identity in the forward pass)
    return p[:B], p[B:], lax.stop_gradient(z[:B]), lax.stop_gradient(z[B:])


# ------------------------- deterministic parameters ------------------------
def init_params(key):
    ks = jax.random.split(key, 6)
    scale = 0.05

    def w(k, shape):
        return scale * jax.random.normal(k, shape, dtype=jnp.float32)

    # torch layouts, transposed to (in, out) for right-multiplication
    conv_w = w(ks[0], (FEAT, C_IN, 3, 3)).reshape(FEAT, C_IN * 9).T  # (36, 32)
    w0 = w(ks[1], (FEAT, FEAT)).T                                    # (32, 32)
    w1 = w(ks[2], (FEAT, FEAT)).T                                    # (32, 32)
    w2 = w(ks[3], (OUT_DIM, FEAT)).T                                 # (32, 128)
    pw1 = w(ks[4], (PRED_DIM, OUT_DIM)).T                            # (128, 64)
    pw2 = w(ks[5], (OUT_DIM, PRED_DIM)).T                            # (64, 128)

    def pad2(m):
        r, c = m.shape
        return jnp.pad(m, ((0, LANE - r), (0, LANE - c)))

    def pad1(v):
        return jnp.pad(v, (0, LANE - v.shape[0]))

    ones = lambda n: jnp.ones((n,), jnp.float32)
    zeros = lambda n: jnp.zeros((n,), jnp.float32)

    # conv weight keeps its raw K=36 rows (matches the unpadded patch DMA);
    # only the output dim is lane-padded to 128.
    conv_w_packed = jnp.pad(conv_w, ((0, 0), (0, LANE - FEAT))).astype(jnp.bfloat16)

    w_packed = jnp.stack(
        [pad2(w0), pad2(w1), pad2(w2), pad2(pw1), pad2(pw2)],
        axis=0).astype(jnp.bfloat16)                     # (5, 128, 128) bf16

    # projector layer-2 bias is intentionally not packed: it is cancelled by
    # the following BatchNorm1d(affine=False) mean subtraction (PyTorch also
    # freezes it via requires_grad=False).
    # INVARIANT: padded lanes of every gamma/beta MUST stay zero so padded
    # channels remain exactly zero through the fused BNs (scale=0, shift=0).
    vec_packed = jnp.stack(
        [pad1(ones(FEAT)), pad1(zeros(FEAT)),          # stem BN2d gamma/beta
         pad1(ones(FEAT)), pad1(zeros(FEAT)),          # projector BN0
         pad1(ones(FEAT)), pad1(zeros(FEAT)),          # projector BN1
         pad1(ones(PRED_DIM)), pad1(zeros(PRED_DIM)),  # predictor BN
         0.01 * ones(OUT_DIM)],                        # predictor final bias
        axis=0)                                        # (9, 128) f32

    return {"conv_w": conv_w_packed, "w_packed": w_packed,
            "vec_packed": vec_packed}


if __name__ == "__main__":
    key = jax.random.PRNGKey(0)
    k1, k2, kp = jax.random.split(key, 3)
    x1 = jax.random.normal(k1, (B, C_IN, H, W), dtype=jnp.float32)
    x2 = jax.random.normal(k2, (B, C_IN, H, W), dtype=jnp.float32)
    params = init_params(kp)

    p1, p2, z1, z2 = simsiam_forward(x1, x2, params)
    jax.block_until_ready((p1, p2, z1, z2))

    assert p1.shape == (B, OUT_DIM) and p2.shape == (B, OUT_DIM)
    assert z1.shape == (B, OUT_DIM) and z2.shape == (B, OUT_DIM)
    assert jnp.all(jnp.isfinite(p1)) and jnp.all(jnp.isfinite(p2))
    assert jnp.all(jnp.isfinite(z1)) and jnp.all(jnp.isfinite(z2))
    print("KERNEL_OK")
</pallas_src>

<mosaic_0001>
module attributes {stable_mosaic.version = 11 : i64} {
  func.func @_simsiam_kernel(%arg0: memref<1024x36xbf16, #tpu.memory_space<vmem>>, %arg1: memref<36x128xbf16, #tpu.memory_space<vmem>>, %arg2: memref<5x128x128xbf16, #tpu.memory_space<vmem>>, %arg3: memref<9x128xf32, #tpu.memory_space<vmem>>, %arg4: memref<4x128xf32, #tpu.memory_space<vmem>>, %arg5: memref<4x128xf32, #tpu.memory_space<vmem>>) attributes {dimension_semantics = [], scalar_prefetch = 0 : i64, scratch_operands = 0 : i64, tpu.core_type = #tpu.core_type<tc>} {
    %c0 = arith.constant 0 : index
    %c0_0 = arith.constant 0 : index
    %0 = vector.load %arg3[%c0, %c0_0] : memref<9x128xf32, #tpu.memory_space<vmem>>, vector<9x128xf32>
    %c0_1 = arith.constant 0 : index
    %c0_2 = arith.constant 0 : index
    %1 = vector.load %arg0[%c0_1, %c0_2] : memref<1024x36xbf16, #tpu.memory_space<vmem>>, vector<1024x36xbf16>
    %c0_3 = arith.constant 0 : index
    %c0_4 = arith.constant 0 : index
    %2 = vector.load %arg1[%c0_3, %c0_4] : memref<36x128xbf16, #tpu.memory_space<vmem>>, vector<36x128xbf16>
    %cst = arith.constant dense<0.000000e+00> : vector<1024x128xf32>
    %3 = tpu.matmul %1, %2, %cst {dimension_numbers = #tpu.dot_dimension_numbers<[1], [0], [0], [1], [0, 0, 1, 1], [], []>} : vector<1024x36xbf16>, vector<36x128xbf16>, vector<1024x128xf32> -> vector<1024x128xf32>
    %4 = vector.extract_strided_slice %0 {offsets = [0, 0], sizes = [1, 128], strides = [1, 1]} : vector<9x128xf32> to vector<1x128xf32>
    %5 = vector.extract_strided_slice %0 {offsets = [1, 0], sizes = [1, 128], strides = [1, 1]} : vector<9x128xf32> to vector<1x128xf32>
    %6 = vector.shape_cast %3 : vector<1024x128xf32> to vector<2x512x128xf32>
    %cst_5 = arith.constant dense<0.000000e+00> : vector<2x128xf32>
    %7 = vector.multi_reduction <add>, %6, %cst_5 [1] : vector<2x512x128xf32> to vector<2x128xf32>
    %8 = vector.shape_cast %7 : vector<2x128xf32> to vector<2x1x128xf32>
    %cst_6 = arith.constant 5.120000e+02 : f32
    %9 = vector.broadcast %cst_6 : f32 to vector<2x1x128xf32>
    %10 = arith.divf %8, %9 : vector<2x1x128xf32>
    %11 = arith.mulf %6, %6 : vector<2x512x128xf32>
    %cst_7 = arith.constant dense<0.000000e+00> : vector<2x128xf32>
    %12 = vector.multi_reduction <add>, %11, %cst_7 [1] : vector<2x512x128xf32> to vector<2x128xf32>
    %13 = vector.shape_cast %12 : vector<2x128xf32> to vector<2x1x128xf32>
    %cst_8 = arith.constant 5.120000e+02 : f32
    %14 = vector.broadcast %cst_8 : f32 to vector<2x1x128xf32>
    %15 = arith.divf %13, %14 : vector<2x1x128xf32>
    %16 = arith.mulf %10, %10 : vector<2x1x128xf32>
    %17 = arith.subf %15, %16 : vector<2x1x128xf32>
    %cst_9 = arith.constant 0.000000e+00 : f32
    %18 = vector.broadcast %cst_9 : f32 to vector<2x1x128xf32>
    %19 = arith.maximumf %17, %18 : vector<2x1x128xf32>
    %cst_10 = arith.constant 9.99999974E-6 : f32
    %20 = vector.broadcast %cst_10 : f32 to vector<2x1x128xf32>
    %21 = arith.addf %19, %20 : vector<2x1x128xf32>
    %22 = math.rsqrt %21 : vector<2x1x128xf32>
    %23 = vector.shape_cast %4 : vector<1x128xf32> to vector<1x1x128xf32>
    %24 = vector.broadcast %23 : vector<1x1x128xf32> to vector<2x1x128xf32>
    %25 = arith.mulf %22, %24 : vector<2x1x128xf32>
    %26 = arith.mulf %10, %25 : vector<2x1x128xf32>
    %27 = vector.shape_cast %5 : vector<1x128xf32> to vector<1x1x128xf32>
    %28 = vector.broadcast %27 : vector<1x1x128xf32> to vector<2x1x128xf32>
    %29 = arith.subf %28, %26 : vector<2x1x128xf32>
    %30 = vector.broadcast %25 : vector<2x1x128xf32> to vector<2x512x128xf32>
    %31 = arith.mulf %6, %30 : vector<2x512x128xf32>
    %32 = vector.broadcast %29 : vector<2x1x128xf32> to vector<2x512x128xf32>
    %33 = arith.addf %31, %32 : vector<2x512x128xf32>
    %cst_11 = arith.constant 0.000000e+00 : f32
    %34 = vector.broadcast %cst_11 : f32 to vector<2x512x128xf32>
    %35 = arith.maximumf %33, %34 : vector<2x512x128xf32>
    %36 = vector.shape_cast %35 : vector<2x512x128xf32> to vector<1024x128xf32>
    %37 = vector.shape_cast %36 : vector<1024x128xf32> to vector<4x256x128xf32>
    %cst_12 = arith.constant dense<0.000000e+00> : vector<4x128xf32>
    %38 = vector.multi_reduction <add>, %37, %cst_12 [1] : vector<4x256x128xf32> to vector<4x128xf32>
    %cst_13 = arith.constant 2.560000e+02 : f32
    %39 = vector.broadcast %cst_13 : f32 to vector<4x128xf32>
    %40 = arith.divf %38, %39 : vector<4x128xf32>
    %41 = arith.truncf %40 : vector<4x128xf32> to vector<4x128xbf16>
    %c0_14 = arith.constant 0 : index
    %c0_15 = arith.constant 0 : index
    %c0_16 = arith.constant 0 : index
    %42 = vector.load %arg2[%c0_14, %c0_15, %c0_16] : memref<5x128x128xbf16, #tpu.memory_space<vmem>>, vector<1x128x128xbf16>
    %43 = vector.shape_cast %42 : vector<1x128x128xbf16> to vector<128x128xbf16>
    %cst_17 = arith.constant dense<0.000000e+00> : vector<4x128xf32>
    %44 = tpu.matmul %41, %43, %cst_17 {dimension_numbers = #tpu.dot_dimension_numbers<[1], [0], [0], [1], [0, 0, 1, 1], [], []>} : vector<4x128xbf16>, vector<128x128xbf16>, vector<4x128xf32> -> vector<4x128xf32>
    %45 = vector.extract_strided_slice %0 {offsets = [2, 0], sizes = [1, 128], strides = [1, 1]} : vector<9x128xf32> to vector<1x128xf32>
    %46 = vector.extract_strided_slice %0 {offsets = [3, 0], sizes = [1, 128], strides = [1, 1]} : vector<9x128xf32> to vector<1x128xf32>
    %47 = vector.shape_cast %44 : vector<4x128xf32> to vector<2x2x128xf32>
    %cst_18 = arith.constant dense<0.000000e+00> : vector<2x128xf32>
    %48 = vector.multi_reduction <add>, %47, %cst_18 [1] : vector<2x2x128xf32> to vector<2x128xf32>
    %49 = vector.shape_cast %48 : vector<2x128xf32> to vector<2x1x128xf32>
    %cst_19 = arith.constant 2.000000e+00 : f32
    %50 = vector.broadcast %cst_19 : f32 to vector<2x1x128xf32>
    %51 = arith.divf %49, %50 : vector<2x1x128xf32>
    %52 = arith.mulf %47, %47 : vector<2x2x128xf32>
    %cst_20 = arith.constant dense<0.000000e+00> : vector<2x128xf32>
    %53 = vector.multi_reduction <add>, %52, %cst_20 [1] : vector<2x2x128xf32> to vector<2x128xf32>
    %54 = vector.shape_cast %53 : vector<2x128xf32> to vector<2x1x128xf32>
    %cst_21 = arith.constant 2.000000e+00 : f32
    %55 = vector.broadcast %cst_21 : f32 to vector<2x1x128xf32>
    %56 = arith.divf %54, %55 : vector<2x1x128xf32>
    %57 = arith.mulf %51, %51 : vector<2x1x128xf32>
    %58 = arith.subf %56, %57 : vector<2x1x128xf32>
    %cst_22 = arith.constant 0.000000e+00 : f32
    %59 = vector.broadcast %cst_22 : f32 to vector<2x1x128xf32>
    %60 = arith.maximumf %58, %59 : vector<2x1x128xf32>
    %cst_23 = arith.constant 9.99999974E-6 : f32
    %61 = vector.broadcast %cst_23 : f32 to vector<2x1x128xf32>
    %62 = arith.addf %60, %61 : vector<2x1x128xf32>
    %63 = math.rsqrt %62 : vector<2x1x128xf32>
    %64 = vector.shape_cast %45 : vector<1x128xf32> to vector<1x1x128xf32>
    %65 = vector.broadcast %64 : vector<1x1x128xf32> to vector<2x1x128xf32>
    %66 = arith.mulf %63, %65 : vector<2x1x128xf32>
    %67 = arith.mulf %51, %66 : vector<2x1x128xf32>
    %68 = vector.shape_cast %46 : vector<1x128xf32> to vector<1x1x128xf32>
    %69 = vector.broadcast %68 : vector<1x1x128xf32> to vector<2x1x128xf32>
    %70 = arith.subf %69, %67 : vector<2x1x128xf32>
    %71 = vector.broadcast %66 : vector<2x1x128xf32> to vector<2x2x128xf32>
    %72 = arith.mulf %47, %71 : vector<2x2x128xf32>
    %73 = vector.broadcast %70 : vector<2x1x128xf32> to vector<2x2x128xf32>
    %74 = arith.addf %72, %73 : vector<2x2x128xf32>
    %cst_24 = arith.constant 0.000000e+00 : f32
    %75 = vector.broadcast %cst_24 : f32 to vector<2x2x128xf32>
    %76 = arith.maximumf %74, %75 : vector<2x2x128xf32>
    %77 = vector.shape_cast %76 : vector<2x2x128xf32> to vector<4x128xf32>
    %78 = arith.truncf %77 : vector<4x128xf32> to vector<4x128xbf16>
    %c1 = arith.constant 1 : index
    %c0_25 = arith.constant 0 : index
    %c0_26 = arith.constant 0 : index
    %79 = vector.load %arg2[%c1, %c0_25, %c0_26] : memref<5x128x128xbf16, #tpu.memory_space<vmem>>, vector<1x128x128xbf16>
    %80 = vector.shape_cast %79 : vector<1x128x128xbf16> to vector<128x128xbf16>
    %cst_27 = arith.constant dense<0.000000e+00> : vector<4x128xf32>
    %81 = tpu.matmul %78, %80, %cst_27 {dimension_numbers = #tpu.dot_dimension_numbers<[1], [0], [0], [1], [0, 0, 1, 1], [], []>} : vector<4x128xbf16>, vector<128x128xbf16>, vector<4x128xf32> -> vector<4x128xf32>
    %82 = vector.extract_strided_slice %0 {offsets = [4, 0], sizes = [1, 128], strides = [1, 1]} : vector<9x128xf32> to vector<1x128xf32>
    %83 = vector.extract_strided_slice %0 {offsets = [5, 0], sizes = [1, 128], strides = [1, 1]} : vector<9x128xf32> to vector<1x128xf32>
    %84 = vector.shape_cast %81 : vector<4x128xf32> to vector<2x2x128xf32>
    %cst_28 = arith.constant dense<0.000000e+00> : vector<2x128xf32>
    %85 = vector.multi_reduction <add>, %84, %cst_28 [1] : vector<2x2x128xf32> to vector<2x128xf32>
    %86 = vector.shape_cast %85 : vector<2x128xf32> to vector<2x1x128xf32>
    %cst_29 = arith.constant 2.000000e+00 : f32
    %87 = vector.broadcast %cst_29 : f32 to vector<2x1x128xf32>
    %88 = arith.divf %86, %87 : vector<2x1x128xf32>
    %89 = arith.mulf %84, %84 : vector<2x2x128xf32>
    %cst_30 = arith.constant dense<0.000000e+00> : vector<2x128xf32>
    %90 = vector.multi_reduction <add>, %89, %cst_30 [1] : vector<2x2x128xf32> to vector<2x128xf32>
    %91 = vector.shape_cast %90 : vector<2x128xf32> to vector<2x1x128xf32>
    %cst_31 = arith.constant 2.000000e+00 : f32
    %92 = vector.broadcast %cst_31 : f32 to vector<2x1x128xf32>
    %93 = arith.divf %91, %92 : vector<2x1x128xf32>
    %94 = arith.mulf %88, %88 : vector<2x1x128xf32>
    %95 = arith.subf %93, %94 : vector<2x1x128xf32>
    %cst_32 = arith.constant 0.000000e+00 : f32
    %96 = vector.broadcast %cst_32 : f32 to vector<2x1x128xf32>
    %97 = arith.maximumf %95, %96 : vector<2x1x128xf32>
    %cst_33 = arith.constant 9.99999974E-6 : f32
    %98 = vector.broadcast %cst_33 : f32 to vector<2x1x128xf32>
    %99 = arith.addf %97, %98 : vector<2x1x128xf32>
    %100 = math.rsqrt %99 : vector<2x1x128xf32>
    %101 = vector.shape_cast %82 : vector<1x128xf32> to vector<1x1x128xf32>
    %102 = vector.broadcast %101 : vector<1x1x128xf32> to vector<2x1x128xf32>
    %103 = arith.mulf %100, %102 : vector<2x1x128xf32>
    %104 = arith.mulf %88, %103 : vector<2x1x128xf32>
    %105 = vector.shape_cast %83 : vector<1x128xf32> to vector<1x1x128xf32>
    %106 = vector.broadcast %105 : vector<1x1x128xf32> to vector<2x1x128xf32>
    %107 = arith.subf %106, %104 : vector<2x1x128xf32>
    %108 = vector.broadcast %103 : vector<2x1x128xf32> to vector<2x2x128xf32>
    %109 = arith.mulf %84, %108 : vector<2x2x128xf32>
    %110 = vector.broadcast %107 : vector<2x1x128xf32> to vector<2x2x128xf32>
    %111 = arith.addf %109, %110 : vector<2x2x128xf32>
    %cst_34 = arith.constant 0.000000e+00 : f32
    %112 = vector.broadcast %cst_34 : f32 to vector<2x2x128xf32>
    %113 = arith.maximumf %111, %112 : vector<2x2x128xf32>
    %114 = vector.shape_cast %113 : vector<2x2x128xf32> to vector<4x128xf32>
    %115 = arith.truncf %114 : vector<4x128xf32> to vector<4x128xbf16>
    %c2 = arith.constant 2 : index
    %c0_35 = arith.constant 0 : index
    %c0_36 = arith.constant 0 : index
    %116 = vector.load %arg2[%c2, %c0_35, %c0_36] : memref<5x128x128xbf16, #tpu.memory_space<vmem>>, vector<1x128x128xbf16>
    %117 = vector.shape_cast %116 : vector<1x128x128xbf16> to vector<128x128xbf16>
    %cst_37 = arith.constant dense<0.000000e+00> : vector<4x128xf32>
    %118 = tpu.matmul %115, %117, %cst_37 {dimension_numbers = #tpu.dot_dimension_numbers<[1], [0], [0], [1], [0, 0, 1, 1], [], []>} : vector<4x128xbf16>, vector<128x128xbf16>, vector<4x128xf32> -> vector<4x128xf32>
    %119 = vector.shape_cast %118 : vector<4x128xf32> to vector<2x2x128xf32>
    %cst_38 = arith.constant dense<0.000000e+00> : vector<2x128xf32>
    %120 = vector.multi_reduction <add>, %119, %cst_38 [1] : vector<2x2x128xf32> to vector<2x128xf32>
    %121 = vector.shape_cast %120 : vector<2x128xf32> to vector<2x1x128xf32>
    %cst_39 = arith.constant 2.000000e+00 : f32
    %122 = vector.broadcast %cst_39 : f32 to vector<2x1x128xf32>
    %123 = arith.divf %121, %122 : vector<2x1x128xf32>
    %124 = arith.mulf %119, %119 : vector<2x2x128xf32>
    %cst_40 = arith.constant dense<0.000000e+00> : vector<2x128xf32>
    %125 = vector.multi_reduction <add>, %124, %cst_40 [1] : vector<2x2x128xf32> to vector<2x128xf32>
    %126 = vector.shape_cast %125 : vector<2x128xf32> to vector<2x1x128xf32>
    %cst_41 = arith.constant 2.000000e+00 : f32
    %127 = vector.broadcast %cst_41 : f32 to vector<2x1x128xf32>
    %128 = arith.divf %126, %127 : vector<2x1x128xf32>
    %129 = arith.mulf %123, %123 : vector<2x1x128xf32>
    %130 = arith.subf %128, %129 : vector<2x1x128xf32>
    %cst_42 = arith.constant 0.000000e+00 : f32
    %131 = vector.broadcast %cst_42 : f32 to vector<2x1x128xf32>
    %132 = arith.maximumf %130, %131 : vector<2x1x128xf32>
    %cst_43 = arith.constant 9.99999974E-6 : f32
    %133 = vector.broadcast %cst_43 : f32 to vector<2x1x128xf32>
    %134 = arith.addf %132, %133 : vector<2x1x128xf32>
    %135 = math.rsqrt %134 : vector<2x1x128xf32>
    %cst_44 = arith.constant 0.000000e+00 : f32
    %136 = vector.broadcast %cst_44 : f32 to vector<2x1x128xf32>
    %137 = arith.subf %136, %123 : vector<2x1x128xf32>
    %138 = arith.mulf %137, %135 : vector<2x1x128xf32>
    %139 = vector.broadcast %135 : vector<2x1x128xf32> to vector<2x2x128xf32>
    %140 = arith.mulf %119, %139 : vector<2x2x128xf32>
    %141 = vector.broadcast %138 : vector<2x1x128xf32> to vector<2x2x128xf32>
    %142 = arith.addf %140, %141 : vector<2x2x128xf32>
    %143 = vector.shape_cast %142 : vector<2x2x128xf32> to vector<4x128xf32>
    %144 = arith.truncf %143 : vector<4x128xf32> to vector<4x128xbf16>
    %c3 = arith.constant 3 : index
    %c0_45 = arith.constant 0 : index
    %c0_46 = arith.constant 0 : index
    %145 = vector.load %arg2[%c3, %c0_45, %c0_46] : memref<5x128x128xbf16, #tpu.memory_space<vmem>>, vector<1x128x128xbf16>
    %146 = vector.shape_cast %145 : vector<1x128x128xbf16> to vector<128x128xbf16>
    %cst_47 = arith.constant dense<0.000000e+00> : vector<4x128xf32>
    %147 = tpu.matmul %144, %146, %cst_47 {dimension_numbers = #tpu.dot_dimension_numbers<[1], [0], [0], [1], [0, 0, 1, 1], [], []>} : vector<4x128xbf16>, vector<128x128xbf16>, vector<4x128xf32> -> vector<4x128xf32>
    %148 = vector.extract_strided_slice %0 {offsets = [6, 0], sizes = [1, 128], strides = [1, 1]} : vector<9x128xf32> to vector<1x128xf32>
    %149 = vector.extract_strided_slice %0 {offsets = [7, 0], sizes = [1, 128], strides = [1, 1]} : vector<9x128xf32> to vector<1x128xf32>
    %150 = vector.shape_cast %147 : vector<4x128xf32> to vector<2x2x128xf32>
    %cst_48 = arith.constant dense<0.000000e+00> : vector<2x128xf32>
    %151 = vector.multi_reduction <add>, %150, %cst_48 [1] : vector<2x2x128xf32> to vector<2x128xf32>
    %152 = vector.shape_cast %151 : vector<2x128xf32> to vector<2x1x128xf32>
    %cst_49 = arith.constant 2.000000e+00 : f32
    %153 = vector.broadcast %cst_49 : f32 to vector<2x1x128xf32>
    %154 = arith.divf %152, %153 : vector<2x1x128xf32>
    %155 = arith.mulf %150, %150 : vector<2x2x128xf32>
    %cst_50 = arith.constant dense<0.000000e+00> : vector<2x128xf32>
    %156 = vector.multi_reduction <add>, %155, %cst_50 [1] : vector<2x2x128xf32> to vector<2x128xf32>
    %157 = vector.shape_cast %156 : vector<2x128xf32> to vector<2x1x128xf32>
    %cst_51 = arith.constant 2.000000e+00 : f32
    %158 = vector.broadcast %cst_51 : f32 to vector<2x1x128xf32>
    %159 = arith.divf %157, %158 : vector<2x1x128xf32>
    %160 = arith.mulf %154, %154 : vector<2x1x128xf32>
    %161 = arith.subf %159, %160 : vector<2x1x128xf32>
    %cst_52 = arith.constant 0.000000e+00 : f32
    %162 = vector.broadcast %cst_52 : f32 to vector<2x1x128xf32>
    %163 = arith.maximumf %161, %162 : vector<2x1x128xf32>
    %cst_53 = arith.constant 9.99999974E-6 : f32
    %164 = vector.broadcast %cst_53 : f32 to vector<2x1x128xf32>
    %165 = arith.addf %163, %164 : vector<2x1x128xf32>
    %166 = math.rsqrt %165 : vector<2x1x128xf32>
    %167 = vector.shape_cast %148 : vector<1x128xf32> to vector<1x1x128xf32>
    %168 = vector.broadcast %167 : vector<1x1x128xf32> to vector<2x1x128xf32>
    %169 = arith.mulf %166, %168 : vector<2x1x128xf32>
    %170 = arith.mulf %154, %169 : vector<2x1x128xf32>
    %171 = vector.shape_cast %149 : vector<1x128xf32> to vector<1x1x128xf32>
    %172 = vector.broadcast %171 : vector<1x1x128xf32> to vector<2x1x128xf32>
    %173 = arith.subf %172, %170 : vector<2x1x128xf32>
    %174 = vector.broadcast %169 : vector<2x1x128xf32> to vector<2x2x128xf32>
    %175 = arith.mulf %150, %174 : vector<2x2x128xf32>
    %176 = vector.broadcast %173 : vector<2x1x128xf32> to vector<2x2x128xf32>
    %177 = arith.addf %175, %176 : vector<2x2x128xf32>
    %cst_54 = arith.constant 0.000000e+00 : f32
    %178 = vector.broadcast %cst_54 : f32 to vector<2x2x128xf32>
    %179 = arith.maximumf %177, %178 : vector<2x2x128xf32>
    %180 = vector.shape_cast %179 : vector<2x2x128xf32> to vector<4x128xf32>
    %181 = arith.truncf %180 : vector<4x128xf32> to vector<4x128xbf16>
    %c4 = arith.constant 4 : index
    %c0_55 = arith.constant 0 : index
    %c0_56 = arith.constant 0 : index
    %182 = vector.load %arg2[%c4, %c0_55, %c0_56] : memref<5x128x128xbf16, #tpu.memory_space<vmem>>, vector<1x128x128xbf16>
    %183 = vector.shape_cast %182 : vector<1x128x128xbf16> to vector<128x128xbf16>
    %cst_57 = arith.constant dense<0.000000e+00> : vector<4x128xf32>
    %184 = tpu.matmul %181, %183, %cst_57 {dimension_numbers = #tpu.dot_dimension_numbers<[1], [0], [0], [1], [0, 0, 1, 1], [], []>} : vector<4x128xbf16>, vector<128x128xbf16>, vector<4x128xf32> -> vector<4x128xf32>
    %185 = vector.extract_strided_slice %0 {offsets = [8, 0], sizes = [1, 128], strides = [1, 1]} : vector<9x128xf32> to vector<1x128xf32>
    %186 = vector.broadcast %185 : vector<1x128xf32> to vector<4x128xf32>
    %187 = arith.addf %184, %186 : vector<4x128xf32>
    %c0_58 = arith.constant 0 : index
    %c0_59 = arith.constant 0 : index
    %188 = vector.load %arg4[%c0_58, %c0_59] : memref<4x128xf32, #tpu.memory_space<vmem>>, vector<4x128xf32>
    tpu.vector_store %arg4[%c0_58, %c0_59], %187 {strides = array<i32>} : memref<4x128xf32, #tpu.memory_space<vmem>>, vector<4x128xf32>,
    %c0_60 = arith.constant 0 : index
    %c0_61 = arith.constant 0 : index
    %189 = vector.load %arg5[%c0_60, %c0_61] : memref<4x128xf32, #tpu.memory_space<vmem>>, vector<4x128xf32>
    tpu.vector_store %arg5[%c0_60, %c0_61], %143 {strides = array<i32>} : memref<4x128xf32, #tpu.memory_space<vmem>>, vector<4x128xf32>,
    return
  }
}

</mosaic_0001>

<bundles_post_ra>
// kernel: simsiam_forward.1
= control target key start
LH: loop header
LB: loop body
LE: loop exit
PB: predicated region body
PF: predicated region fallthrough
CT: control target
= control target key end

     0   :  { %vm683_vm0 = vcmask 1041408   ;;  %vm490_vm1 = vcmask 293888   ;;  %vm2046_vm10 = vcmask 1041409   ;;  %vm2048_vm11 = vcmask 1042434   ;;  %s5297_s1 = inlined_call_operand.vmem [shape: bf16[36,128], index: 1, kind: input, shape index: {}]   ;;  %s5298_s0 = inlined_call_operand.vmem [shape: bf16[1024,36], index: 0, kind: input, shape index: {}]   ;;  %s5299_s3 = inlined_call_operand.vmem [shape: f32[9,128], index: 3, kind: input, shape index: {}]   ;;  %s5300_s2 = inlined_call_operand.vmem [shape: bf16[5,128,128], index: 2, kind: input, shape index: {}]   ;;  %s5301_s5 = inlined_call_operand.vmem [shape: f32[4,128], index: 5, kind: output, shape index: {1}]   ;;  %s5302_s4 = inlined_call_operand.vmem [shape: f32[4,128], index: 4, kind: output, shape index: {0}]  }
   0x1   :  { %v154_v0 = vld [vmem:[%s5297_s1 + $0x10] sm:$0x3]  ;;  %v3433_v4 = vld [vmem:[%s5297_s1 + $0x8] sm:$0xff]  ;;  %v3432_v5 = vld [vmem:[%s5297_s1] sm:$0xff]  ;;  %vm2050_vm12 = vcmask 1043459  }
   0x2   :  { %v484_v1 = vunpack.c.l.b16 %v154_v0  ;;  %v3368_v6 = vld [vmem:[%s5298_s0] sm:$0xff]  ;;  %v3387_v7 = vld [vmem:[%s5298_s0 + $0x98] sm:$0xff]  ;;  %v3369_v8 = vld [vmem:[%s5298_s0 + $0x8] sm:$0xff] }
   0x3   :  { %v3388_v9 = vld [vmem:[%s5298_s0 + $0xa0] sm:$0xff]  ;;  %v3414_v10 = vld [vmem:[%s5298_s0 + $0x170] sm:$0xff]  ;;  %v3389_v12 = vld [vmem:[%s5298_s0 + $0xa8] sm:$0xff] }
   0x4   :  { %v487_v2 = vpack.c.b16 %v484_v1, %v484_v1  ;;  %v3370_v11 = vld [vmem:[%s5298_s0 + $0x10] sm:$0xff]  ;;  %v3415_v13 = vld [vmem:[%s5298_s0 + $0x178] sm:$0xff]  ;;  %v3416_v17 = vld [vmem:[%s5298_s0 + $0x180] sm:$0xff] }
   0x5   :  { %v3371_v14 = vld [vmem:[%s5298_s0 + $0x18] sm:$0xff]  ;;  %v3390_v15 = vld [vmem:[%s5298_s0 + $0xb0] sm:$0xff]  ;;  %v3372_v18 = vld [vmem:[%s5298_s0 + $0x20] sm:$0xff] }
   0x6   :  { %v685_v3 = vsel %vm683_vm0, %v487_v2, 0  ;;  %v3402_v16 = vld [vmem:[%s5298_s0 + $0x110] sm:$0xff]  ;;  %v3391_v19 = vld [vmem:[%s5298_s0 + $0xb8] sm:$0xff]  ;;  %v3417_v21 = vld [vmem:[%s5298_s0 + $0x188] sm:$0xff] }
   0x7   :  { %692 = vmatpush.bf16.msra.mxu0 %v685_v3  ;;  %3474 = vmatpush.bf16.msra.mxu1 %v685_v3  ;;  %v3403_v20 = vld [vmem:[%s5298_s0 + $0x118] sm:$0xff]  ;;  %v3373_v22 = vld [vmem:[%s5298_s0 + $0x28] sm:$0xff]  ;;  %v3392_v23 = vld [vmem:[%s5298_s0 + $0xc0] sm:$0xff] }
   0x8   :  { %3476 = vmatpush.bf16.msra.mxu3 %v685_v3  ;;  %3475 = vmatpush.bf16.msra.mxu2 %v685_v3  ;;  %v3404_v24 = vld [vmem:[%s5298_s0 + $0x120] sm:$0xff]  ;;  %v3418_v25 = vld [vmem:[%s5298_s0 + $0x190] sm:$0xff]  ;;  %v3393_v27 = vld [vmem:[%s5298_s0 + $0xc8] sm:$0xff] }
   0x9   :  { %v3374_v26 = vld [vmem:[%s5298_s0 + $0x30] sm:$0xff]  ;;  %v3405_v28 = vld [vmem:[%s5298_s0 + $0x128] sm:$0xff]  ;;  %v3419_v29 = vld [vmem:[%s5298_s0 + $0x198] sm:$0xff] }
   0xa   :  { %v3375_v30 = vld [vmem:[%s5298_s0 + $0x38] sm:$0xff]  ;;  %v3394_v31 = vld [vmem:[%s5298_s0 + $0xd0] sm:$0xff]  ;;  %v3420_v33 = vld [vmem:[%s5298_s0 + $0x1a0] sm:$0xff] }
   0xb   :  { %693 = vmatpush.bf16.msra.mxu0 %v3433_v4  ;;  %3477 = vmatpush.bf16.msra.mxu1 %v3433_v4  ;;  %v3406_v32 = vld [vmem:[%s5298_s0 + $0x130] sm:$0xff]  ;;  %v3376_v34 = vld [vmem:[%s5298_s0 + $0x40] sm:$0xff]  ;;  %v3395_v35 = vld [vmem:[%s5298_s0 + $0xd8] sm:$0xff] }
   0xc   :  { %3479 = vmatpush.bf16.msra.mxu3 %v3433_v4  ;;  %3478 = vmatpush.bf16.msra.mxu2 %v3433_v4  ;;  %v3407_v38 = vld [vmem:[%s5298_s0 + $0x138] sm:$0xff]  ;;  %v3421_v41 = vld [vmem:[%s5298_s0 + $0x1a8] sm:$0xff]  ;;  %v3396_v43 = vld [vmem:[%s5298_s0 + $0xe0] sm:$0xff] }
   0xd   :  { %v3377_v42 = vld [vmem:[%s5298_s0 + $0x48] sm:$0xff]  ;;  %v3408_v46 = vld [vmem:[%s5298_s0 + $0x140] sm:$0xff]  ;;  %v3422_v49 = vld [vmem:[%s5298_s0 + $0x1b0] sm:$0xff] }
   0xe   :  { %v3378_v50 = vld [vmem:[%s5298_s0 + $0x50] sm:$0xff]  ;;  %v3397_v51 = vld [vmem:[%s5298_s0 + $0xe8] sm:$0xff]  ;;  %v3423_v58 = vld [vmem:[%s5298_s0 + $0x1b8] sm:$0xff] }
   0xf   :  { %694 = vmatpush.bf16.msra.mxu0 %v3432_v5  ;;  %3480 = vmatpush.bf16.msra.mxu1 %v3432_v5  ;;  %v3409_v54 = vld [vmem:[%s5298_s0 + $0x148] sm:$0xff]  ;;  %v3379_v59 = vld [vmem:[%s5298_s0 + $0x58] sm:$0xff]  ;;  %v3398_v60 = vld [vmem:[%s5298_s0 + $0xf0] sm:$0xff] }
  0x10   :  { %3482 = vmatpush.bf16.msra.mxu3 %v3432_v5  ;;  %3481 = vmatpush.bf16.msra.mxu2 %v3432_v5  ;;  %v3410_v0 = vld [vmem:[%s5298_s0 + $0x150] sm:$0xff]  ;;  %v3424_v4 = vld [vmem:[%s5298_s0 + $0x1c0] sm:$0xff] }
  0x12   :  { %3080 = vmatmul.msk.bf16.vlgmr.msra.gmra.mxu0 %vm490_vm1, %v3368_v6  ;;  %3099 = vmatmul.msk.bf16.vlgmr.msra.gmra.mxu1 %vm490_vm1, %v3387_v7  ;;  %v3380_v6 = vld [vmem:[%s5298_s0 + $0x60] sm:$0xff]  ;;  %v3399_v7 = vld [vmem:[%s5298_s0 + $0xf8] sm:$0xff] }
  0x13   :  { %3126 = vmatmul.msk.bf16.vlgmr.msra.gmra.mxu3 %vm490_vm1, %v3414_v10  ;;  %3114 = vmatmul.msk.bf16.vlgmr.msra.gmra.mxu2 %vm490_vm1, %v3402_v16  ;;  %v3425_v16 = vld [vmem:[%s5298_s0 + $0x1c8] sm:$0xff] }
  0x22   :  { %3081 = vmatmul.msk.bf16.gmra.mxu0 %vm490_vm1, %v3369_v8  ;;  %3100 = vmatmul.msk.bf16.gmra.mxu1 %vm490_vm1, %v3388_v9 }
  0x23   :  { %3127 = vmatmul.msk.bf16.gmra.mxu3 %vm490_vm1, %v3415_v13  ;;  %3115 = vmatmul.msk.bf16.gmra.mxu2 %vm490_vm1, %v3403_v20 }
  0x32   :  { %3082 = vmatmul.msk.bf16.gmra.mxu0 %vm490_vm1, %v3370_v11  ;;  %3101 = vmatmul.msk.bf16.gmra.mxu1 %vm490_vm1, %v3389_v12  ;;  %v3411_v11 = vld [vmem:[%s5298_s0 + $0x158] sm:$0xff] }
  0x33   :  { %3128 = vmatmul.msk.bf16.gmra.mxu3 %vm490_vm1, %v3416_v17  ;;  %3116 = vmatmul.msk.bf16.gmra.mxu2 %vm490_vm1, %v3404_v24  ;;  %v3381_v17 = vld [vmem:[%s5298_s0 + $0x68] sm:$0xff] }
  0x42   :  { %3083 = vmatmul.msk.bf16.gmra.mxu0 %vm490_vm1, %v3371_v14  ;;  %3102 = vmatmul.msk.bf16.gmra.mxu1 %vm490_vm1, %v3390_v15 }
  0x43   :  { %3129 = vmatmul.msk.bf16.gmra.mxu3 %vm490_vm1, %v3417_v21  ;;  %3117 = vmatmul.msk.bf16.gmra.mxu2 %vm490_vm1, %v3405_v28  ;;  %v3426_v28 = vld [vmem:[%s5298_s0 + $0x1d0] sm:$0xff] }
  0x52   :  { %3084 = vmatmul.msk.bf16.gmra.mxu0 %vm490_vm1, %v3372_v18  ;;  %3103 = vmatmul.msk.bf16.gmra.mxu1 %vm490_vm1, %v3391_v19  ;;  %v3400_v18 = vld [vmem:[%s5298_s0 + $0x100] sm:$0xff] }
  0x53   :  { %3130 = vmatmul.msk.bf16.gmra.mxu3 %vm490_vm1, %v3418_v25  ;;  %3118 = vmatmul.msk.bf16.gmra.mxu2 %vm490_vm1, %v3406_v32 }
  0x62   :  { %3085 = vmatmul.msk.bf16.gmra.mxu0 %vm490_vm1, %v3373_v22  ;;  %3104 = vmatmul.msk.bf16.gmra.mxu1 %vm490_vm1, %v3392_v23  ;;  %v3412_v23 = vld [vmem:[%s5298_s0 + $0x160] sm:$0xff] }
  0x63   :  { %3131 = vmatmul.msk.bf16.gmra.mxu3 %vm490_vm1, %v3419_v29  ;;  %3119 = vmatmul.msk.bf16.gmra.mxu2 %vm490_vm1, %v3407_v38  ;;  %v3382_v29 = vld [vmem:[%s5298_s0 + $0x70] sm:$0xff] }
  0x72   :  { %3086 = vmatmul.msk.bf16.gmra.mxu0 %vm490_vm1, %v3374_v26  ;;  %3105 = vmatmul.msk.bf16.gmra.mxu1 %vm490_vm1, %v3393_v27 }
  0x73   :  { %3132 = vmatmul.msk.bf16.gmra.mxu3 %vm490_vm1, %v3420_v33  ;;  %3120 = vmatmul.msk.bf16.gmra.mxu2 %vm490_vm1, %v3408_v46  ;;  %v3383_v46 = vld [vmem:[%s5298_s0 + $0x78] sm:$0xff] }
  0x82   :  { %3087 = vmatmul.msk.bf16.gmra.mxu0 %vm490_vm1, %v3375_v30  ;;  %3106 = vmatmul.msk.bf16.gmra.mxu1 %vm490_vm1, %v3394_v31  ;;  %v3401_v30 = vld [vmem:[%s5298_s0 + $0x108] sm:$0xff] }
  0x83   :  { %3133 = vmatmul.msk.bf16.gmra.mxu3 %vm490_vm1, %v3421_v41  ;;  %3121 = vmatmul.msk.bf16.gmra.mxu2 %vm490_vm1, %v3409_v54 }
  0x8f   :  { %v3675_v36 = vpop.f32.mrf.mxu0  ;;  %v3677_v37 = vpop.f32.mrf.mxu1 }
  0x90   :  { %5437 = vst [vmem:[#allocation2_spill] sm:$0xff] %v3675_v36 }
  0x91   :  { %5438 = vst [vmem:[#allocation3_spill] sm:$0xff] %v3677_v37 }
  0x92   :  { %3088 = vmatmul.msk.bf16.gmra.mxu0 %vm490_vm1, %v3376_v34  ;;  %3107 = vmatmul.msk.bf16.gmra.mxu1 %vm490_vm1, %v3395_v35  ;;  %v3413_v34 = vld [vmem:[%s5298_s0 + $0x168] sm:$0xff] }
  0x93   :  { %3134 = vmatmul.msk.bf16.gmra.mxu3 %vm490_vm1, %v3422_v49  ;;  %3122 = vmatmul.msk.bf16.gmra.mxu2 %vm490_vm1, %v3410_v0  ;;  %v3428_v0 = vld [vmem:[%s5298_s0 + $0x1e0] sm:$0xff] }
  0x96   :  { %v3737_v57 = vpop.f32.mrf.mxu3  ;;  %v3765_v3 = vpop.f32.mrf.mxu2 }
  0x97   :  { %v3685_v39 = vpop.f32.mrf.mxu0  ;;  %v3687_v40 = vpop.f32.mrf.mxu1  ;;  %5448 = vst [vmem:[#allocation13_spill] sm:$0xff] %v3737_v57 }
  0x98   :  { %5439 = vst [vmem:[#allocation4_spill] sm:$0xff] %v3685_v39 }
  0x99   :  { %5440 = vst [vmem:[#allocation5_spill] sm:$0xff] %v3687_v40 }
  0x9a   :  { %5452 = vst [vmem:[#allocation17_spill] sm:$0xff] %v3765_v3 }
  0x9e   :  { %v3755_v63 = vpop.f32.mrf.mxu3  ;;  %v3783_v10 = vpop.f32.mrf.mxu2 }
  0x9f   :  { %v3699_v44 = vpop.f32.mrf.mxu0  ;;  %v3701_v45 = vpop.f32.mrf.mxu1  ;;  %5450 = vst [vmem:[#allocation15_spill] sm:$0xff] %v3755_v63 }
  0xa0   :  { %5441 = vst [vmem:[#allocation6_spill] sm:$0xff] %v3699_v44 }
  0xa1   :  { %5442 = vst [vmem:[#allocation7_spill] sm:$0xff] %v3701_v45 }
  0xa2   :  { %3089 = vmatmul.msk.bf16.gmra.mxu0 %vm490_vm1, %v3377_v42  ;;  %3108 = vmatmul.msk.bf16.gmra.mxu1 %vm490_vm1, %v3396_v43  ;;  %5455 = vst [vmem:[#allocation20_spill] sm:$0xff] %v3783_v10  ;;  %v3427_v43 = vld [vmem:[%s5298_s0 + $0x1d8] sm:$0xff] }
  0xa3   :  { %3135 = vmatmul.msk.bf16.gmra.mxu3 %vm490_vm1, %v3423_v58  ;;  %3123 = vmatmul.msk.bf16.gmra.mxu2 %vm490_vm1, %v3411_v11 }
  0xa6   :  { %v3770_v5 = vpop.f32.mrf.mxu3  ;;  %v3797_v15 = vpop.f32.mrf.mxu2 }
  0xa7   :  { %v3709_v47 = vpop.f32.mrf.mxu0  ;;  %v3711_v48 = vpop.f32.mrf.mxu1  ;;  %5453 = vst [vmem:[#allocation18_spill] sm:$0xff] %v3770_v5 }
  0xa8   :  { %5443 = vst [vmem:[#allocation8_spill] sm:$0xff] %v3709_v47 }
  0xa9   :  { %5444 = vst [vmem:[#allocation9_spill] sm:$0xff] %v3711_v48 }
  0xaa   :  { %5458 = vst [vmem:[#allocation23_spill] sm:$0xff] %v3797_v15 }
  0xae   :  { %v3791_v12 = vpop.f32.mrf.mxu3  ;;  %v3815_v22 = vpop.f32.mrf.mxu2 }
  0xaf   :  { %v3723_v52 = vpop.f32.mrf.mxu0  ;;  %v3725_v53 = vpop.f32.mrf.mxu1  ;;  %5456 = vst [vmem:[#allocation21_spill] sm:$0xff] %v3791_v12 }
  0xb0   :  { %5445 = vst [vmem:[#allocation10_spill] sm:$0xff] %v3723_v52 }
  0xb1   :  { %5446 = vst [vmem:[#allocation11_spill] sm:$0xff] %v3725_v53 }
  0xb2   :  { %3090 = vmatmul.msk.bf16.gmra.mxu0 %vm490_vm1, %v3378_v50  ;;  %3109 = vmatmul.msk.bf16.gmra.mxu1 %vm490_vm1, %v3397_v51  ;;  %5461 = vst [vmem:[#allocation26_spill] sm:$0xff] %v3815_v22 }
  0xb3   :  { %3136 = vmatmul.msk.bf16.gmra.mxu3 %vm490_vm1, %v3424_v4  ;;  %3124 = vmatmul.msk.bf16.gmra.mxu2 %vm490_vm1, %v3412_v23  ;;  %v3384_v4 = vld [vmem:[%s5298_s0 + $0x80] sm:$0xff] }
  0xb6   :  { %v3813_v21 = vpop.f32.mrf.mxu3  ;;  %v3827_v26 = vpop.f32.mrf.mxu2 }
  0xb7   :  { %v3733_v55 = vpop.f32.mrf.mxu0  ;;  %v3735_v56 = vpop.f32.mrf.mxu1  ;;  %5460 = vst [vmem:[#allocation25_spill] sm:$0xff] %v3813_v21  ;;  %v1167_v21 = vmul.f32 %v3723_v52, %v3723_v52 }
  0xb8   :  { %5447 = vst [vmem:[#allocation12_spill] sm:$0xff] %v3735_v56 }
  0xb9   :  { %5463 = vst [vmem:[#allocation28_spill] sm:$0xff] %v3827_v26 }
  0xbe   :  { %v3829_v27 = vpop.f32.mrf.mxu3  ;;  %v3845_v33 = vpop.f32.mrf.mxu2 }
  0xbf   :  { %v3749_v61 = vpop.f32.mrf.mxu0  ;;  %v3751_v62 = vpop.f32.mrf.mxu1  ;;  %5464 = vst [vmem:[#allocation29_spill] sm:$0xff] %v3829_v27 }
  0xc0   :  { %5449 = vst [vmem:[#allocation14_spill] sm:$0xff] %v3751_v62  ;;  %v1169_v63 = vmul.f32 %v3749_v61, %v3749_v61 }
  0xc1   :  { %5466 = vst [vmem:[#allocation31_spill] sm:$0xff] %v3845_v33 }
  0xc2   :  { %3091 = vmatmul.msk.bf16.gmra.mxu0 %vm490_vm1, %v3379_v59  ;;  %3110 = vmatmul.msk.bf16.gmra.mxu1 %vm490_vm1, %v3398_v60 }
  0xc3   :  { %3137 = vmatmul.msk.bf16.gmra.mxu3 %vm490_vm1, %v3425_v16  ;;  %3125 = vmatmul.msk.bf16.gmra.mxu2 %vm490_vm1, %v3413_v34 }
  0xc6   :  { %v3852_v35 = vpop.f32.mrf.mxu3  ;;  %v3859_v42 = vpop.f32.mrf.mxu2 }
  0xc7   :  { %v3761_v1 = vpop.f32.mrf.mxu0  ;;  %v3763_v2 = vpop.f32.mrf.mxu1  ;;  %5467 = vst [vmem:[#allocation32_spill] sm:$0xff] %v3852_v35 }
  0xc8   :  { %5451 = vst [vmem:[#allocation16_spill] sm:$0xff] %v3763_v2 }
  0xc9   :  { %5469 = vst [vmem:[#allocation34_spill] sm:$0xff] %v3859_v42 }
  0xce   :  { %v3868_v49 = vpop.f32.mrf.mxu3  ;;  %v3875_v54 = vpop.f32.mrf.mxu2 }
  0xcf   :  { %v3779_v8 = vpop.f32.mrf.mxu0  ;;  %v3781_v9 = vpop.f32.mrf.mxu1  ;;  %5470 = vst [vmem:[#allocation35_spill] sm:$0xff] %v3868_v49 }
  0xd0   :  { %5454 = vst [vmem:[#allocation19_spill] sm:$0xff] %v3781_v9 }
  0xd1   :  { %5472 = vst [vmem:[#allocation37_spill] sm:$0xff] %v3875_v54 }
  0xd2   :  { %3092 = vmatmul.msk.bf16.gmra.mxu0 %vm490_vm1, %v3380_v6  ;;  %3111 = vmatmul.msk.bf16.gmra.mxu1 %vm490_vm1, %v3399_v7 }
  0xd3   :  { %3138 = vmatmul.msk.bf16.gmra.mxu3 %vm490_vm1, %v3426_v28  ;;  %v3429_v28 = vld [vmem:[%s5298_s0 + $0x1e8] sm:$0xff] }
  0xd6   :  { %v3881_v60 = vpop.f32.mrf.mxu3  ;;  %v3890_v6 = vpop.f32.mrf.mxu2 }
  0xd7   :  { %v3793_v13 = vpop.f32.mrf.mxu0  ;;  %v3795_v14 = vpop.f32.mrf.mxu1  ;;  %5474 = vst [vmem:[#allocation39_spill] sm:$0xff] %v3881_v60  ;;  %v1016_v60 = vadd.f32 %v3685_v39, %v3675_v36 }
  0xd8   :  { %5457 = vst [vmem:[#allocation22_spill] sm:$0xff] %v3795_v14 }
  0xd9   :  { %5475 = vst [vmem:[#allocation40_spill] sm:$0xff] %v3890_v6  ;;  %v1017_v49 = vadd.f32 %v1016_v60, %v3699_v44 }
  0xdb   :  { %v1018_v5 = vadd.f32 %v1017_v49, %v3709_v47 }
  0xde   :  { %v3897_v16 = vpop.f32.mrf.mxu3  ;;  %v3903_v23 = vpop.f32.mrf.mxu2 }
  0xdf   :  { %v3809_v19 = vpop.f32.mrf.mxu0  ;;  %v3811_v20 = vpop.f32.mrf.mxu1  ;;  %5478 = vst [vmem:[#allocation43_spill] sm:$0xff] %v3897_v16  ;;  %v1165_v16 = vmul.f32 %v3699_v44, %v3699_v44 }
  0xe0   :  { %5459 = vst [vmem:[#allocation24_spill] sm:$0xff] %v3811_v20 }
  0xe1   :  { %5481 = vst [vmem:[#allocation46_spill] sm:$0xff] %v3903_v23 }
  0xe2   :  { %3093 = vmatmul.msk.bf16.gmra.mxu0 %vm490_vm1, %v3381_v17  ;;  %3112 = vmatmul.msk.bf16.gmra.mxu1 %vm490_vm1, %v3400_v18 }
  0xe3   :  { %3139 = vmatmul.msk.bf16.gmra.mxu3 %vm490_vm1, %v3427_v43 }
  0xe7   :  { %v3823_v24 = vpop.f32.mrf.mxu0  ;;  %v3825_v25 = vpop.f32.mrf.mxu1 }
  0xe8   :  { %5462 = vst [vmem:[#allocation27_spill] sm:$0xff] %v3825_v25 }
  0xef   :  { %v3841_v31 = vpop.f32.mrf.mxu0  ;;  %v3843_v32 = vpop.f32.mrf.mxu1 }
  0xf0   :  { %5465 = vst [vmem:[#allocation30_spill] sm:$0xff] %v3843_v32 }
  0xf2   :  { %3094 = vmatmul.msk.bf16.gmra.mxu0 %vm490_vm1, %v3382_v29  ;;  %3113 = vmatmul.msk.bf16.gmra.mxu1 %vm490_vm1, %v3401_v30  ;;  %v3908_v29 = vpop.f32.mrf.mxu3  ;;  %v3385_v30 = vld [vmem:[%s5298_s0 + $0x88] sm:$0xff] }
  0xf3   :  { %3140 = vmatmul.msk.bf16.gmra.mxu3 %vm490_vm1, %v3428_v0  ;;  %5482 = vst [vmem:[#allocation47_spill] sm:$0xff] %v3908_v29 }
  0xf7   :  { %v3855_v38 = vpop.f32.mrf.mxu0  ;;  %v3857_v41 = vpop.f32.mrf.mxu1 }
  0xf8   :  { %5468 = vst [vmem:[#allocation33_spill] sm:$0xff] %v3857_v41 }
  0xfa   :  { %v3921_v0 = vpop.f32.mrf.mxu3 }
  0xfb   :  { %5486 = vst [vmem:[#allocation51_spill] sm:$0xff] %v3921_v0 }
  0xff   :  { %v3870_v50 = vpop.f32.mrf.mxu0  ;;  %v3872_v51 = vpop.f32.mrf.mxu1 }
 0x100   :  { %5471 = vst [vmem:[#allocation36_spill] sm:$0xff] %v3872_v51 }
 0x102   :  { %3095 = vmatmul.msk.bf16.gmra.mxu0 %vm490_vm1, %v3383_v46  ;;  %v3919_v46 = vpop.f32.mrf.mxu2  ;;  %v3940_v51 = vpop.f32.mrf.mxu3 }
 0x103   :  { %3141 = vmatmul.msk.bf16.gmra.mxu3 %vm490_vm1, %v3429_v28  ;;  %5485 = vst [vmem:[#allocation50_spill] sm:$0xff] %v3919_v46  ;;  %v3430_v28 = vld [vmem:[%s5298_s0 + $0x1f0] sm:$0xff] }
 0x104   :  { %5492 = vst [vmem:[#allocation57_spill] sm:$0xff] %v3940_v51 }
 0x107   :  { %v3877_v58 = vpop.f32.mrf.mxu0  ;;  %v3879_v59 = vpop.f32.mrf.mxu1 }
 0x108   :  { %5473 = vst [vmem:[#allocation38_spill] sm:$0xff] %v3879_v59 }
 0x10a   :  { %v3949_v25 = vpop.f32.mrf.mxu3 }
 0x10b   :  { %5496 = vst [vmem:[#allocation61_spill] sm:$0xff] %v3949_v25 }
 0x10f   :  { %v3892_v7 = vpop.f32.mrf.mxu0  ;;  %v3894_v11 = vpop.f32.mrf.mxu1 }
 0x110   :  { %5476 = vst [vmem:[#allocation41_spill] sm:$0xff] %v3892_v7 }
 0x111   :  { %5477 = vst [vmem:[#allocation42_spill] sm:$0xff] %v3894_v11  ;;  %v3930_v11 = vpop.f32.mrf.mxu2 }
 0x112   :  { %3096 = vmatmul.msk.bf16.gmra.mxu0 %vm490_vm1, %v3384_v4  ;;  %5489 = vst [vmem:[#allocation54_spill] sm:$0xff] %v3930_v11 }
 0x113   :  { %3142 = vmatmul.msk.bf16.gmra.mxu3 %vm490_vm1, %v3430_v28  ;;  %v3431_v28 = vld [vmem:[%s5298_s0 + $0x1f8] sm:$0xff] }
 0x117   :  { %v3899_v17 = vpop.f32.mrf.mxu0  ;;  %v3901_v18 = vpop.f32.mrf.mxu1 }
 0x118   :  { %5479 = vst [vmem:[#allocation44_spill] sm:$0xff] %v3899_v17 }
 0x119   :  { %5480 = vst [vmem:[#allocation45_spill] sm:$0xff] %v3901_v18 }
 0x11f   :  { %v3914_v34 = vpop.f32.mrf.mxu0  ;;  %v3916_v43 = vpop.f32.mrf.mxu1 }
 0x120   :  { %5483 = vst [vmem:[#allocation48_spill] sm:$0xff] %v3914_v34 }
 0x121   :  { %5484 = vst [vmem:[#allocation49_spill] sm:$0xff] %v3916_v43 }
 0x122   :  { %3097 = vmatmul.msk.bf16.gmra.mxu0 %vm490_vm1, %v3385_v30  ;;  %v3386_v30 = vld [vmem:[%s5298_s0 + $0x90] sm:$0xff] }
 0x123   :  { %3143 = vmatmul.msk.bf16.gmra.mxu3 %vm490_vm1, %v3431_v28 }
 0x127   :  { %v3923_v4 = vpop.f32.mrf.mxu0  ;;  %v3925_v18 = vpop.f32.mrf.mxu1 }
 0x128   :  { %5487 = vst [vmem:[#allocation52_spill] sm:$0xff] %v3923_v4 }
 0x129   :  { %5488 = vst [vmem:[#allocation53_spill] sm:$0xff] %v3925_v18  ;;  %v3943_v18 = vpop.f32.mrf.mxu2 }
 0x12a   :  { %5493 = vst [vmem:[#allocation58_spill] sm:$0xff] %v3943_v18 }
 0x12f   :  { %v3936_v43 = vpop.f32.mrf.mxu0  ;;  %v3938_v59 = vpop.f32.mrf.mxu1 }
 0x130   :  { %5490 = vst [vmem:[#allocation55_spill] sm:$0xff] %v3936_v43 }
 0x131   :  { %5491 = vst [vmem:[#allocation56_spill] sm:$0xff] %v3938_v59  ;;  %v3959_v14 = vpop.f32.mrf.mxu2 }
 0x132   :  { %3098 = vmatmul.msk.bf16.gmra.mxu0 %vm490_vm1, %v3386_v30  ;;  %5499 = vst [vmem:[#allocation64_spill] sm:$0xff] %v3959_v14  ;;  %v3961_v30 = vpop.f32.mrf.mxu3 }
 0x133   :  { %5500 = vst [vmem:[#allocation65_spill] sm:$0xff] %v3961_v30 }
 0x137   :  { %v3945_v41 = vpop.f32.mrf.mxu0  ;;  %v3947_v32 = vpop.f32.mrf.mxu1 }
 0x138   :  { %5494 = vst [vmem:[#allocation59_spill] sm:$0xff] %v3945_v41 }
 0x139   :  { %5495 = vst [vmem:[#allocation60_spill] sm:$0xff] %v3947_v32  ;;  %v3967_v32 = vpop.f32.mrf.mxu2 }
 0x13a   :  { %5503 = vst [vmem:[#allocation68_spill] sm:$0xff] %v3967_v32  ;;  %v3969_v62 = vpop.f32.mrf.mxu3 }
 0x13b   :  { %5504 = vst [vmem:[#allocation69_spill] sm:$0xff] %v3969_v62 }
 0x13f   :  { %v3955_v20 = vpop.f32.mrf.mxu0  ;;  %v3957_v59 = vpop.f32.mrf.mxu1 }
 0x140   :  { %5497 = vst [vmem:[#allocation62_spill] sm:$0xff] %v3955_v20 }
 0x141   :  { %5498 = vst [vmem:[#allocation63_spill] sm:$0xff] %v3957_v59  ;;  %v3975_v28 = vpop.f32.mrf.mxu2 }
 0x142   :  { %5507 = vst [vmem:[#allocation72_spill] sm:$0xff] %v3975_v28  ;;  %v3981_v53 = vpop.f32.mrf.mxu3 }
 0x143   :  { %5510 = vst [vmem:[#allocation75_spill] sm:$0xff] %v3981_v53  ;;  %v1163_v53 = vmul.f32 %v3675_v36, %v3675_v36 }
 0x147   :  { %v3963_v9 = vpop.f32.mrf.mxu0  ;;  %v3965_v2 = vpop.f32.mrf.mxu1 }
 0x148   :  { %5501 = vst [vmem:[#allocation66_spill] sm:$0xff] %v3963_v9 }
 0x149   :  { %5502 = vst [vmem:[#allocation67_spill] sm:$0xff] %v3965_v2  ;;  %v3983_v30 = vpop.f32.mrf.mxu2 }
 0x14a   :  { %5511 = vst [vmem:[#allocation76_spill] sm:$0xff] %v3983_v30  ;;  %v3989_v48 = vpop.f32.mrf.mxu3 }
 0x14b   :  { %5514 = vst [vmem:[#allocation79_spill] sm:$0xff] %v3989_v48 }
 0x14f   :  { %v3971_v25 = vpop.f32.mrf.mxu0  ;;  %v3973_v56 = vpop.f32.mrf.mxu1 }
 0x150   :  { %5505 = vst [vmem:[#allocation70_spill] sm:$0xff] %v3971_v25 }
 0x151   :  { %5506 = vst [vmem:[#allocation71_spill] sm:$0xff] %v3973_v56  ;;  %v3995_v56 = vpop.f32.mrf.mxu2 }
 0x152   :  { %5517 = vst [vmem:[#allocation82_spill] sm:$0xff] %v3995_v56  ;;  %v3997_v45 = vpop.f32.mrf.mxu3 }
 0x153   :  { %5518 = vst [vmem:[#allocation83_spill] sm:$0xff] %v3997_v45  ;;  %v1166_v45 = vmul.f32 %v3709_v47, %v3709_v47 }
 0x157   :  { %v3977_v51 = vpop.f32.mrf.mxu0  ;;  %v3979_v59 = vpop.f32.mrf.mxu1 }
 0x158   :  { %5508 = vst [vmem:[#allocation73_spill] sm:$0xff] %v3977_v51 }
 0x159   :  { %5509 = vst [vmem:[#allocation74_spill] sm:$0xff] %v3979_v59  ;;  %v1164_v59 = vmul.f32 %v3685_v39, %v3685_v39  ;;  %v4018_v12 = vpop.f32.mrf.mxu2 }
 0x15a   :  { %5521 = vst [vmem:[#allocation86_spill] sm:$0xff] %v4018_v12  ;;  %v4030_v36 = vpop.f32.mrf.mxu3 }
 0x15b   :  { %v1291_v37 = vadd.f32 %v1164_v59, %v1163_v53  ;;  %5522 = vst [vmem:[#allocation87_spill] sm:$0xff] %v4030_v36 }
 0x15d   :  { %v1292_v27 = vadd.f32 %v1291_v37, %v1165_v16  ;;  %v1168_v37 = vmul.f32 %v3733_v55, %v3733_v55  ;;  %v1019_v16 = vadd.f32 %v1018_v5, %v3723_v52 }
 0x15f   :  { %v3985_v0 = vpop.f32.mrf.mxu0  ;;  %v3987_v2 = vpop.f32.mrf.mxu1  ;;  %v1293_v60 = vadd.f32 %v1292_v27, %v1166_v45  ;;  %v1020_v45 = vadd.f32 %v1019_v16, %v3733_v55 }
 0x160   :  { %5512 = vst [vmem:[#allocation77_spill] sm:$0xff] %v3985_v0  ;;  %v1227_v39 = vmul.f32 %v3987_v2, %v3987_v2 }
 0x161   :  { %5513 = vst [vmem:[#allocation78_spill] sm:$0xff] %v3987_v2  ;;  %v1294_v47 = vadd.f32 %v1293_v60, %v1167_v21  ;;  %v1021_v21 = vadd.f32 %v1020_v45, %v3749_v61  ;;  %v1172_v45 = vmul.f32 %v3793_v13, %v3793_v13 }
 0x163   :  { %v1295_v5 = vadd.f32 %v1294_v47, %v1168_v37  ;;  %v1232_v47 = vmul.f32 %v3783_v10, %v3783_v10 }
 0x165   :  { %v1296_v52 = vadd.f32 %v1295_v5, %v1169_v63  ;;  %v1233_v63 = vmul.f32 %v3797_v15, %v3797_v15 }
 0x167   :  { %v3991_v62 = vpop.f32.mrf.mxu0  ;;  %v3993_v29 = vpop.f32.mrf.mxu1 }
 0x168   :  { %5515 = vst [vmem:[#allocation80_spill] sm:$0xff] %v3991_v62  ;;  %v1228_v35 = vmul.f32 %v3993_v29, %v3993_v29  ;;  %v1085_v53 = vadd.f32 %v3993_v29, %v3987_v2 }
 0x169   :  { %5516 = vst [vmem:[#allocation81_spill] sm:$0xff] %v3993_v29 }
 0x16a   :  { %v1360_v44 = vadd.f32 %v1228_v35, %v1227_v39  ;;  %v1170_v35 = vmul.f32 %v3761_v1, %v3761_v1 }
 0x16f   :  { %v4005_v40 = vpop.f32.mrf.mxu0  ;;  %v4007_v48 = vpop.f32.mrf.mxu1 }
 0x170   :  { %5519 = vst [vmem:[#allocation84_spill] sm:$0xff] %v4005_v40  ;;  %v1229_v59 = vmul.f32 %v4007_v48, %v4007_v48  ;;  %v1086_v49 = vadd.f32 %v1085_v53, %v4007_v48  ;;  %v1231_v53 = vmul.f32 %v3765_v3, %v3765_v3 }
 0x171   :  { %5520 = vst [vmem:[#allocation85_spill] sm:$0xff] %v4007_v48 }
 0x172   :  { %v1361_v27 = vadd.f32 %v1360_v44, %v1229_v59  ;;  %v1171_v44 = vmul.f32 %v3779_v8, %v3779_v8  ;;  %v1022_v59 = vadd.f32 %v1021_v21, %v3761_v1  ;;  %v1173_v21 = vmul.f32 %v3809_v19, %v3809_v19 }
 0x177   :  { %v4035_v57 = vpop.f32.mrf.mxu0  ;;  %v4037_v29 = vpop.f32.mrf.mxu1 }
 0x178   :  { %5523 = vst [vmem:[#allocation88_spill] sm:$0xff] %v4035_v57  ;;  %v1087_v2 = vadd.f32 %v1086_v49, %v4037_v29  ;;  %v1230_v39 = vmul.f32 %v4037_v29, %v4037_v29  ;;  %v1297_v49 = vadd.f32 %v1296_v52, %v1170_v35  ;;  %v1234_v52 = vmul.f32 %v3815_v22, %v3815_v22  ;;  %v4070_v35 = vpop.f32.mrf.mxu3 }
 0x179   :  { %5524 = vst [vmem:[#allocation89_spill] sm:$0xff] %v4037_v29  ;;  %v4057_v29 = vpop.f32.mrf.mxu2 }
 0x17a   :  { %v1088_v60 = vadd.f32 %v1087_v2, %v3765_v3  ;;  %v1362_v48 = vadd.f32 %v1361_v27, %v1230_v39  ;;  %5525 = vst [vmem:[#allocation90_spill] sm:$0xff] %v4057_v29  ;;  %v1023_v2 = vadd.f32 %v1022_v59, %v3779_v8  ;;  %v1298_v5 = vadd.f32 %v1297_v49, %v1171_v44 }
 0x17b   :  { %5527 = vst [vmem:[#allocation92_spill] sm:$0xff] %v4070_v35 }
 0x17c   :  { %v1089_v37 = vadd.f32 %v1088_v60, %v3783_v10  ;;  %v1363_v16 = vadd.f32 %v1362_v48, %v1231_v53  ;;  %v1024_v48 = vadd.f32 %v1023_v2, %v3793_v13  ;;  %v1299_v10 = vadd.f32 %v1298_v5, %v1172_v45 }
 0x17d   :  { %v1236_v45 = vmul.f32 %v3845_v33, %v3845_v33 }
 0x17e   :  { %v1090_v27 = vadd.f32 %v1089_v37, %v3797_v15  ;;  %v1364_v39 = vadd.f32 %v1363_v16, %v1232_v47  ;;  %v1174_v47 = vmul.f32 %v3823_v24, %v3823_v24  ;;  %v1025_v44 = vadd.f32 %v1024_v48, %v3809_v19 }
 0x17f   :  { %v4065_v60 = vpop.f32.mrf.mxu0  ;;  %v1235_v37 = vmul.f32 %v3827_v26, %v3827_v26  ;;  %v1300_v2 = vadd.f32 %v1299_v10, %v1173_v21  ;;  %v1175_v15 = vmul.f32 %v3841_v31, %v3841_v31  ;;  %v1176_v48 = vmul.f32 %v3855_v38, %v3855_v38 }
 0x180   :  { %5526 = vst [vmem:[#allocation91_spill] sm:$0xff] %v4065_v60  ;;  %v1091_v53 = vadd.f32 %v1090_v27, %v3815_v22  ;;  %v1365_v59 = vadd.f32 %v1364_v39, %v1233_v63  ;;  %v1026_v3 = vadd.f32 %v1025_v44, %v3823_v24  ;;  %v3441_v39 = vld [vmem:[%s5300_s2 + $0x38] sm:$0xff]  ;;  %v1237_v21 = vmul.f32 %v3859_v42, %v3859_v42 }
 0x181   :  { %v1301_v5 = vadd.f32 %v1300_v2, %v1174_v47  ;;  %2102 = vmatpush.bf16.msrb.mxu1 %v3441_v39  ;;  %v1177_v44 = vmul.f32 %v3870_v50, %v3870_v50 }
 0x182   :  { %v1092_v16 = vadd.f32 %v1091_v53, %v3827_v26  ;;  %v1366_v49 = vadd.f32 %v1365_v59, %v1234_v52  ;;  %v1027_v10 = vadd.f32 %v1026_v3, %v3841_v31  ;;  %v1238_v3 = vmul.f32 %v3875_v54, %v3875_v54  ;;  %v5547_v26 = vld [vmem:[#allocation5_spill] sm:$0xff] }
 0x183   :  { %v1302_v59 = vadd.f32 %v1301_v5, %v1175_v15  ;;  %v4110_v5 = vpop.f32.mrf.mxu3 }
 0x184   :  { %v1093_v63 = vadd.f32 %v1092_v16, %v3845_v33  ;;  %v1367_v27 = vadd.f32 %v1366_v49, %v1235_v37  ;;  %v4098_v16 = vpop.f32.mrf.mxu2  ;;  %v1028_v47 = vadd.f32 %v1027_v10, %v3855_v38  ;;  %5530 = vst [vmem:[#allocation95_spill] sm:$0xff] %v4110_v5 }
 0x185   :  { %5529 = vst [vmem:[#allocation94_spill] sm:$0xff] %v4098_v16  ;;  %v1303_v33 = vadd.f32 %v1302_v59, %v1176_v48  ;;  %v1240_v48 = vmul.f32 %v3903_v23, %v3903_v23 }
 0x186   :  { %v1094_v52 = vadd.f32 %v1093_v63, %v3859_v42  ;;  %v1368_v53 = vadd.f32 %v1367_v27, %v1236_v45  ;;  %v1178_v45 = vmul.f32 %v3877_v58, %v3877_v58  ;;  %v1029_v15 = vadd.f32 %v1028_v47, %v3870_v50 }
 0x187   :  { %v4096_v37 = vpop.f32.mrf.mxu0  ;;  %v1239_v63 = vmul.f32 %v3890_v6, %v3890_v6  ;;  %v1304_v10 = vadd.f32 %v1303_v33, %v1177_v44  ;;  %v1179_v42 = vmul.f32 %v3892_v7, %v3892_v7  ;;  %v1180_v47 = vmul.f32 %v3899_v17, %v3899_v17 }
 0x188   :  { %5528 = vst [vmem:[#allocation93_spill] sm:$0xff] %v4096_v37  ;;  %v1095_v49 = vadd.f32 %v1094_v52, %v3875_v54  ;;  %v1369_v2 = vadd.f32 %v1368_v53, %v1237_v21  ;;  %v1030_v21 = vadd.f32 %v1029_v15, %v3877_v58  ;;  %v1241_v33 = vmul.f32 %v3919_v46, %v3919_v46 }
 0x189   :  { %v1305_v59 = vadd.f32 %v1304_v10, %v1178_v45  ;;  %v1181_v15 = vmul.f32 %v3914_v34, %v3914_v34  ;;  %v1242_v45 = vmul.f32 %v3930_v11, %v3930_v11 }
 0x18a   :  { %v1096_v27 = vadd.f32 %v1095_v49, %v3890_v6  ;;  %v1370_v39 = vadd.f32 %v1369_v2, %v1238_v3  ;;  %v1031_v3 = vadd.f32 %v1030_v21, %v3892_v7  ;;  %v1182_v21 = vmul.f32 %v3923_v4, %v3923_v4 }
 0x18b   :  { %v1306_v2 = vadd.f32 %v1305_v59, %v1179_v42 }
 0x18c   :  { %v1371_v52 = vadd.f32 %v1370_v39, %v1239_v63  ;;  %v1097_v53 = vadd.f32 %v1096_v27, %v3903_v23  ;;  %v1032_v63 = vadd.f32 %v1031_v3, %v3899_v17  ;;  %v3514_v17 = vmov 512.0  }
 0x18d   :  { %v1307_v10 = vadd.f32 %v1306_v2, %v1180_v47  ;;  %v1244_v47 = vmul.f32 %v3959_v14, %v3959_v14  ;;  %v4146_v2 = vpop.f32.mrf.mxu3  ;;  %3487 = vrcp.f32 %v3514_v17 }
 0x18e   :  { %v1098_v44 = vadd.f32 %v1097_v53, %v3919_v46  ;;  %v1372_v49 = vadd.f32 %v1371_v52, %v1240_v48  ;;  %v4134_v53 = vpop.f32.mrf.mxu2  ;;  %v1033_v42 = vadd.f32 %v1032_v63, %v3914_v34  ;;  %v1243_v48 = vmul.f32 %v3943_v18, %v3943_v18  ;;  %5532 = vst [vmem:[#allocation97_spill] sm:$0xff] %v4146_v2 }
 0x18f   :  { %v4126_v6 = vpop.f32.mrf.mxu0  ;;  %5531 = vst [vmem:[#allocation96_spill] sm:$0xff] %v4134_v53  ;;  %v1308_v3 = vadd.f32 %v1307_v10, %v1181_v15  ;;  %v1183_v46 = vmul.f32 %v3936_v43, %v3936_v43  ;;  %v1245_v15 = vmul.f32 %v3967_v32, %v3967_v32 }
 0x190   :  { %v1099_v27 = vadd.f32 %v1098_v44, %v3930_v11  ;;  %v1373_v39 = vadd.f32 %v1372_v49, %v1241_v33  ;;  %v1034_v33 = vadd.f32 %v1033_v42, %v3923_v4  ;;  %v1184_v11 = vmul.f32 %v3945_v41, %v3945_v41 }
 0x191   :  { %v1309_v63 = vadd.f32 %v1308_v3, %v1182_v21  ;;  %v1185_v42 = vmul.f32 %v3955_v20, %v3955_v20  ;;  %v1246_v21 = vmul.f32 %v3975_v28, %v3975_v28 }
 0x192   :  { %v1100_v52 = vadd.f32 %v1099_v27, %v3943_v18  ;;  %v1374_v59 = vadd.f32 %v1373_v39, %v1242_v45  ;;  %v1035_v45 = vadd.f32 %v1034_v33, %v3936_v43  ;;  %v5543_v18 = vld [vmem:[#allocation32_spill] sm:$0xff] }
 0x193   :  { %v1310_v10 = vadd.f32 %v1309_v63, %v1183_v46  ;;  %v1247_v46 = vmul.f32 %v3983_v30, %v3983_v30  ;;  %v1261_v23 = vmul.f32 %v5543_v18, %v5543_v18 }
 0x194   :  { %v1101_v44 = vadd.f32 %v1100_v52, %v3959_v14  ;;  %v1375_v49 = vadd.f32 %v1374_v59, %v1243_v48  ;;  %v1036_v48 = vadd.f32 %v1035_v45, %v3945_v41  ;;  %v1186_v14 = vmul.f32 %v3963_v9, %v3963_v9 }
 0x195   :  { %v1311_v33 = vadd.f32 %v1310_v10, %v1184_v11  ;;  %v1187_v45 = vmul.f32 %v3971_v25, %v3971_v25  ;;  %v1248_v11 = vmul.f32 %v3995_v56, %v3995_v56 }
 0x196   :  { %v1102_v27 = vadd.f32 %v1101_v44, %v3967_v32  ;;  %v1376_v39 = vadd.f32 %v1375_v49, %v1244_v47  ;;  %v1037_v47 = vadd.f32 %v1036_v48, %v3955_v20  ;;  %v4170_v32 = vpop.f32.mrf.mxu2  ;;  %v1188_v48 = vmul.f32 %v3977_v51, %v3977_v51  ;;  %v5568_v20 = vld [vmem:[#allocation83_spill] sm:$0xff] }
 0x197   :  { %v4156_v52 = vpop.f32.mrf.mxu0  ;;  %v1312_v63 = vadd.f32 %v1311_v33, %v1185_v42  ;;  %5533 = vst [vmem:[#allocation98_spill] sm:$0xff] %v4170_v32  ;;  %v4182_v33 = vpop.f32.mrf.mxu3  ;;  %v1273_v41 = vmul.f32 %v5568_v20, %v5568_v20 }
 0x198   :  { %v1103_v59 = vadd.f32 %v1102_v27, %v3975_v28  ;;  %v1377_v3 = vadd.f32 %v1376_v39, %v1245_v15  ;;  %v1038_v15 = vadd.f32 %v1037_v47, %v3963_v9  ;;  %5534 = vst [vmem:[#allocation99_spill] sm:$0xff] %v4182_v33 }
 0x199   :  { %v1313_v10 = vadd.f32 %v1312_v63, %v1186_v14  ;;  %v1250_v63 = vmul.f32 %v4057_v29, %v4057_v29 }
 0x19a   :  { %v1104_v44 = vadd.f32 %v1103_v59, %v3983_v30  ;;  %v1378_v49 = vadd.f32 %v1377_v3, %v1246_v21  ;;  %v1039_v21 = vadd.f32 %v1038_v15, %v3971_v25  ;;  %v1249_v59 = vmul.f32 %v4018_v12, %v4018_v12 }
 0x19b   :  { %v1314_v47 = vadd.f32 %v1313_v10, %v1187_v45  ;;  %v1189_v30 = vmul.f32 %v3985_v0, %v3985_v0  ;;  %v1251_v10 = vmul.f32 %v4098_v16, %v4098_v16 }
 0x19c   :  { %v1105_v27 = vadd.f32 %v1104_v44, %v3995_v56  ;;  %v1379_v39 = vadd.f32 %v1378_v49, %v1247_v46  ;;  %v1040_v14 = vadd.f32 %v1039_v21, %v3977_v51  ;;  %v1191_v21 = vmul.f32 %v4005_v40, %v4005_v40  ;;  %v5561_v51 = vld [vmem:[#allocation19_spill] sm:$0xff] }
 0x19d   :  { %v1315_v15 = vadd.f32 %v1314_v47, %v1188_v48  ;;  %v1196_v56 = vmul.f32 %v4156_v52, %v4156_v52 }
 0x19e   :  { %v1106_v42 = vadd.f32 %v1105_v27, %v4018_v12  ;;  %v1380_v3 = vadd.f32 %v1379_v39, %v1248_v11  ;;  %v1190_v11 = vmul.f32 %v3991_v62, %v3991_v62  ;;  %v1041_v27 = vadd.f32 %v1040_v14, %v3985_v0 }
 0x19f   :  { %v4186_v44 = vpop.f32.mrf.mxu0  ;;  %v1316_v12 = vadd.f32 %v1315_v15, %v1189_v30  ;;  %v1192_v14 = vmul.f32 %v4035_v57, %v4035_v57  ;;  %v1253_v15 = vmul.f32 %v4170_v32, %v4170_v32 }
 0x1a0   :  { %v1381_v46 = vadd.f32 %v1380_v3, %v1249_v59  ;;  %v1107_v49 = vadd.f32 %v1106_v42, %v4057_v29  ;;  %v1042_v42 = vadd.f32 %v1041_v27, %v3991_v62  ;;  %v1252_v3 = vmul.f32 %v4134_v53, %v4134_v53 }
 0x1a1   :  { %v1317_v47 = vadd.f32 %v1316_v12, %v1190_v11  ;;  %v4217_v11 = vpop.f32.mrf.mxu3 }
 0x1a2   :  { %v1382_v45 = vadd.f32 %v1381_v46, %v1250_v63  ;;  %v1108_v39 = vadd.f32 %v1107_v49, %v4098_v16  ;;  %v4206_v46 = vpop.f32.mrf.mxu2  ;;  %v1043_v49 = vadd.f32 %v1042_v42, %v4005_v40  ;;  %5536 = vst [vmem:[#allocation101_spill] sm:$0xff] %v4217_v11 }
 0x1a3   :  { %5535 = vst [vmem:[#allocation100_spill] sm:$0xff] %v4206_v46  ;;  %v1318_v27 = vadd.f32 %v1317_v47, %v1191_v21  ;;  %v1254_v42 = vmul.f32 %v4206_v46, %v4206_v46  ;;  %v5537_v21 = vld [vmem:[#allocation13_spill] sm:$0xff] }
 0x1a4   :  { %v1383_v59 = vadd.f32 %v1382_v45, %v1251_v10  ;;  %v1109_v48 = vadd.f32 %v1108_v39, %v4134_v53  ;;  %v1193_v45 = vmul.f32 %v4065_v60, %v4065_v60  ;;  %v1044_v12 = vadd.f32 %v1043_v49, %v4035_v57 }
 0x1a6   :  { %v1384_v30 = vadd.f32 %v1383_v59, %v1252_v3  ;;  %v1110_v63 = vadd.f32 %v1109_v48, %v4170_v32  ;;  %v1319_v59 = vadd.f32 %v1318_v27, %v1192_v14  ;;  %v1194_v48 = vmul.f32 %v4096_v37, %v4096_v37 }
 0x1a7   :  { %v4214_v39 = vpop.f32.mrf.mxu0  ;;  %v1255_v3 = vmul.f32 %v5537_v21, %v5537_v21  ;;  %v1045_v47 = vadd.f32 %v1044_v12, %v4065_v60  ;;  %v5539_v12 = vld [vmem:[#allocation18_spill] sm:$0xff]  ;;  %v5553_v60 = vld [vmem:[#allocation11_spill] sm:$0xff] }
 0x1a8   :  { %v1385_v10 = vadd.f32 %v1384_v30, %v1253_v15  ;;  %v1111_v53 = vadd.f32 %v1110_v63, %v4206_v46  ;;  %v1320_v16 = vadd.f32 %v1319_v59, %v1193_v45  ;;  %v1195_v30 = vmul.f32 %v4126_v6, %v4126_v6  ;;  %v5538_v63 = vld [vmem:[#allocation15_spill] sm:$0xff] }
 0x1a9   :  { %v1256_v15 = vmul.f32 %v5538_v63, %v5538_v63  ;;  %v1046_v14 = vadd.f32 %v1045_v47, %v4096_v37  ;;  %v5551_v37 = vld [vmem:[#allocation9_spill] sm:$0xff]  ;;  %v1205_v57 = vmul.f32 %v5553_v60, %v5553_v60 }
 0x1aa   :  { %v1112_v32 = vadd.f32 %v1111_v53, %v5537_v21  ;;  %v1386_v49 = vadd.f32 %v1385_v10, %v1254_v42  ;;  %v1321_v29 = vadd.f32 %v1320_v16, %v1194_v48  ;;  %v1257_v53 = vmul.f32 %v5539_v12, %v5539_v12 }
 0x1ab   :  { %v1047_v45 = vadd.f32 %v1046_v14, %v4126_v6  ;;  %v1197_v21 = vmul.f32 %v4186_v44, %v4186_v44  ;;  %v1198_v14 = vmul.f32 %v4214_v39, %v4214_v39 }
 0x1ac   :  { %v1113_v27 = vadd.f32 %v1112_v32, %v5538_v63  ;;  %v1387_v46 = vadd.f32 %v1386_v49, %v1255_v3  ;;  %v1322_v59 = vadd.f32 %v1321_v29, %v1195_v30  ;;  %v5540_v32 = vld [vmem:[#allocation21_spill] sm:$0xff] }
 0x1ad   :  { %v1258_v16 = vmul.f32 %v5540_v32, %v5540_v32  ;;  %v1048_v48 = vadd.f32 %v1047_v45, %v4156_v52 }
 0x1ae   :  { %v1114_v10 = vadd.f32 %v1113_v27, %v5539_v12  ;;  %v1388_v42 = vadd.f32 %v1387_v46, %v1256_v15  ;;  %v1323_v63 = vadd.f32 %v1322_v59, %v1196_v56  ;;  %v5541_v27 = vld [vmem:[#allocation25_spill] sm:$0xff]  ;;  %v4252_v46 = vpop.f32.mrf.mxu3 }
 0x1af   :  { %v4242_v47 = vpop.f32.mrf.mxu0  ;;  %v1259_v29 = vmul.f32 %v5541_v27, %v5541_v27  ;;  %v1049_v30 = vadd.f32 %v1048_v48, %v4186_v44 }
 0x1b0   :  { %v1115_v3 = vadd.f32 %v1114_v10, %v5540_v32  ;;  %v1389_v49 = vadd.f32 %v1388_v42, %v1257_v53  ;;  %v1324_v28 = vadd.f32 %v1323_v63, %v1197_v21  ;;  %v1199_v45 = vmul.f32 %v4242_v47, %v4242_v47  ;;  %v5542_v10 = vld [vmem:[#allocation29_spill] sm:$0xff]  ;;  %v5544_v63 = vld [vmem:[#allocation35_spill] sm:$0xff] }
 0x1b1   :  { %v1260_v56 = vmul.f32 %v5542_v10, %v5542_v10  ;;  %v1050_v59 = vadd.f32 %v1049_v30, %v4214_v39 }
 0x1b2   :  { %v1116_v15 = vadd.f32 %v1115_v3, %v5541_v27  ;;  %v1390_v12 = vadd.f32 %v1389_v49, %v1258_v16  ;;  %v1325_v32 = vadd.f32 %v1324_v28, %v1198_v14  ;;  %v1262_v16 = vmul.f32 %v5544_v63, %v5544_v63  ;;  %v5545_v14 = vld [vmem:[#allocation3_spill] sm:$0xff] }
 0x1b3   :  { %v1051_v21 = vadd.f32 %v1050_v59, %v4242_v47  ;;  %v1201_v30 = vmul.f32 %v5545_v14, %v5545_v14  ;;  %v5549_v27 = vld [vmem:[#allocation7_spill] sm:$0xff] }
 0x1b4   :  { %v1117_v53 = vadd.f32 %v1116_v15, %v5542_v10  ;;  %v1391_v42 = vadd.f32 %v1390_v12, %v1259_v29  ;;  %v1326_v49 = vadd.f32 %v1325_v32, %v1199_v45 }
 0x1b6   :  { %v1118_v48 = vadd.f32 %v1117_v53, %v5543_v18  ;;  %v1392_v3 = vadd.f32 %v1391_v42, %v1260_v56  ;;  %v5546_v56 = vld [vmem:[#allocation39_spill] sm:$0xff] }
 0x1b7   :  { %v4268_v54 = vpop.f32.mrf.mxu0  ;;  %v1263_v53 = vmul.f32 %v5546_v56, %v5546_v56 }
 0x1b8   :  { %v1119_v15 = vadd.f32 %v1118_v48, %v5544_v63  ;;  %v1393_v12 = vadd.f32 %v1392_v3, %v1261_v23  ;;  %v1052_v29 = vadd.f32 %v1051_v21, %v4268_v54  ;;  %v1200_v28 = vmul.f32 %v4268_v54, %v4268_v54  ;;  %v5548_v48 = vld [vmem:[#allocation43_spill] sm:$0xff]  ;;  %v4285_v63 = vpop.f32.mrf.mxu3 }
 0x1b9   :  { %v1202_v23 = vmul.f32 %v5547_v26, %v5547_v26  ;;  %v1264_v3 = vmul.f32 %v5548_v48, %v5548_v48 }
 0x1ba   :  { %v1120_v42 = vadd.f32 %v1119_v15, %v5546_v56  ;;  %v1394_v59 = vadd.f32 %v1393_v12, %v1262_v16  ;;  %v1053_v32 = vadd.f32 %v1052_v29, %v5545_v14  ;;  %v1327_v45 = vadd.f32 %v1326_v49, %v1200_v28  ;;  %v5550_v15 = vld [vmem:[#allocation47_spill] sm:$0xff] }
 0x1bb   :  { %v1203_v16 = vmul.f32 %v5549_v27, %v5549_v27  ;;  %v1265_v49 = vmul.f32 %v5550_v15, %v5550_v15 }
 0x1bc   :  { %v1121_v21 = vadd.f32 %v1120_v42, %v5548_v48  ;;  %v1395_v22 = vadd.f32 %v1394_v59, %v1263_v53  ;;  %v1054_v18 = vadd.f32 %v1053_v32, %v5547_v26  ;;  %v1328_v10 = vadd.f32 %v1327_v45, %v1201_v30  ;;  %v5552_v42 = vld [vmem:[#allocation51_spill] sm:$0xff] }
 0x1bd   :  { %v1204_v53 = vmul.f32 %v5551_v37, %v5551_v37  ;;  %v1266_v59 = vmul.f32 %v5552_v42, %v5552_v42 }
 0x1be   :  { %v1122_v12 = vadd.f32 %v1121_v21, %v5550_v15  ;;  %v1396_v29 = vadd.f32 %v1395_v22, %v1264_v3  ;;  %v1055_v28 = vadd.f32 %v1054_v18, %v5549_v27  ;;  %v1329_v56 = vadd.f32 %v1328_v10, %v1202_v23  ;;  %v5554_v21 = vld [vmem:[#allocation57_spill] sm:$0xff]  ;;  %v3440_v23 = vld [vmem:[%s5300_s2 + $0x30] sm:$0xff] }
 0x1bf   :  { %v1267_v22 = vmul.f32 %v5554_v21, %v5554_v21  ;;  %2103 = vmatpush.bf16.msrb.mxu1 %v3440_v23  ;;  %v5558_v15 = vld [vmem:[#allocation65_spill] sm:$0xff] }
 0x1c0   :  { %v1123_v30 = vadd.f32 %v1122_v12, %v5552_v42  ;;  %v1397_v32 = vadd.f32 %v1396_v29, %v1265_v49  ;;  %v1056_v45 = vadd.f32 %v1055_v28, %v5551_v37  ;;  %v1330_v48 = vadd.f32 %v1329_v56, %v1203_v16  ;;  %v5555_v49 = vld [vmem:[#allocation12_spill] sm:$0xff]  ;;  %v5556_v56 = vld [vmem:[#allocation61_spill] sm:$0xff]  ;;  %v4320_v40 = vpop.f32.mrf.mxu3 }
 0x1c1   :  { %v1206_v29 = vmul.f32 %v5555_v49, %v5555_v49  ;;  %v1268_v16 = vmul.f32 %v5556_v56, %v5556_v56 }
 0x1c2   :  { %v1124_v18 = vadd.f32 %v1123_v30, %v5554_v21  ;;  %v1398_v10 = vadd.f32 %v1397_v32, %v1266_v59  ;;  %v1057_v3 = vadd.f32 %v1056_v45, %v5553_v60  ;;  %v1331_v12 = vadd.f32 %v1330_v48, %v1204_v53  ;;  %v5557_v32 = vld [vmem:[#allocation14_spill] sm:$0xff] }
 0x1c3   :  { %v1207_v21 = vmul.f32 %v5557_v32, %v5557_v32  ;;  %v1269_v45 = vmul.f32 %v5558_v15, %v5558_v15 }
 0x1c4   :  { %v1399_v28 = vadd.f32 %v1398_v10, %v1267_v22  ;;  %v1125_v42 = vadd.f32 %v1124_v18, %v5556_v56  ;;  %v1058_v30 = vadd.f32 %v1057_v3, %v5555_v49  ;;  %v1332_v59 = vadd.f32 %v1331_v12, %v1205_v57  ;;  %v5559_v10 = vld [vmem:[#allocation69_spill] sm:$0xff]  ;;  %v5560_v56 = vld [vmem:[#allocation16_spill] sm:$0xff] }
 0x1c5   :  { %v1208_v12 = vmul.f32 %v5560_v56, %v5560_v56  ;;  %v1270_v0 = vmul.f32 %v5559_v10, %v5559_v10 }
 0x1c6   :  { %v1126_v48 = vadd.f32 %v1125_v42, %v5558_v15  ;;  %v1400_v53 = vadd.f32 %v1399_v28, %v1268_v16  ;;  %v1059_v62 = vadd.f32 %v1058_v30, %v5557_v32  ;;  %v1333_v22 = vadd.f32 %v1332_v59, %v1206_v29  ;;  %v5562_v28 = vld [vmem:[#allocation75_spill] sm:$0xff] }
 0x1c7   :  { %v1209_v16 = vmul.f32 %v5561_v51, %v5561_v51  ;;  %v5565_v15 = vld [vmem:[#allocation79_spill] sm:$0xff] }
 0x1c8   :  { %v1127_v18 = vadd.f32 %v1126_v48, %v5559_v10  ;;  %v1401_v23 = vadd.f32 %v1400_v53, %v1269_v45  ;;  %v1060_v3 = vadd.f32 %v1059_v62, %v5560_v56  ;;  %v1334_v57 = vadd.f32 %v1333_v22, %v1207_v21  ;;  %v5563_v48 = vld [vmem:[#allocation22_spill] sm:$0xff]  ;;  %v5564_v22 = vld [vmem:[#allocation24_spill] sm:$0xff] }
 0x1c9   :  { %v1210_v62 = vmul.f32 %v5563_v48, %v5563_v48  ;;  %v1271_v21 = vmul.f32 %v5562_v28, %v5562_v28 }
 0x1ca   :  { %v1061_v42 = vadd.f32 %v1060_v3, %v5561_v51  ;;  %v1128_v30 = vadd.f32 %v1127_v18, %v5562_v28  ;;  %v1402_v29 = vadd.f32 %v1401_v23, %v1270_v0  ;;  %v1335_v59 = vadd.f32 %v1334_v57, %v1208_v12  ;;  %v4342_v0 = vpop.f32.mrf.mxu3  ;;  %v5566_v23 = vld [vmem:[#allocation27_spill] sm:$0xff] }
 0x1cb   :  { %v1211_v3 = vmul.f32 %v5564_v22, %v5564_v22  ;;  %v1212_v12 = vmul.f32 %v5566_v23, %v5566_v23 }
 0x1cc   :  { %v1062_v45 = vadd.f32 %v1061_v42, %v5563_v48  ;;  %v1336_v53 = vadd.f32 %v1335_v59, %v1209_v16  ;;  %v1129_v25 = vadd.f32 %v1128_v30, %v5565_v15  ;;  %v1403_v9 = vadd.f32 %v1402_v29, %v1271_v21  ;;  %v5567_v59 = vld [vmem:[#allocation30_spill] sm:$0xff]  ;;  %v5569_v21 = vld [vmem:[#allocation33_spill] sm:$0xff] }
 0x1cd   :  { %v1272_v42 = vmul.f32 %v5565_v15, %v5565_v15  ;;  %v1213_v28 = vmul.f32 %v5567_v59, %v5567_v59  ;;  %v5570_v15 = vld [vmem:[#allocation36_spill] sm:$0xff] }
 0x1ce   :  { %v1063_v10 = vadd.f32 %v1062_v45, %v5564_v22  ;;  %v1337_v18 = vadd.f32 %v1336_v53, %v1210_v62  ;;  %v1130_v30 = vadd.f32 %v1129_v25, %v5568_v20  ;;  %v5572_v20 = vld [vmem:[#allocation42_spill] sm:$0xff] }
 0x1cf   :  { %v1404_v29 = vadd.f32 %v1403_v9, %v1272_v42  ;;  %v5571_v9 = vld [vmem:[#allocation38_spill] sm:$0xff] }
 0x1d0   :  { %v1064_v57 = vadd.f32 %v1063_v10, %v5566_v23  ;;  %v1338_v16 = vadd.f32 %v1337_v18, %v1211_v3  ;;  %v1214_v10 = vmul.f32 %v5569_v21, %v5569_v21  ;;  %v1215_v18 = vmul.f32 %v5570_v15, %v5570_v15 }
 0x1d1   :  { %v1405_v4 = vadd.f32 %v1404_v29, %v1273_v41  ;;  %v1216_v42 = vmul.f32 %v5571_v9, %v5571_v9  ;;  %v5573_v29 = vld [vmem:[#allocation45_spill] sm:$0xff] }
 0x1d2   :  { %v1065_v45 = vadd.f32 %v1064_v57, %v5567_v59  ;;  %v1339_v62 = vadd.f32 %v1338_v16, %v1212_v12  ;;  %v1131_v57 = vadd.f32 %v1130_v30, %v4030_v36  ;;  %v1274_v16 = vmul.f32 %v4030_v36, %v4030_v36 }
 0x1d3   :  { %v1275_v36 = vmul.f32 %v4070_v35, %v4070_v35 }
 0x1d4   :  { %v1066_v53 = vadd.f32 %v1065_v45, %v5569_v21  ;;  %v1340_v43 = vadd.f32 %v1339_v62, %v1213_v28  ;;  %v1217_v28 = vmul.f32 %v5572_v20, %v5572_v20  ;;  %v1132_v30 = vadd.f32 %v1131_v57, %v4070_v35 }
 0x1d5   :  { %v1406_v41 = vadd.f32 %v1405_v4, %v1274_v16  ;;  %v5575_v16 = vld [vmem:[#allocation53_spill] sm:$0xff]  ;;  %v1276_v35 = vmul.f32 %v4110_v5, %v4110_v5 }
 0x1d6   :  { %v1067_v3 = vadd.f32 %v1066_v53, %v5570_v15  ;;  %v1341_v25 = vadd.f32 %v1340_v43, %v1214_v10  ;;  %v4370_v53 = vpop.f32.mrf.mxu3  ;;  %v1133_v57 = vadd.f32 %v1132_v30, %v4110_v5 }
 0x1d7   :  { %v1407_v4 = vadd.f32 %v1406_v41, %v1275_v36  ;;  %v3488_v36 = vpop.eup %3487  ;;  %v5577_v41 = vld [vmem:[#allocation60_spill] sm:$0xff] }
 0x1d8   :  { %v1068_v12 = vadd.f32 %v1067_v3, %v5571_v9  ;;  %v1342_v45 = vadd.f32 %v1341_v25, %v1215_v18  ;;  %v1218_v3 = vmul.f32 %v5573_v29, %v5573_v29  ;;  %v5574_v25 = vld [vmem:[#allocation49_spill] sm:$0xff]  ;;  %vm1159_vm2 = vweird.f32 %v3488_v36 }
 0x1da   :  { %v1069_v62 = vadd.f32 %v1068_v12, %v5572_v20  ;;  %v1343_v43 = vadd.f32 %v1342_v45, %v1216_v42  ;;  %v1219_v12 = vmul.f32 %v5574_v25, %v5574_v25 }
 0x1dc   :  { %v1070_v10 = vadd.f32 %v1069_v62, %v5573_v29  ;;  %v1344_v18 = vadd.f32 %v1343_v43, %v1217_v28  ;;  %v1220_v62 = vmul.f32 %v5575_v16, %v5575_v16  ;;  %v5576_v43 = vld [vmem:[#allocation56_spill] sm:$0xff]  ;;  %v1408_v29 = vadd.f32 %v1407_v4, %v1276_v35 }
 0x1dd   :  { %v1221_v17 = vmul.f32 %v5576_v43, %v5576_v43  ;;  %v1155_v4 = vmul.f32 512.0, %v3488_v36 }
 0x1de   :  { %v1071_v34 = vadd.f32 %v1070_v10, %v5574_v25  ;;  %v1345_v42 = vadd.f32 %v1344_v18, %v1218_v3  ;;  %v1134_v25 = vadd.f32 %v1133_v57, %v4146_v2  ;;  %v1222_v18 = vmul.f32 %v5577_v41, %v5577_v41 }
 0x1e0   :  { %v1072_v45 = vadd.f32 %v1071_v34, %v5575_v16  ;;  %v1346_v28 = vadd.f32 %v1345_v42, %v1219_v12  ;;  %v4392_v34 = vpop.f32.mrf.mxu3  ;;  %v1277_v12 = vmul.f32 %v4146_v2, %v4146_v2  ;;  %v1135_v35 = vadd.f32 %v1134_v25, %v4182_v33 }
 0x1e1   :  { %5578 = vst [vmem:[#allocation3_spill] sm:$0xff] %v4392_v34 }
 0x1e2   :  { %v1073_v10 = vadd.f32 %v1072_v45, %v5576_v43  ;;  %v1347_v30 = vadd.f32 %v1346_v28, %v1220_v62  ;;  %v5579_v45 = vld [vmem:[#allocation63_spill] sm:$0xff]  ;;  %v1409_v57 = vadd.f32 %v1408_v29, %v1277_v12  ;;  %v1156_v29 = vsub.f32 1.0, %v1155_v4 }
 0x1e3   :  { %v1223_v5 = vmul.f32 %v5579_v45, %v5579_v45  ;;  %v5580_v28 = vld [vmem:[#allocation67_spill] sm:$0xff] }
 0x1e4   :  { %v1074_v3 = vadd.f32 %v1073_v10, %v5577_v41  ;;  %v1348_v42 = vadd.f32 %v1347_v30, %v1221_v17  ;;  %v1224_v16 = vmul.f32 %v5580_v28, %v5580_v28  ;;  %v1278_v41 = vmul.f32 %v4182_v33, %v4182_v33  ;;  %v5581_v17 = vld [vmem:[#allocation71_spill] sm:$0xff] }
 0x1e5   :  { %v1225_v30 = vmul.f32 %v5581_v17, %v5581_v17 }
 0x1e6   :  { %v1075_v43 = vadd.f32 %v1074_v3, %v5579_v45  ;;  %v1349_v62 = vadd.f32 %v1348_v42, %v1222_v18  ;;  %v1136_v3 = vadd.f32 %v1135_v35, %v4217_v11  ;;  %v1410_v25 = vadd.f32 %v1409_v57, %v1278_v41  ;;  %v5582_v18 = vld [vmem:[#allocation74_spill] sm:$0xff] }
 0x1e8   :  { %v1076_v10 = vadd.f32 %v1075_v43, %v5580_v28  ;;  %v1350_v2 = vadd.f32 %v1349_v62, %v1223_v5  ;;  %v1226_v43 = vmul.f32 %v5582_v18, %v5582_v18  ;;  %v1279_v28 = vmul.f32 %v4217_v11, %v4217_v11  ;;  %v4416_v62 = vpop.f32.mrf.mxu3 }
 0x1e9   :  { %5583 = vst [vmem:[#allocation5_spill] sm:$0xff] %v4416_v62  ;;  %v1137_v45 = vadd.f32 %v1136_v3, %v4252_v46 }
 0x1ea   :  { %v1077_v7 = vadd.f32 %v1076_v10, %v5581_v17  ;;  %v1351_v12 = vadd.f32 %v1350_v2, %v1224_v16  ;;  %v1411_v10 = vadd.f32 %v1410_v25, %v1279_v28  ;;  %v1157_v17 = vmul.f32 %v3488_v36, %v1156_v29 }
 0x1eb   :  { %v1280_v2 = vmul.f32 %v4252_v46, %v4252_v46  ;;  %v1138_v57 = vadd.f32 %v1137_v45, %v4285_v63  ;;  %v1282_v45 = vmul.f32 %v4320_v40, %v4320_v40 }
 0x1ec   :  { %v1078_v42 = vadd.f32 %v1077_v7, %v5582_v18  ;;  %v1352_v33 = vadd.f32 %v1351_v12, %v1225_v30  ;;  %v1158_v18 = vadd.f32 %v3488_v36, %v1157_v17  ;;  %v1281_v12 = vmul.f32 %v4285_v63, %v4285_v63 }
 0x1ed   :  { %v1412_v4 = vadd.f32 %v1411_v10, %v1280_v2 }
 0x1ee   :  { %v1079_v5 = vrot.slane %v1078_v42, 4  ;;  %v1353_v35 = vadd.f32 %v1352_v33, %v1226_v43  ;;  %v1139_v33 = vadd.f32 %v1138_v57, %v4320_v40  ;;  %v4425_v29 = vsel %vm1159_vm2, %v3488_v36, %v1158_v18 }
 0x1ef   :  { %v1413_v25 = vadd.f32 %v1412_v4, %v1281_v12 }
 0x1f0   :  { %v1080_v41 = vadd.f32 %v1079_v5, %v1078_v42  ;;  %v1354_v7 = vrot.slane %v1353_v35, 4  ;;  %v4427_v5 = vpop.f32.mrf.mxu3 }
 0x1f1   :  { %5584 = vst [vmem:[#allocation7_spill] sm:$0xff] %v4427_v5 }
 0x1f2   :  { %v1081_v16 = vrot.slane %v1080_v41, 2  ;;  %v1355_v11 = vadd.f32 %v1354_v7, %v1353_v35  ;;  %v1414_v35 = vadd.f32 %v1413_v25, %v1282_v45  ;;  %v1286_v45 = vmul.f32 %v4416_v62, %v4416_v62 }
 0x1f4   :  { %v1082_v30 = vadd.f32 %v1081_v16, %v1080_v41  ;;  %v1356_v3 = vrot.slane %v1355_v11, 2  ;;  %v1140_v41 = vadd.f32 %v1139_v33, %v4342_v0  ;;  %v1283_v16 = vmul.f32 %v4342_v0, %v4342_v0 }
 0x1f5   :  { %v1285_v33 = vmul.f32 %v4392_v34, %v4392_v34 }
 0x1f6   :  { %v1083_v28 = vrot.slane %v1082_v30, 1  ;;  %v1357_v42 = vadd.f32 %v1356_v3, %v1355_v11  ;;  %v1415_v11 = vadd.f32 %v1414_v35, %v1283_v16  ;;  %v1141_v57 = vadd.f32 %v1140_v41, %v4370_v53 }
 0x1f7   :  { %v1287_v16 = vmul.f32 %v4427_v5, %v4427_v5 }
 0x1f8   :  { %v1084_v43 = vadd.f32 %v1083_v28, %v1082_v30  ;;  %v1358_v17 = vrot.slane %v1357_v42, 1  ;;  %v1284_v30 = vmul.f32 %v4370_v53, %v4370_v53  ;;  %v4439_v12 = vpop.f32.mrf.mxu3  ;;  %v1142_v25 = vadd.f32 %v1141_v57, %v4392_v34 }
 0x1f9   :  { %5585 = vst [vmem:[#allocation9_spill] sm:$0xff] %v4439_v12  ;;  %v1288_v57 = vmul.f32 %v4439_v12, %v4439_v12 }
 0x1fa   :  { %v1161_v10 = vmul.f32 %v4425_v29, %v1084_v43  ;;  %v1359_v2 = vadd.f32 %v1358_v17, %v1357_v42  ;;  %v1416_v28 = vadd.f32 %v1415_v11, %v1284_v30  ;;  %v1143_v43 = vadd.f32 %v1142_v25, %v4416_v62 }
 0x1fc   :  { %v1431_v7 = vmul.f32 %v1161_v10, %v1161_v10  ;;  %v1429_v36 = vmul.f32 %v1359_v2, %v4425_v29  ;;  %v1417_v42 = vadd.f32 %v1416_v28, %v1285_v33  ;;  %v1144_v41 = vadd.f32 %v1143_v43, %v4427_v5 }
 0x1fe   :  { %v1433_v18 = vsub.f32 %v1429_v36, %v1431_v7  ;;  %v1418_v35 = vadd.f32 %v1417_v42, %v1286_v45 }
 0x200   :  { %v1435_v4 = vmax.f32 %v1433_v18, 0.0  ;;  %v4448_v7 = vpop.f32.mrf.mxu3  ;;  %v1419_v11 = vadd.f32 %v1418_v35, %v1287_v16  ;;  %v1145_v18 = vadd.f32 %v1144_v41, %v4439_v12 }
 0x201   :  { %5586 = vst [vmem:[#allocation11_spill] sm:$0xff] %v4448_v7  ;;  %v1289_v25 = vmul.f32 %v4448_v7, %v4448_v7 }
 0x202   :  { %v1437_v3 = vadd.f32 1e-05, %v1435_v4  ;;  %v1420_v30 = vadd.f32 %v1419_v11, %v1288_v57  ;;  %v1146_v28 = vadd.f32 %v1145_v18, %v4448_v7 }
 0x204   :  { %3489 = vrsqrt.f32 %v1437_v3  ;;  %v1421_v43 = vadd.f32 %v1420_v30, %v1289_v25  ;;  %vm1445_vm4 = vweird.f32 %v1437_v3 }
 0x208   :  { %v4458_v42 = vpop.f32.mrf.mxu3 }
 0x209   :  { %5587 = vst [vmem:[#allocation12_spill] sm:$0xff] %v4458_v42  ;;  %v1147_v45 = vadd.f32 %v1146_v28, %v4458_v42  ;;  %v1290_v35 = vmul.f32 %v4458_v42, %v4458_v42 }
 0x20a   :  { %v3490_v17 = vpop.eup %3489 }
 0x20b   :  { %v1440_v2 = vmul.f32 %v3490_v17, %v1437_v3  ;;  %vm1446_vm3 = vweird.f32 %v3490_v17  ;;  %v1422_v16 = vadd.f32 %v1421_v43, %v1290_v35 }
 0x20c   :  { %vm1447_vm5 = vmor %vm1445_vm4, %vm1446_vm3 }
 0x20d   :  { %v1441_v36 = vmul.f32 %v3490_v17, %v1440_v2  ;;  %v1148_v2 = vrot.slane %v1147_v45, 4  ;;  %v1423_v57 = vrot.slane %v1422_v16, 4 }
 0x20f   :  { %v1442_v4 = vmul.f32 0.5, %v1441_v36  ;;  %v4466_v36 = vld [vmem:[%s5299_s3] sm:$0xff]  ;;  %v1149_v18 = vadd.f32 %v1148_v2, %v1147_v45  ;;  %v1424_v28 = vadd.f32 %v1423_v57, %v1422_v16 }
 0x211   :  { %v1443_v33 = vsub.f32 1.5, %v1442_v4  ;;  %v1150_v30 = vrot.slane %v1149_v18, 2 }
 0x213   :  { %v1444_v41 = vmul.f32 %v3490_v17, %v1443_v33  ;;  %v1151_v42 = vadd.f32 %v1150_v30, %v1149_v18  ;;  %v1425_v33 = vrot.slane %v1424_v28, 2 }
 0x215   :  { %v1448_v11 = vsel %vm1447_vm5, %v3490_v17, %v1444_v41  ;;  %v1152_v12 = vrot.slane %v1151_v42, 1  ;;  %v1426_v43 = vadd.f32 %v1425_v33, %v1424_v28 }
 0x216   :  { %v1459_v4 = vmul.f32 %v1448_v11, %v4466_v36 }
 0x217   :  { %v1153_v5 = vadd.f32 %v1152_v12, %v1151_v42  ;;  %v1427_v62 = vrot.slane %v1426_v43, 1 }
 0x218   :  { %v1461_v25 = vmul.f32 %v1459_v4, %v1161_v10  ;;  %v4470_v35 = vperm.slane %v1459_v4, 0 }
 0x219   :  { %v4479_v10 = vmul.f32 %v4425_v29, %v1153_v5  ;;  %v1428_v41 = vadd.f32 %v1427_v62, %v1426_v43 }
 0x21a   :  { %v1465_v7 = vrot.slane %v1461_v25, 7  ;;  %v1505_v17 = vmul.f32 %v4470_v35, %v4126_v6  ;;  %v1506_v45 = vmul.f32 %v4470_v35, %v4156_v52  ;;  %v1507_v42 = vmul.f32 %v4470_v35, %v4186_v44 }
 0x21b   :  { %v1430_v16 = vmul.f32 %v1428_v41, %v4425_v29  ;;  %v1432_v12 = vmul.f32 %v4479_v10, %v4479_v10  ;;  %v1508_v62 = vmul.f32 %v4470_v35, %v4214_v39  ;;  %v1509_v29 = vmul.f32 %v4470_v35, %v4242_v47 }
 0x21c   :  { %v1469_v3 = vsub.f32 %v4466_v36, %v1465_v7  ;;  %v1510_v43 = vmul.f32 %v4470_v35, %v4268_v54 }
 0x21d   :  { %v1434_v18 = vsub.f32 %v1430_v16, %v1432_v12  ;;  %v1511_v12 = vmul.f32 %v4470_v35, %v5545_v14 }
 0x21e   :  { %v4472_v34 = vperm.slane %v1469_v3, 1 }
 0x21f   :  { %v1436_v30 = vmax.f32 %v1434_v18, 0.0  ;;  %v5591_v18 = vld [vmem:[#allocation8_spill] sm:$0xff] }
 0x220   :  { %v1635_v2 = vadd.f32 %v4472_v34, %v1505_v17  ;;  %v1636_v7 = vadd.f32 %v4472_v34, %v1506_v45  ;;  %v1637_v52 = vadd.f32 %v4472_v34, %v1507_v42  ;;  %v1638_v57 = vadd.f32 %v4472_v34, %v1508_v62  ;;  %v5588_v17 = vld [vmem:[#allocation2_spill] sm:$0xff]  ;;  %v5589_v45 = vld [vmem:[#allocation4_spill] sm:$0xff] }
 0x221   :  { %v1639_v25 = vadd.f32 %v4472_v34, %v1509_v29  ;;  %v4495_v33 = vadd.f32 1e-05, %v1436_v30  ;;  %v1473_v39 = vmul.f32 %v4470_v35, %v5588_v17  ;;  %v1474_v41 = vmul.f32 %v4470_v35, %v5589_v45  ;;  %v5590_v42 = vld [vmem:[#allocation6_spill] sm:$0xff] }
 0x222   :  { %v1763_v6 = vmax.f32 %v1635_v2, 0.0  ;;  %v1764_v11 = vmax.f32 %v1636_v7, 0.0  ;;  %v1765_v4 = vmax.f32 %v1637_v52, 0.0  ;;  %v1766_v44 = vmax.f32 %v1638_v57, 0.0 }
 0x223   :  { %v1640_v2 = vadd.f32 %v4472_v34, %v1510_v43  ;;  %v1767_v7 = vmax.f32 %v1639_v25, 0.0  ;;  %3491 = vrsqrt.f32 %v4495_v33  ;;  %v1603_v47 = vadd.f32 %v4472_v34, %v1473_v39 }
 0x224   :  { %v1896_v5 = vadd.f32 %v1764_v11, %v1763_v6  ;;  %v1604_v16 = vadd.f32 %v4472_v34, %v1474_v41  ;;  %v1475_v6 = vmul.f32 %v4470_v35, %v5590_v42  ;;  %v1641_v11 = vadd.f32 %v4472_v34, %v1511_v12 }
 0x225   :  { %v1768_v52 = vmax.f32 %v1640_v2, 0.0  ;;  %v1476_v62 = vmul.f32 %v4470_v35, %v5591_v18  ;;  %v1731_v57 = vmax.f32 %v1603_v47, 0.0  ;;  %v1512_v29 = vmul.f32 %v4470_v35, %v5547_v26 }
 0x226   :  { %v1897_v28 = vadd.f32 %v1896_v5, %v1765_v4  ;;  %v1605_v5 = vadd.f32 %v4472_v34, %v1475_v6  ;;  %v1732_v4 = vmax.f32 %v1604_v16, 0.0  ;;  %v1513_v2 = vmul.f32 %v4470_v35, %v5549_v27 }
 0x227   :  { %v1642_v43 = vadd.f32 %v4472_v34, %v1512_v29  ;;  %vm1455_vm7 = vweird.f32 %v4495_v33 }
 0x228   :  { %v1898_v3 = vadd.f32 %v1897_v28, %v1766_v44  ;;  %v5592_v28 = vld [vmem:[#allocation10_spill] sm:$0xff]  ;;  %v1606_v44 = vadd.f32 %v4472_v34, %v1476_v62  ;;  %v1733_v39 = vmax.f32 %v1605_v5, 0.0  ;;  %v1859_v45 = vadd.f32 %v1732_v4, %v1731_v57 }
 0x229   :  { %v4515_v30 = vpop.eup %3491  ;;  %v1477_v25 = vmul.f32 %v4470_v35, %v5592_v28  ;;  %v1770_v42 = vmax.f32 %v1642_v43, 0.0  ;;  %v1514_v62 = vmul.f32 %v4470_v35, %v5551_v37  ;;  %v1479_v5 = vmul.f32 %v4470_v35, %v3749_v61 }
 0x22a   :  { %v1899_v54 = vadd.f32 %v1898_v3, %v1767_v7  ;;  %v1769_v3 = vmax.f32 %v1641_v11, 0.0  ;;  %v1450_v41 = vmul.f32 %v4515_v30, %v4495_v33  ;;  %v1478_v7 = vmul.f32 %v4470_v35, %v3733_v55 }
 0x22b   :  { %v1607_v17 = vadd.f32 %v4472_v34, %v1477_v25  ;;  %v1734_v47 = vmax.f32 %v1606_v44, 0.0  ;;  %v1860_v16 = vadd.f32 %v1859_v45, %v1733_v39  ;;  %v1644_v4 = vadd.f32 %v4472_v34, %v1514_v62 }
 0x22c   :  { %v1900_v14 = vadd.f32 %v1899_v54, %v1768_v52  ;;  %v1451_v12 = vmul.f32 %v4515_v30, %v1450_v41  ;;  %v1643_v54 = vadd.f32 %v4472_v34, %v1513_v2  ;;  %v1608_v6 = vadd.f32 %v4472_v34, %v1478_v7 }
 0x22d   :  { %v1735_v11 = vmax.f32 %v1607_v17, 0.0  ;;  %v1861_v52 = vadd.f32 %v1860_v16, %v1734_v47  ;;  %v1515_v25 = vmul.f32 %v4470_v35, %v5553_v60  ;;  %vm1456_vm6 = vweird.f32 %v4515_v30 }
 0x22e   :  { %v1901_v26 = vadd.f32 %v1900_v14, %v1769_v3  ;;  %v1452_v18 = vmul.f32 0.5, %v1451_v12  ;;  %v1771_v29 = vmax.f32 %v1643_v54, 0.0  ;;  %v1609_v14 = vadd.f32 %v4472_v34, %v1479_v5  ;;  %vm4556_vm8 = vmor %vm1455_vm7, %vm1456_vm6 }
 0x22f   :  { %v1862_v55 = vadd.f32 %v1861_v52, %v1735_v11  ;;  %v1736_v28 = vmax.f32 %v1608_v6, 0.0  ;;  %v1516_v37 = vmul.f32 %v4470_v35, %v5555_v49  ;;  %v1480_v61 = vmul.f32 %v4470_v35, %v3761_v1  ;;  %v5623_v1 = vld [vmem:[#allocation35_spill] sm:$0xff] }
 0x230   :  { %v1902_v27 = vadd.f32 %v1901_v26, %v1770_v42  ;;  %v1453_v57 = vsub.f32 1.5, %v1452_v18  ;;  %v1517_v17 = vmul.f32 %v4470_v35, %v5557_v32  ;;  %v1645_v39 = vadd.f32 %v4472_v34, %v1515_v25 }
 0x231   :  { %v1863_v3 = vadd.f32 %v1862_v55, %v1736_v28  ;;  %v1772_v45 = vmax.f32 %v1644_v4, 0.0  ;;  %v1518_v60 = vmul.f32 %v4470_v35, %v5560_v56  ;;  %v1519_v41 = vmul.f32 %v4470_v35, %v5561_v51 }
 0x232   :  { %v1903_v44 = vadd.f32 %v1902_v27, %v1771_v29  ;;  %v1454_v43 = vmul.f32 %v4515_v30, %v1453_v57  ;;  %v1610_v49 = vadd.f32 %v4472_v34, %v1480_v61  ;;  %v1737_v2 = vmax.f32 %v1609_v14, 0.0 }
 0x233   :  { %v1520_v32 = vmul.f32 %v4470_v35, %v5563_v48  ;;  %v1521_v26 = vmul.f32 %v4470_v35, %v5564_v22  ;;  %v1522_v51 = vmul.f32 %v4470_v35, %v5566_v23  ;;  %v1523_v7 = vmul.f32 %v4470_v35, %v5567_v59 }
 0x234   :  { %v1904_v33 = vadd.f32 %v1903_v44, %v1772_v45  ;;  %v1458_v56 = vsel %vm4556_vm8, %v4515_v30, %v1454_v43  ;;  %v1481_v47 = vmul.f32 %v4470_v35, %v3779_v8  ;;  %v1864_v16 = vadd.f32 %v1863_v3, %v1737_v2 }
 0x235   :  { %v1524_v48 = vmul.f32 %v4470_v35, %v5569_v21  ;;  %v1525_v22 = vmul.f32 %v4470_v35, %v5570_v15  ;;  %v1646_v12 = vadd.f32 %v4472_v34, %v1516_v37  ;;  %v1773_v54 = vmax.f32 %v1645_v39, 0.0 }
 0x236   :  { %v1526_v30 = vmul.f32 %v4470_v35, %v5571_v9  ;;  %v1611_v23 = vadd.f32 %v4472_v34, %v1481_v47  ;;  %v1738_v42 = vmax.f32 %v1610_v49, 0.0  ;;  %v1460_v59 = vmul.f32 %v1458_v56, %v4466_v36 }
 0x237   :  { %v1527_v8 = vmul.f32 %v4470_v35, %v5572_v20  ;;  %v1647_v6 = vadd.f32 %v4472_v34, %v1517_v17  ;;  %v1648_v21 = vadd.f32 %v4472_v34, %v1518_v60  ;;  %v1905_v11 = vadd.f32 %v1904_v33, %v1773_v54 }
 0x238   :  { %v1649_v15 = vadd.f32 %v4472_v34, %v1519_v41  ;;  %v4588_v52 = vadd.f32 %v4472_v34, %v1520_v32  ;;  %v1482_v9 = vmul.f32 %v4470_v35, %v3793_v13  ;;  %v1865_v18 = vadd.f32 %v1864_v16, %v1738_v42  ;;  %v5597_v42 = vld [vmem:[#allocation48_spill] sm:$0xff] }
 0x239   :  { %v4593_v62 = vadd.f32 %v4472_v34, %v1521_v26  ;;  %v4596_v27 = vadd.f32 %v4472_v34, %v1522_v51  ;;  %v4599_v20 = vadd.f32 %v4472_v34, %v1523_v7  ;;  %v1774_v5 = vmax.f32 %v1646_v12, 0.0  ;;  %v5596_v12 = vld [vmem:[#allocation44_spill] sm:$0xff] }
 0x23a   :  { %v4602_v55 = vadd.f32 %v4472_v34, %v1524_v48  ;;  %v1612_v57 = vadd.f32 %v4472_v34, %v1482_v9  ;;  %v1739_v4 = vmax.f32 %v1611_v23, 0.0  ;;  %v1462_v29 = vmul.f32 %v1460_v59, %v4479_v10  ;;  %v5595_v48 = vld [vmem:[#allocation41_spill] sm:$0xff] }
 0x23b   :  { %v4607_v13 = vadd.f32 %v4472_v34, %v1525_v22  ;;  %v4610_v14 = vadd.f32 %v4472_v34, %v1526_v30  ;;  %v4613_v28 = vadd.f32 %v4472_v34, %v1527_v8  ;;  %v1906_v25 = vadd.f32 %v1905_v11, %v1774_v5  ;;  %v5598_v8 = vld [vmem:[#allocation52_spill] sm:$0xff] }
 0x23c   :  { %v1775_v44 = vmax.f32 %v1647_v6, 0.0  ;;  %v1776_v43 = vmax.f32 %v1648_v21, 0.0  ;;  %v1483_v37 = vmul.f32 %v4470_v35, %v3809_v19  ;;  %v1866_v61 = vadd.f32 %v1865_v18, %v1739_v4  ;;  %v5599_v6 = vld [vmem:[#allocation55_spill] sm:$0xff] }
 0x23d   :  { %v1777_v3 = vmax.f32 %v1649_v15, 0.0  ;;  %v1778_v17 = vmax.f32 %v4588_v52, 0.0  ;;  %v1779_v10 = vmax.f32 %v4593_v62, 0.0  ;;  %v1780_v39 = vmax.f32 %v4596_v27, 0.0  ;;  %v5600_v21 = vld [vmem:[#allocation59_spill] sm:$0xff]  ;;  %v5601_v15 = vld [vmem:[#allocation62_spill] sm:$0xff] }
 0x23e   :  { %v1613_v60 = vadd.f32 %v4472_v34, %v1483_v37  ;;  %v1740_v41 = vmax.f32 %v1612_v57, 0.0  ;;  %v1466_v49 = vrot.slane %v1462_v29, 7  ;;  %v1907_v32 = vadd.f32 %v1906_v25, %v1775_v44  ;;  %v5603_v57 = vld [vmem:[#allocation70_spill] sm:$0xff]  ;;  %v5604_v29 = vld [vmem:[#allocation73_spill] sm:$0xff]  ;;  %v5606_v37 = vld [vmem:[#allocation80_spill] sm:$0xff] }
 0x23f   :  { %v1484_v33 = vmul.f32 %v4470_v35, %v3823_v24  ;;  %v1485_v56 = vmul.f32 %v4470_v35, %v3841_v31  ;;  %v1486_v7 = vmul.f32 %v4470_v35, %v3855_v38  ;;  %v1487_v47 = vmul.f32 %v4470_v35, %v3870_v50  ;;  %v5605_v44 = vld [vmem:[#allocation77_spill] sm:$0xff] }
 0x240   :  { %v1867_v51 = vadd.f32 %v1866_v61, %v1740_v41  ;;  %v1488_v16 = vmul.f32 %v4470_v35, %v3877_v58  ;;  %v1489_v22 = vmul.f32 %v4470_v35, %v5595_v48  ;;  %v1490_v54 = vmul.f32 %v4470_v35, %v5596_v12  ;;  %v3439_v41 = vld [vmem:[%s5300_s2 + $0x28] sm:$0xff]  ;;  %v5608_v48 = vld [vmem:[#allocation88_spill] sm:$0xff] }
 0x241   :  { %v1614_v24 = vadd.f32 %v4472_v34, %v1484_v33  ;;  %v1741_v30 = vmax.f32 %v1613_v60, 0.0  ;;  %v1470_v31 = vsub.f32 %v4466_v36, %v1466_v49  ;;  %v1908_v23 = vadd.f32 %v1907_v32, %v1776_v43  ;;  %v5602_v36 = vld [vmem:[#allocation66_spill] sm:$0xff]  ;;  %v5607_v33 = vld [vmem:[#allocation84_spill] sm:$0xff]  ;;  %2104 = vmatpush.bf16.msrb.mxu1 %v3439_v41 }
 0x242   :  { %v1491_v38 = vmul.f32 %v4470_v35, %v5597_v42  ;;  %v1492_v50 = vmul.f32 %v4470_v35, %v5598_v8  ;;  %v1493_v58 = vmul.f32 %v4470_v35, %v5599_v6  ;;  %v1494_v11 = vmul.f32 %v4470_v35, %v5600_v21  ;;  %v5613_v21 = vld [vmem:[#allocation45_spill] sm:$0xff] }
 0x243   :  { %v1495_v52 = vmul.f32 %v4470_v35, %v5601_v15  ;;  %v1868_v9 = vadd.f32 %v1867_v51, %v1741_v30  ;;  %v4652_v18 = vperm.slane %v1460_v59, 0  ;;  %v1496_v5 = vmul.f32 %v4470_v35, %v5602_v36  ;;  %v5609_v30 = vld [vmem:[#allocation91_spill] sm:$0xff]  ;;  %v5614_v36 = vld [vmem:[#allocation49_spill] sm:$0xff] }
 0x244   :  { %v1497_v4 = vmul.f32 %v4470_v35, %v5603_v57  ;;  %v1498_v25 = vmul.f32 %v4470_v35, %v5604_v29  ;;  %v4662_v43 = vmul.f32 %v4470_v35, %v5605_v44  ;;  %v4666_v61 = vmul.f32 %v4470_v35, %v5606_v37  ;;  %v5615_v29 = vld [vmem:[#allocation53_spill] sm:$0xff]  ;;  %v5616_v37 = vld [vmem:[#allocation56_spill] sm:$0xff] }
 0x245   :  { %v1615_v59 = vadd.f32 %v4472_v34, %v1485_v56  ;;  %v1742_v60 = vmax.f32 %v1614_v24, 0.0  ;;  %v4672_v49 = vperm.slane %v1470_v31, 1  ;;  %v1909_v32 = vadd.f32 %v1908_v23, %v1777_v3  ;;  %v5610_v56 = vld [vmem:[#allocation93_spill] sm:$0xff] }
 0x246   :  { %v1501_v51 = vmul.f32 %v4470_v35, %v5607_v33  ;;  %v4678_v12 = vmul.f32 %v4470_v35, %v5608_v48  ;;  %v4682_v42 = vmul.f32 %v4470_v35, %v5609_v30  ;;  %v4686_v24 = vmul.f32 %v4470_v35, %v5610_v56  ;;  %v5611_v31 = vld [vmem:[#allocation25_spill] sm:$0xff] }
 0x247   :  { %v1869_v8 = vadd.f32 %v1868_v9, %v1742_v60  ;;  %v1569_v3 = vmul.f32 %v4652_v18, %v5611_v31  ;;  %v5612_v23 = vld [vmem:[#allocation29_spill] sm:$0xff]  ;;  %v4694_v15 = vmul.f32 %v4470_v35, %v5613_v21  ;;  %v4698_v57 = vmul.f32 %v4470_v35, %v5614_v36  ;;  %v5617_v31 = vld [vmem:[#allocation60_spill] sm:$0xff]  ;;  %v5618_v21 = vld [vmem:[#allocation63_spill] sm:$0xff] }
 0x248   :  { %v1570_v6 = vmul.f32 %v4652_v18, %v5612_v23  ;;  %v4702_v44 = vmul.f32 %v4470_v35, %v5615_v29  ;;  %v1616_v9 = vadd.f32 %v4472_v34, %v1486_v7  ;;  %v4707_v60 = vmul.f32 %v4470_v35, %v5616_v37  ;;  %v3438_v33 = vld [vmem:[%s5300_s2 + $0x20] sm:$0xff]  ;;  %v5619_v36 = vld [vmem:[#allocation67_spill] sm:$0xff] }
 0x249   :  { %v1743_v41 = vmax.f32 %v1615_v59, 0.0  ;;  %v1699_v48 = vadd.f32 %v4672_v49, %v1569_v3  ;;  %v1910_v56 = vadd.f32 %v1909_v32, %v1778_v17  ;;  %v4716_v23 = vmul.f32 %v4470_v35, %v5617_v31  ;;  %v5620_v29 = vld [vmem:[#allocation71_spill] sm:$0xff]  ;;  %v5621_v3 = vld [vmem:[#allocation74_spill] sm:$0xff]  ;;  %2105 = vmatpush.bf16.msrb.mxu1 %v3438_v33  ;;  %v5622_v32 = vld [vmem:[#allocation32_spill] sm:$0xff] }
 0x24a   :  { %v1700_v30 = vadd.f32 %v4672_v49, %v1570_v6  ;;  %v4720_v7 = vmul.f32 %v4470_v35, %v5618_v21  ;;  %v4724_v59 = vmul.f32 %v4470_v35, %v5619_v36  ;;  %v4728_v37 = vmul.f32 %v4470_v35, %v5620_v29 }
 0x24b   :  { %v4732_v6 = vmul.f32 %v4470_v35, %v5621_v3  ;;  %v1870_v17 = vadd.f32 %v1869_v8, %v1743_v41  ;;  %v1571_v31 = vmul.f32 %v4652_v18, %v5622_v32  ;;  %v1617_v21 = vadd.f32 %v4472_v34, %v1487_v47 }
 0x24c   :  { %v1618_v26 = vadd.f32 %v4472_v34, %v1488_v16  ;;  %v1619_v36 = vadd.f32 %v4472_v34, %v1489_v22  ;;  %v1744_v19 = vmax.f32 %v1616_v9, 0.0  ;;  %v1572_v29 = vmul.f32 %v4652_v18, %v5623_v1  ;;  %v5624_v9 = vld [vmem:[#allocation39_spill] sm:$0xff] }
 0x24d   :  { %v1701_v2 = vadd.f32 %v4672_v49, %v1571_v31  ;;  %v1827_v45 = vmax.f32 %v1699_v48, 0.0  ;;  %v1828_v35 = vmax.f32 %v1700_v30, 0.0  ;;  %v1911_v8 = vadd.f32 %v1910_v56, %v1779_v10 }
 0x24e   :  { %v4745_v41 = vadd.f32 %v4472_v34, %v1490_v54  ;;  %v4748_v47 = vadd.f32 %v4472_v34, %v1491_v38  ;;  %v4751_v16 = vadd.f32 %v4472_v34, %v1492_v50  ;;  %v4754_v22 = vadd.f32 %v4472_v34, %v1493_v58  ;;  %v5625_v50 = vld [vmem:[#allocation43_spill] sm:$0xff] }
 0x24f   :  { %v1871_v1 = vadd.f32 %v1870_v17, %v1744_v19  ;;  %v1573_v33 = vmul.f32 %v4652_v18, %v5624_v9  ;;  %v1702_v48 = vadd.f32 %v4672_v49, %v1572_v29  ;;  %v4760_v62 = vadd.f32 %v4472_v34, %v1494_v11  ;;  %v5626_v17 = vld [vmem:[#allocation47_spill] sm:$0xff] }
 0x250   :  { %v4763_v10 = vadd.f32 %v4472_v34, %v1495_v52  ;;  %v4766_v54 = vadd.f32 %v4472_v34, %v1496_v5  ;;  %v1745_v38 = vmax.f32 %v1617_v21, 0.0  ;;  %v1574_v58 = vmul.f32 %v4652_v18, %v5625_v50 }
 0x251   :  { %v1703_v19 = vadd.f32 %v4672_v49, %v1573_v33  ;;  %v1829_v30 = vmax.f32 %v1701_v2, 0.0  ;;  %v1970_v56 = vadd.f32 %v1828_v35, %v1827_v45  ;;  %v1912_v3 = vadd.f32 %v1911_v8, %v1780_v39 }
 0x252   :  { %v4774_v11 = vadd.f32 %v4472_v34, %v1497_v4  ;;  %v4777_v52 = vadd.f32 %v4472_v34, %v1498_v25  ;;  %v1575_v5 = vmul.f32 %v4652_v18, %v5626_v17  ;;  %v1872_v32 = vadd.f32 %v1871_v1, %v1745_v38  ;;  %v5627_v4 = vld [vmem:[#allocation51_spill] sm:$0xff] }
 0x253   :  { %v1704_v31 = vadd.f32 %v4672_v49, %v1574_v58  ;;  %v1830_v21 = vmax.f32 %v1702_v48, 0.0  ;;  %v1971_v29 = vadd.f32 %v1970_v56, %v1829_v30  ;;  %v4784_v45 = vadd.f32 %v4472_v34, %v4662_v43  ;;  %v5630_v30 = vld [vmem:[#allocation61_spill] sm:$0xff] }
 0x254   :  { %v4788_v27 = vadd.f32 %v4472_v34, %v4666_v61  ;;  %v4791_v39 = vadd.f32 %v4472_v34, %v1501_v51  ;;  %v1746_v2 = vmax.f32 %v1618_v26, 0.0  ;;  %v1576_v25 = vmul.f32 %v4652_v18, %v5627_v4  ;;  %v5629_v51 = vld [vmem:[#allocation57_spill] sm:$0xff] }
 0x255   :  { %v1705_v35 = vadd.f32 %v4672_v49, %v1575_v5  ;;  %v1831_v8 = vmax.f32 %v1703_v19, 0.0  ;;  %v1972_v1 = vadd.f32 %v1971_v29, %v1830_v21  ;;  %v5628_v9 = vmax.f32 %v4599_v20, 0.0 }
 0x256   :  { %v4800_v43 = vadd.f32 %v4472_v34, %v4678_v12  ;;  %v4804_v61 = vadd.f32 %v4472_v34, %v4682_v42  ;;  %v1577_v26 = vmul.f32 %v4652_v18, %v5629_v51  ;;  %v1873_v48 = vadd.f32 %v1872_v32, %v1746_v2 }
 0x257   :  { %v1913_v33 = vadd.f32 %v1912_v3, %v5628_v9  ;;  %v1706_v38 = vadd.f32 %v4672_v49, %v1576_v25  ;;  %v1832_v50 = vmax.f32 %v1704_v31, 0.0  ;;  %v1973_v58 = vadd.f32 %v1972_v1, %v1831_v8 }
 0x258   :  { %v4811_v20 = vadd.f32 %v4472_v34, %v4686_v24  ;;  %v4815_v12 = vadd.f32 %v4472_v34, %v4694_v15  ;;  %v4819_v42 = vadd.f32 %v4472_v34, %v4698_v57  ;;  %v1747_v19 = vmax.f32 %v1619_v36, 0.0  ;;  %v5632_v57 = vld [vmem:[#allocation65_spill] sm:$0xff] }
 0x259   :  { %v1578_v56 = vmul.f32 %v4652_v18, %v5630_v30  ;;  %v1707_v3 = vadd.f32 %v4672_v49, %v1577_v26  ;;  %v1833_v17 = vmax.f32 %v1705_v35, 0.0  ;;  %v1974_v5 = vadd.f32 %v1973_v58, %v1832_v50  ;;  %v5633_v35 = vld [vmem:[#allocation69_spill] sm:$0xff]  ;;  %v5635_v26 = vld [vmem:[#allocation75_spill] sm:$0xff] }
 0x25a   :  { %v5631_v32 = vmax.f32 %v4602_v55, 0.0  ;;  %v4828_v31 = vadd.f32 %v4472_v34, %v4702_v44  ;;  %v4832_v15 = vadd.f32 %v4472_v34, %v4707_v60  ;;  %v1579_v36 = vmul.f32 %v4652_v18, %v5632_v57  ;;  %v5638_v57 = vld [vmem:[#allocation83_spill] sm:$0xff] }
 0x25b   :  { %v1874_v21 = vadd.f32 %v1873_v48, %v1747_v19  ;;  %v1708_v29 = vadd.f32 %v4672_v49, %v1578_v56  ;;  %v1834_v2 = vmax.f32 %v1706_v38, 0.0  ;;  %v1975_v4 = vadd.f32 %v1974_v5, %v1833_v17  ;;  %v5636_v56 = vld [vmem:[#allocation79_spill] sm:$0xff] }
 0x25c   :  { %v1914_v24 = vadd.f32 %v1913_v33, %v5631_v32  ;;  %v4839_v55 = vadd.f32 %v4472_v34, %v4716_v23  ;;  %v4843_v44 = vadd.f32 %v4472_v34, %v4720_v7  ;;  %v4847_v60 = vadd.f32 %v4472_v34, %v4724_v59 }
 0x25d   :  { %v1748_v25 = vmax.f32 %v4745_v41, 0.0  ;;  %v1580_v8 = vmul.f32 %v4652_v18, %v5633_v35  ;;  %v1709_v1 = vadd.f32 %v4672_v49, %v1579_v36  ;;  %v1835_v9 = vmax.f32 %v1707_v3, 0.0 }
 0x25e   :  { %v1976_v33 = vadd.f32 %v1975_v4, %v1834_v2  ;;  %v5634_v23 = vmax.f32 %v4607_v13, 0.0  ;;  %v4857_v7 = vadd.f32 %v4472_v34, %v4728_v37  ;;  %v4861_v59 = vadd.f32 %v4472_v34, %v4732_v6 }
 0x25f   :  { %v1581_v41 = vmul.f32 %v4652_v18, %v5635_v26  ;;  %v1875_v48 = vadd.f32 %v1874_v21, %v1748_v25  ;;  %v1710_v38 = vadd.f32 %v4672_v49, %v1580_v8  ;;  %v1836_v50 = vmax.f32 %v1708_v29, 0.0  ;;  %v5639_v25 = vld [vmem:[#allocation87_spill] sm:$0xff] }
 0x260   :  { %v1915_v51 = vadd.f32 %v1914_v24, %v5634_v23  ;;  %v1977_v58 = vadd.f32 %v1976_v33, %v1835_v9  ;;  %v1749_v19 = vmax.f32 %v4748_v47, 0.0  ;;  %v1750_v13 = vmax.f32 %v4751_v16, 0.0 }
 0x261   :  { %v1751_v30 = vmax.f32 %v4754_v22, 0.0  ;;  %v1752_v37 = vmax.f32 %v4760_v62, 0.0  ;;  %v1582_v34 = vmul.f32 %v4652_v18, %v5636_v56  ;;  %v1711_v6 = vadd.f32 %v4672_v49, %v1581_v41  ;;  %v5642_v41 = vld [vmem:[#allocation78_spill] sm:$0xff] }
 0x262   :  { %v1837_v3 = vmax.f32 %v1709_v1, 0.0  ;;  %v1978_v17 = vadd.f32 %v1977_v58, %v1836_v50  ;;  %v5637_v5 = vmax.f32 %v4610_v14, 0.0  ;;  %v1753_v24 = vmax.f32 %v4763_v10, 0.0 }
 0x263   :  { %v1754_v47 = vmax.f32 %v4766_v54, 0.0  ;;  %v1583_v16 = vmul.f32 %v4652_v18, %v5638_v57  ;;  %v1876_v22 = vadd.f32 %v1875_v48, %v1749_v19  ;;  %v1712_v62 = vadd.f32 %v4672_v49, %v1582_v34  ;;  %v5646_v57 = vld [vmem:[#allocation99_spill] sm:$0xff] }
 0x264   :  { %v1916_v32 = vadd.f32 %v1915_v51, %v5637_v5  ;;  %v1838_v36 = vmax.f32 %v1710_v38, 0.0  ;;  %v1979_v21 = vadd.f32 %v1978_v17, %v1837_v3  ;;  %v1755_v29 = vmax.f32 %v4774_v11, 0.0  ;;  %v5641_v51 = vld [vmem:[#allocation92_spill] sm:$0xff]  ;;  %v5643_v38 = vld [vmem:[#allocation81_spill] sm:$0xff] }
 0x265   :  { %v1756_v2 = vmax.f32 %v4777_v52, 0.0  ;;  %v1786_v4 = vmax.f32 %v4815_v12, 0.0  ;;  %v1787_v14 = vmax.f32 %v4819_v42, 0.0  ;;  %v1584_v35 = vmul.f32 %v4652_v18, %v5639_v25  ;;  %v5659_v11 = vld [vmem:[#allocation40_spill] sm:$0xff]  ;;  %v5662_v52 = vld [vmem:[#allocation50_spill] sm:$0xff] }
 0x266   :  { %v1713_v8 = vadd.f32 %v4672_v49, %v1583_v16  ;;  %v1839_v1 = vmax.f32 %v1711_v6, 0.0  ;;  %v1980_v9 = vadd.f32 %v1979_v21, %v1838_v36  ;;  %v5640_v33 = vmax.f32 %v4613_v28, 0.0  ;;  %v5644_v6 = vld [vmem:[#allocation95_spill] sm:$0xff]  ;;  %v5645_v28 = vld [vmem:[#allocation97_spill] sm:$0xff] }
 0x267   :  { %v1585_v26 = vmul.f32 %v4652_v18, %v5641_v51  ;;  %v1537_v48 = vmul.f32 %v4652_v18, %v5642_v41  ;;  %v1538_v50 = vmul.f32 %v4652_v18, %v5643_v38  ;;  %v1877_v58 = vadd.f32 %v1876_v22, %v1750_v13  ;;  %v5647_v21 = vld [vmem:[#allocation101_spill] sm:$0xff] }
 0x268   :  { %v4889_v23 = vadd.f32 %v1916_v32, %v5640_v33  ;;  %v1714_v19 = vadd.f32 %v4672_v49, %v1584_v35  ;;  %v1840_v56 = vmax.f32 %v1712_v62, 0.0  ;;  %v1981_v34 = vadd.f32 %v1980_v9, %v1839_v1  ;;  %v5648_v1 = vld [vmem:[#allocation85_spill] sm:$0xff] }
 0x269   :  { %v1586_v3 = vmul.f32 %v4652_v18, %v5644_v6  ;;  %v1587_v17 = vmul.f32 %v4652_v18, %v5645_v28  ;;  %v1667_v5 = vadd.f32 %v4672_v49, %v1537_v48  ;;  %v1668_v32 = vadd.f32 %v4672_v49, %v1538_v50 }
 0x26a   :  { %v1588_v16 = vmul.f32 %v4652_v18, %v5646_v57  ;;  %v1715_v36 = vadd.f32 %v4672_v49, %v1585_v26  ;;  %v1841_v13 = vmax.f32 %v1713_v8, 0.0  ;;  %v1982_v22 = vadd.f32 %v1981_v34, %v1840_v56  ;;  %v5649_v26 = vld [vmem:[#allocation89_spill] sm:$0xff] }
 0x26b   :  { %v1589_v62 = vmul.f32 %v4652_v18, %v5647_v21  ;;  %v1590_v25 = vmul.f32 %v4652_v18, %v4252_v46  ;;  %v1591_v35 = vmul.f32 %v4652_v18, %v4285_v63  ;;  %v1539_v9 = vmul.f32 %v4652_v18, %v5648_v1  ;;  %v5652_v21 = vld [vmem:[#allocation3_spill] sm:$0xff] }
 0x26c   :  { %v1878_v33 = vadd.f32 %v1877_v58, %v1751_v30  ;;  %v1716_v51 = vadd.f32 %v4672_v49, %v1586_v3  ;;  %v1842_v41 = vmax.f32 %v1714_v19, 0.0  ;;  %v1983_v48 = vadd.f32 %v1982_v22, %v1841_v13  ;;  %v5650_v19 = vld [vmem:[#allocation17_spill] sm:$0xff]  ;;  %v5651_v13 = vld [vmem:[#allocation20_spill] sm:$0xff] }
 0x26d   :  { %v1540_v8 = vmul.f32 %v4652_v18, %v5649_v26  ;;  %v1669_v38 = vadd.f32 %v4672_v49, %v1539_v9  ;;  %v1795_v50 = vmax.f32 %v1667_v5, 0.0  ;;  %v1796_v56 = vmax.f32 %v1668_v32, 0.0 }
 0x26e   :  { %v1592_v46 = vmul.f32 %v4652_v18, %v4320_v40  ;;  %v1717_v63 = vadd.f32 %v4672_v49, %v1587_v17  ;;  %v1843_v34 = vmax.f32 %v1715_v36, 0.0  ;;  %v1984_v6 = vadd.f32 %v1983_v48, %v1842_v41  ;;  %v5653_v48 = vld [vmem:[#allocation23_spill] sm:$0xff] }
 0x26f   :  { %v1593_v30 = vmul.f32 %v4652_v18, %v4342_v0  ;;  %v1594_v58 = vmul.f32 %v4652_v18, %v4370_v53  ;;  %v1541_v3 = vmul.f32 %v4652_v18, %v5650_v19  ;;  %v1670_v28 = vadd.f32 %v4672_v49, %v1540_v8 }
 0x270   :  { %v1879_v5 = vadd.f32 %v1878_v33, %v1752_v37  ;;  %v1718_v32 = vadd.f32 %v4672_v49, %v1588_v16  ;;  %v1844_v57 = vmax.f32 %v1716_v51, 0.0  ;;  %v1985_v40 = vadd.f32 %v1984_v6, %v1843_v34 }
 0x271   :  { %v1542_v17 = vmul.f32 %v4652_v18, %v5651_v13  ;;  %v1671_v36 = vadd.f32 %v4672_v49, %v1541_v3  ;;  %v1797_v22 = vmax.f32 %v1669_v38, 0.0  ;;  %v1933_v0 = vadd.f32 %v1796_v56, %v1795_v50  ;;  %v5654_v56 = vld [vmem:[#allocation26_spill] sm:$0xff] }
 0x272   :  { %v1595_v53 = vmul.f32 %v4652_v18, %v5652_v21  ;;  %v1719_v1 = vadd.f32 %v4672_v49, %v1589_v62  ;;  %v1845_v9 = vmax.f32 %v1717_v63, 0.0  ;;  %v1986_v41 = vadd.f32 %v1985_v40, %v1844_v57  ;;  %v5655_v40 = vld [vmem:[#allocation28_spill] sm:$0xff] }
 0x273   :  { %v1543_v37 = vmul.f32 %v4652_v18, %v5653_v48  ;;  %v1672_v16 = vadd.f32 %v4672_v49, %v1542_v17  ;;  %v1798_v33 = vmax.f32 %v1670_v28, 0.0  ;;  %v1934_v51 = vadd.f32 %v1933_v0, %v1797_v22  ;;  %v5656_v22 = vld [vmem:[#allocation31_spill] sm:$0xff]  ;;  %v5657_v48 = vld [vmem:[#allocation34_spill] sm:$0xff] }
 0x274   :  { %v1880_v26 = vadd.f32 %v1879_v5, %v1753_v24  ;;  %v1720_v8 = vadd.f32 %v4672_v49, %v1590_v25  ;;  %v1846_v38 = vmax.f32 %v1718_v32, 0.0  ;;  %v1987_v50 = vadd.f32 %v1986_v41, %v1845_v9 }
 0x275   :  { %v1544_v34 = vmul.f32 %v4652_v18, %v5654_v56  ;;  %v1673_v62 = vadd.f32 %v4672_v49, %v1543_v37  ;;  %v1799_v63 = vmax.f32 %v1671_v36, 0.0  ;;  %v1935_v6 = vadd.f32 %v1934_v51, %v1798_v33 }
 0x276   :  { %v1721_v19 = vadd.f32 %v4672_v49, %v1591_v35  ;;  %v1722_v3 = vadd.f32 %v4672_v49, %v1592_v46  ;;  %v1847_v28 = vmax.f32 %v1719_v1, 0.0  ;;  %v1988_v57 = vadd.f32 %v1987_v50, %v1846_v38 }
 0x277   :  { %v1545_v10 = vmul.f32 %v4652_v18, %v5655_v40  ;;  %v1674_v24 = vadd.f32 %v4672_v49, %v1544_v34  ;;  %v1800_v25 = vmax.f32 %v1672_v16, 0.0  ;;  %v1936_v5 = vadd.f32 %v1935_v6, %v1799_v63 }
 0x278   :  { %v1881_v32 = vadd.f32 %v1880_v26, %v1754_v47  ;;  %v1723_v13 = vadd.f32 %v4672_v49, %v1593_v30  ;;  %v1848_v17 = vmax.f32 %v1720_v8, 0.0  ;;  %v1989_v36 = vadd.f32 %v1988_v57, %v1847_v28  ;;  %v5658_v8 = vld [vmem:[#allocation37_spill] sm:$0xff] }
 0x279   :  { %v1546_v35 = vmul.f32 %v4652_v18, %v5656_v22  ;;  %v1675_v46 = vadd.f32 %v4672_v49, %v1545_v10  ;;  %v1801_v0 = vmax.f32 %v1673_v62, 0.0  ;;  %v1937_v21 = vadd.f32 %v1936_v5, %v1800_v25  ;;  %v5661_v5 = vld [vmem:[#allocation5_spill] sm:$0xff] }
 0x27a   :  { %v1724_v1 = vadd.f32 %v4672_v49, %v1594_v58  ;;  %v1849_v9 = vmax.f32 %v1721_v19, 0.0  ;;  %v1990_v41 = vadd.f32 %v1989_v36, %v1848_v17  ;;  %v1547_v37 = vmul.f32 %v4652_v18, %v5657_v48 }
 0x27b   :  { %v1676_v54 = vadd.f32 %v4672_v49, %v1546_v35  ;;  %v1802_v47 = vmax.f32 %v1674_v24, 0.0  ;;  %v1938_v30 = vadd.f32 %v1937_v21, %v1801_v0  ;;  %v1918_v16 = vadd.f32 %v4889_v23, %v1786_v4 }
 0x27c   :  { %v1882_v33 = vadd.f32 %v1881_v32, %v1755_v29  ;;  %v1850_v51 = vmax.f32 %v1722_v3, 0.0  ;;  %v1991_v26 = vadd.f32 %v1990_v41, %v1849_v9  ;;  %v1548_v58 = vmul.f32 %v4652_v18, %v5658_v8 }
 0x27d   :  { %v1677_v38 = vadd.f32 %v4672_v49, %v1547_v37  ;;  %v1803_v50 = vmax.f32 %v1675_v46, 0.0  ;;  %v1939_v56 = vadd.f32 %v1938_v30, %v1802_v47  ;;  %v1919_v34 = vadd.f32 %v1918_v16, %v1787_v14  ;;  %v5660_v14 = vld [vmem:[#allocation46_spill] sm:$0xff] }
 0x27e   :  { %v1788_v62 = vmax.f32 %v4828_v31, 0.0  ;;  %v1725_v12 = vadd.f32 %v4672_v49, %v1595_v53  ;;  %v1851_v4 = vmax.f32 %v1723_v13, 0.0  ;;  %v1992_v23 = vadd.f32 %v1991_v26, %v1850_v51  ;;  %v5665_v16 = vld [vmem:[#allocation58_spill] sm:$0xff] }
 0x27f   :  { %v1549_v29 = vmul.f32 %v4652_v18, %v5659_v11  ;;  %v1678_v63 = vadd.f32 %v4672_v49, %v1548_v58  ;;  %v1804_v6 = vmax.f32 %v1676_v54, 0.0  ;;  %v1940_v19 = vadd.f32 %v1939_v56, %v1803_v50  ;;  %v5664_v54 = vld [vmem:[#allocation7_spill] sm:$0xff]  ;;  %v5667_v11 = vld [vmem:[#allocation9_spill] sm:$0xff] }
 0x280   :  { %v1883_v3 = vadd.f32 %v1882_v33, %v1756_v2  ;;  %v1852_v28 = vmax.f32 %v1724_v1, 0.0  ;;  %v1993_v57 = vadd.f32 %v1992_v23, %v1851_v4  ;;  %v1920_v42 = vadd.f32 %v1919_v34, %v1788_v62  ;;  %v5663_v1 = vld [vmem:[#allocation54_spill] sm:$0xff]  ;;  %v5666_v34 = vld [vmem:[#allocation64_spill] sm:$0xff] }
 0x281   :  { %v1550_v31 = vmul.f32 %v4652_v18, %v5660_v14  ;;  %v1679_v53 = vadd.f32 %v4672_v49, %v1549_v29  ;;  %v1805_v40 = vmax.f32 %v1677_v38, 0.0  ;;  %v1941_v10 = vadd.f32 %v1940_v19, %v1804_v6  ;;  %v5668_v6 = vld [vmem:[#allocation68_spill] sm:$0xff] }
 0x282   :  { %v1757_v24 = vmax.f32 %v4784_v45, 0.0  ;;  %v1789_v25 = vmax.f32 %v4832_v15, 0.0  ;;  %v1596_v32 = vmul.f32 %v4652_v18, %v5661_v5  ;;  %v1994_v13 = vadd.f32 %v1993_v57, %v1852_v28 }
 0x283   :  { %v1551_v2 = vmul.f32 %v4652_v18, %v5662_v52  ;;  %v1680_v17 = vadd.f32 %v4672_v49, %v1550_v31  ;;  %v1806_v36 = vmax.f32 %v1678_v63, 0.0  ;;  %v1942_v22 = vadd.f32 %v1941_v10, %v1805_v40  ;;  %v5669_v40 = vld [vmem:[#allocation72_spill] sm:$0xff] }
 0x284   :  { %v1884_v35 = vadd.f32 %v1883_v3, %v1757_v24  ;;  %v1726_v46 = vadd.f32 %v4672_v49, %v1596_v32  ;;  %v1853_v0 = vmax.f32 %v1725_v12, 0.0  ;;  %v1921_v21 = vadd.f32 %v1920_v42, %v1789_v25  ;;  %v5670_v32 = vld [vmem:[#allocation11_spill] sm:$0xff] }
 0x285   :  { %v1552_v45 = vmul.f32 %v4652_v18, %v5663_v1  ;;  %v1681_v15 = vadd.f32 %v4672_v49, %v1551_v2  ;;  %v1807_v9 = vmax.f32 %v1679_v53, 0.0  ;;  %v1943_v41 = vadd.f32 %v1942_v22, %v1806_v36  ;;  %v5671_v2 = vld [vmem:[#allocation76_spill] sm:$0xff] }
 0x286   :  { %v1758_v48 = vmax.f32 %v4788_v27, 0.0  ;;  %v1790_v37 = vmax.f32 %v4839_v55, 0.0  ;;  %v1597_v47 = vmul.f32 %v4652_v18, %v5664_v54  ;;  %v1995_v30 = vadd.f32 %v1994_v13, %v1853_v0 }
 0x287   :  { %v1553_v33 = vmul.f32 %v4652_v18, %v5665_v16  ;;  %v1682_v51 = vadd.f32 %v4672_v49, %v1552_v45  ;;  %v1808_v26 = vmax.f32 %v1680_v17, 0.0  ;;  %v1944_v8 = vadd.f32 %v1943_v41, %v1807_v9  ;;  %v5672_v45 = vld [vmem:[#allocation82_spill] sm:$0xff] }
 0x288   :  { %v1885_v58 = vadd.f32 %v1884_v35, %v1758_v48  ;;  %v1727_v38 = vadd.f32 %v4672_v49, %v1597_v47  ;;  %v1854_v50 = vmax.f32 %v1726_v46, 0.0  ;;  %v1922_v56 = vadd.f32 %v1921_v21, %v1790_v37  ;;  %v5673_v37 = vld [vmem:[#allocation12_spill] sm:$0xff] }
 0x289   :  { %v1554_v27 = vmul.f32 %v4652_v18, %v5666_v34  ;;  %v1683_v55 = vadd.f32 %v4672_v49, %v1553_v33  ;;  %v1809_v62 = vmax.f32 %v1681_v15, 0.0  ;;  %v1945_v12 = vadd.f32 %v1944_v8, %v1808_v26  ;;  %v3437_v8 = vld [vmem:[%s5300_s2 + $0x18] sm:$0xff] }
 0x28a   :  { %v1759_v4 = vmax.f32 %v4791_v39, 0.0  ;;  %v1791_v23 = vmax.f32 %v4843_v44, 0.0  ;;  %v1598_v29 = vmul.f32 %v4652_v18, %v5667_v11  ;;  %v1996_v63 = vadd.f32 %v1995_v30, %v1854_v50  ;;  %v5674_v30 = vld [vmem:[#allocation86_spill] sm:$0xff]  ;;  %2106 = vmatpush.bf16.msrb.mxu1 %v3437_v8 }
 0x28b   :  { %v1555_v19 = vmul.f32 %v4652_v18, %v5668_v6  ;;  %v1684_v3 = vadd.f32 %v4672_v49, %v1554_v27  ;;  %v1810_v28 = vmax.f32 %v1682_v51, 0.0  ;;  %v1946_v57 = vadd.f32 %v1945_v12, %v1809_v62  ;;  %v5675_v50 = vld [vmem:[#allocation90_spill] sm:$0xff]  ;;  %v3436_v62 = vld [vmem:[%s5300_s2 + $0x10] sm:$0xff] }
 0x28c   :  { %v1886_v42 = vadd.f32 %v1885_v58, %v1759_v4  ;;  %v1728_v14 = vadd.f32 %v4672_v49, %v1598_v29  ;;  %v1855_v31 = vmax.f32 %v1727_v38, 0.0  ;;  %v1923_v53 = vadd.f32 %v1922_v56, %v1791_v23  ;;  %v5676_v29 = vld [vmem:[#allocation94_spill] sm:$0xff] }
 0x28d   :  { %v1556_v39 = vmul.f32 %v4652_v18, %v5669_v40  ;;  %v1685_v44 = vadd.f32 %v4672_v49, %v1555_v19  ;;  %v1811_v10 = vmax.f32 %v1683_v55, 0.0  ;;  %v1947_v24 = vadd.f32 %v1946_v57, %v1810_v28 }
 0x28e   :  { %v1760_v25 = vmax.f32 %v4800_v43, 0.0  ;;  %v1792_v5 = vmax.f32 %v4847_v60, 0.0  ;;  %v1599_v13 = vmul.f32 %v4652_v18, %v5670_v32  ;;  %v1997_v52 = vadd.f32 %v1996_v63, %v1855_v31  ;;  %2107 = vmatpush.bf16.msrb.mxu1 %v3436_v62  ;;  %v3449_v62 = vld [vmem:[%s5300_s2 + $0x78] sm:$0xff] }
 0x28f   :  { %v1557_v17 = vmul.f32 %v4652_v18, %v5671_v2  ;;  %v1686_v36 = vadd.f32 %v4672_v49, %v1556_v39  ;;  %v1812_v22 = vmax.f32 %v1684_v3, 0.0  ;;  %v1948_v35 = vadd.f32 %v1947_v24, %v1811_v10  ;;  %v5679_v2 = vld [vmem:[#allocation100_spill] sm:$0xff]  ;;  %2282 = vmatpush.bf16.msrb.mxu2 %v3449_v62 }
 0x290   :  { %v1887_v46 = vadd.f32 %v1886_v42, %v1760_v25  ;;  %v1729_v0 = vadd.f32 %v4672_v49, %v1599_v13  ;;  %v1856_v21 = vmax.f32 %v1728_v14, 0.0  ;;  %v1924_v1 = vadd.f32 %v1923_v53, %v1792_v5  ;;  %v5677_v14 = vld [vmem:[#allocation96_spill] sm:$0xff] }
 0x291   :  { %v1558_v43 = vmul.f32 %v4652_v18, %v5672_v45  ;;  %v1687_v60 = vadd.f32 %v4672_v49, %v1557_v17  ;;  %v1813_v15 = vmax.f32 %v1685_v44, 0.0  ;;  %v1949_v9 = vadd.f32 %v1948_v35, %v1812_v22  ;;  %v5678_v44 = vld [vmem:[#allocation98_spill] sm:$0xff] }
 0x292   :  { %v1761_v41 = vmax.f32 %v4804_v61, 0.0  ;;  %v1793_v48 = vmax.f32 %v4857_v7, 0.0  ;;  %v1600_v54 = vmul.f32 %v4652_v18, %v5673_v37  ;;  %v1998_v47 = vadd.f32 %v1997_v52, %v1856_v21  ;;  %v5680_v21 = vld [vmem:[#allocation13_spill] sm:$0xff] }
 0x293   :  { %v1559_v16 = vmul.f32 %v4652_v18, %v5674_v30  ;;  %v1688_v33 = vadd.f32 %v4672_v49, %v1558_v43  ;;  %v1814_v51 = vmax.f32 %v1686_v36, 0.0  ;;  %v1950_v26 = vadd.f32 %v1949_v9, %v1813_v15 }
 0x294   :  { %v1888_v58 = vadd.f32 %v1887_v46, %v1761_v41  ;;  %v1730_v61 = vadd.f32 %v4672_v49, %v1600_v54  ;;  %v1857_v38 = vmax.f32 %v1729_v0, 0.0  ;;  %v1925_v7 = vadd.f32 %v1924_v1, %v1793_v48  ;;  %v3434_v46 = vld [vmem:[%s5300_s2] sm:$0xff]  ;;  %v5681_v48 = vld [vmem:[#allocation15_spill] sm:$0xff] }
 0x295   :  { %v1560_v56 = vmul.f32 %v4652_v18, %v5675_v50  ;;  %v1689_v34 = vadd.f32 %v4672_v49, %v1559_v16  ;;  %v1815_v27 = vmax.f32 %v1687_v60, 0.0  ;;  %v1951_v55 = vadd.f32 %v1950_v26, %v1814_v51  ;;  %v5683_v50 = vld [vmem:[#allocation21_spill] sm:$0xff] }
 0x296   :  { %v3515_v12 = vmov 256.0   ;;  %v1762_v4 = vmax.f32 %v4811_v20, 0.0  ;;  %v1794_v23 = vmax.f32 %v4861_v59, 0.0  ;;  %v1999_v11 = vadd.f32 %v1998_v47, %v1857_v38  ;;  %v3435_v59 = vld [vmem:[%s5300_s2 + $0x8] sm:$0xff] }
 0x297   :  { %3493 = vrcp.f32 %v3515_v12  ;;  %v1561_v63 = vmul.f32 %v4652_v18, %v5676_v29  ;;  %v1690_v6 = vadd.f32 %v4672_v49, %v1560_v56  ;;  %v1816_v19 = vmax.f32 %v1688_v33, 0.0  ;;  %2108 = vmatpush.bf16.msrb.mxu1 %v3435_v59  ;;  %v5682_v33 = vld [vmem:[#allocation18_spill] sm:$0xff] }
 0x298   :  { %v1952_v3 = vadd.f32 %v1951_v55, %v1815_v27  ;;  %v1889_v28 = vadd.f32 %v1888_v58, %v1762_v4  ;;  %v1858_v57 = vmax.f32 %v1730_v61, 0.0  ;;  %v1926_v42 = vadd.f32 %v1925_v7, %v1794_v23  ;;  %v3457_v4 = vld [vmem:[%s5300_s2 + $0xb8] sm:$0xff] }
 0x299   :  { %v1562_v31 = vmul.f32 %v4652_v18, %v5677_v14  ;;  %v1691_v53 = vadd.f32 %v4672_v49, %v1561_v63  ;;  %v1817_v40 = vmax.f32 %v1689_v34, 0.0  ;;  %v1563_v10 = vmul.f32 %v4652_v18, %v5678_v44  ;;  %2455 = vmatpush.bf16.msrb.mxu3 %v3457_v4  ;;  %v3446_v44 = vld [vmem:[%s5300_s2 + $0x60] sm:$0xff] }
 0x29a   :  { %v1953_v20 = vadd.f32 %v1952_v3, %v1816_v19  ;;  %v2000_v39 = vadd.f32 %v1999_v11, %v1858_v57  ;;  %v1818_v25 = vmax.f32 %v1690_v6, 0.0  ;;  %v1890_v13 = vrot.slane %v1889_v28, 4 }
 0x29b   :  { %v1692_v24 = vadd.f32 %v4672_v49, %v1562_v31  ;;  %v1927_v52 = vrot.slane %v1926_v42, 4  ;;  %v1564_v17 = vmul.f32 %v4652_v18, %v5679_v2  ;;  %v1693_v36 = vadd.f32 %v4672_v49, %v1563_v10  ;;  %2109 = vmatpush.bf16.msrb.mxu1 %v3434_v46  ;;  %v3445_v2 = vld [vmem:[%s5300_s2 + $0x58] sm:$0xff] }
 0x29c   :  { %v1954_v5 = vadd.f32 %v1953_v20, %v1817_v40  ;;  %v1819_v22 = vmax.f32 %v1691_v53, 0.0  ;;  %v2001_v0 = vrot.slane %v2000_v39, 4  ;;  %v1565_v1 = vmul.f32 %v4652_v18, %v5680_v21 }
 0x29d   :  { %v5055_v32 = vpop.eup %3493  ;;  %v1694_v45 = vadd.f32 %v4672_v49, %v1564_v17  ;;  %v1820_v43 = vmax.f32 %v1692_v24, 0.0  ;;  %v1891_v9 = vadd.f32 %v1890_v13, %v1889_v28  ;;  %v1928_v41 = vadd.f32 %v1927_v52, %v1926_v42 }
 0x29e   :  { %v1955_v35 = vadd.f32 %v1954_v5, %v1818_v25  ;;  %v2008_v15 = vmul.f32 256.0, %v5055_v32  ;;  %v1566_v37 = vmul.f32 %v4652_v18, %v5681_v48  ;;  %v1695_v54 = vadd.f32 %v4672_v49, %v1565_v1 }
 0x29f   :  { %v1821_v47 = vmax.f32 %v1693_v36, 0.0  ;;  %v2002_v16 = vadd.f32 %v2001_v0, %v2000_v39  ;;  %v1567_v51 = vmul.f32 %v4652_v18, %v5682_v33  ;;  %v1822_v8 = vmax.f32 %v1694_v45, 0.0  ;;  %v3444_v0 = vld [vmem:[%s5300_s2 + $0x50] sm:$0xff] }
 0x2a0   :  { %v1956_v60 = vadd.f32 %v1955_v35, %v1819_v22  ;;  %v1696_v26 = vadd.f32 %v4672_v49, %v1566_v37  ;;  %v2009_v61 = vsub.f32 1.0, %v2008_v15  ;;  %v1892_v38 = vrot.slane %v1891_v9, 2 }
 0x2a1   :  { %v1929_v7 = vrot.slane %v1928_v41, 2  ;;  %v1568_v56 = vmul.f32 %v4652_v18, %v5683_v50  ;;  %v1697_v34 = vadd.f32 %v4672_v49, %v1567_v51  ;;  %v1823_v27 = vmax.f32 %v1695_v54, 0.0  ;;  %v3448_v18 = vld [vmem:[%s5300_s2 + $0x70] sm:$0xff] }
 0x2a2   :  { %v1957_v30 = vadd.f32 %v1956_v60, %v1820_v43  ;;  %v2003_v12 = vrot.slane %v2002_v16, 2  ;;  %v1824_v11 = vmax.f32 %v1696_v26, 0.0  ;;  %v1893_v63 = vadd.f32 %v1892_v38, %v1891_v9  ;;  %2283 = vmatpush.bf16.msrb.mxu2 %v3448_v18 }
 0x2a3   :  { %v1698_v23 = vadd.f32 %v4672_v49, %v1568_v56  ;;  %v1930_v6 = vadd.f32 %v1929_v7, %v1928_v41  ;;  %v2010_v19 = vmul.f32 %v5055_v32, %v2009_v61  ;;  %v1825_v3 = vmax.f32 %v1697_v34, 0.0  ;;  %v3447_v49 = vld [vmem:[%s5300_s2 + $0x68] sm:$0xff] }
 0x2a4   :  { %v1958_v58 = vadd.f32 %v1957_v30, %v1821_v47  ;;  %v2004_v57 = vadd.f32 %v2003_v12, %v2002_v16  ;;  %v1894_v31 = vrot.slane %v1893_v63, 1  ;;  %vm2012_vm9 = vweird.f32 %v5055_v32 }
 0x2a5   :  { %v1826_v42 = vmax.f32 %v1698_v23, 0.0  ;;  %v1931_v53 = vrot.slane %v1930_v6, 1  ;;  %v2011_v40 = vadd.f32 %v5055_v32, %v2010_v19  ;;  %v3516_v16 = vmov 2.0  }
 0x2a6   :  { %v1959_v55 = vadd.f32 %v1958_v58, %v1822_v8  ;;  %v2005_v59 = vrot.slane %v2004_v57, 1  ;;  %2284 = vmatpush.bf16.msrb.mxu2 %v3447_v49  ;;  %v1895_v10 = vadd.f32 %v1894_v31, %v1893_v63  ;;  %3495 = vrcp.f32 %v3516_v16 }
 0x2a7   :  { %v1932_v24 = vadd.f32 %v1931_v53, %v1930_v6  ;;  %v2013_v25 = vsel %vm2012_vm9, %v5055_v32, %v2011_v40 }
 0x2a8   :  { %v1960_v29 = vadd.f32 %v1959_v55, %v1823_v27  ;;  %v2006_v13 = vadd.f32 %v2005_v59, %v2004_v57  ;;  %v2014_v17 = vmul.f32 %v2013_v25, %v1895_v10 }
 0x2a9   :  { %v2015_v36 = vmul.f32 %v2013_v25, %v1932_v24 }
 0x2aa   :  { %v1961_v28 = vadd.f32 %v1960_v29, %v1824_v11  ;;  %2285 = vmatpush.bf16.msrb.mxu2 %v3446_v44  ;;  %v2017_v35 = vmul.f32 %v2013_v25, %v2006_v13  ;;  %v2018_v21 = vpack.c.bf16 %v2014_v17, %v2014_v17 }
 0x2ab   :  { %v2019_v32 = vpack.c.bf16 %v2015_v36, %v2015_v36 }
 0x2ac   :  { %v1962_v14 = vadd.f32 %v1961_v28, %v1825_v3  ;;  %v2021_v45 = vpack.c.bf16 %v2017_v35, %v2017_v35  ;;  %v2042_v60 = vunpack.c.l.b16 %v2018_v21  ;;  %v3496_v33 = vpop.eup %3495 }
 0x2ad   :  { %v2043_v15 = vunpack.c.l.b16 %v2019_v32  ;;  %v2133_v51 = vmul.f32 2.0, %v3496_v33  ;;  %vm2137_vm13 = vweird.f32 %v3496_v33 }
 0x2ae   :  { %v1963_v20 = vadd.f32 %v1962_v14, %v1826_v42  ;;  %2286 = vmatpush.bf16.msrb.mxu2 %v3445_v2  ;;  %v2045_v41 = vunpack.c.l.b16 %v2021_v45  ;;  %v3443_v45 = vld [vmem:[%s5300_s2 + $0x48] sm:$0xff] }
 0x2af   :  { %v2047_v37 = vsel %vm2046_vm10, %v2043_v15, %v2042_v60  ;;  %v2134_v26 = vsub.f32 1.0, %v2133_v51  ;;  %v3455_v60 = vld [vmem:[%s5300_s2 + $0xa8] sm:$0xff]  ;;  %v3453_v51 = vld [vmem:[%s5300_s2 + $0x98] sm:$0xff] }
 0x2b0   :  { %v1964_v39 = vrot.slane %v1963_v20, 4 }
 0x2b1   :  { %v2135_v56 = vmul.f32 %v3496_v33, %v2134_v26 }
 0x2b2   :  { %v1965_v5 = vadd.f32 %v1964_v39, %v1963_v20  ;;  %2287 = vmatpush.bf16.msrb.mxu2 %v3444_v0 }
 0x2b3   :  { %v2136_v63 = vadd.f32 %v3496_v33, %v2135_v56 }
 0x2b4   :  { %v1966_v52 = vrot.slane %v1965_v5, 2 }
 0x2b5   :  { %v5117_v53 = vsel %vm2137_vm13, %v3496_v33, %v2136_v63 }
 0x2b6   :  { %v1967_v22 = vadd.f32 %v1966_v52, %v1965_v5  ;;  %2288 = vmatpush.bf16.msrb.mxu2 %v3443_v45 }
 0x2b8   :  { %v1968_v46 = vrot.slane %v1967_v22, 1 }
 0x2ba   :  { %v1969_v1 = vadd.f32 %v1968_v46, %v1967_v22 }
 0x2bc   :  { %v2016_v43 = vmul.f32 %v2013_v25, %v1969_v1  ;;  %v3456_v1 = vld [vmem:[%s5300_s2 + $0xb0] sm:$0xff] }
 0x2bd   :  { %2456 = vmatpush.bf16.msrb.mxu3 %v3456_v1 }
 0x2be   :  { %v2020_v9 = vpack.c.bf16 %v2016_v43, %v2016_v43  ;;  %v3442_v43 = vld [vmem:[%s5300_s2 + $0x40] sm:$0xff] }
 0x2bf   :  { %2289 = vmatpush.bf16.msrb.mxu2 %v3442_v43 }
 0x2c0   :  { %v2044_v48 = vunpack.c.l.b16 %v2020_v9 }
 0x2c1   :  { %2457 = vmatpush.bf16.msrb.mxu3 %v3455_v60 }
 0x2c2   :  { %v2049_v54 = vsel %vm2048_vm11, %v2044_v48, %v2047_v37 }
 0x2c3   :  { %v2051_v47 = vsel %vm2050_vm12, %v2045_v41, %v2049_v54 }
 0x2c4   :  { %v2052_v30 = vpack.c.b16 %v2051_v47, %v2051_v47 }
 0x2c6   :  { %2110 = vmatmul.bf16.vlgmr.msrb.gmra.mxu1 %v2052_v30  ;;  %v3454_v30 = vld [vmem:[%s5300_s2 + $0xa0] sm:$0xff] }
 0x2c7   :  { %2458 = vmatpush.bf16.msrb.mxu3 %v3454_v30 }
 0x2cb   :  { %2459 = vmatpush.bf16.msrb.mxu3 %v3453_v51 }
 0x343   :  { %v5102_v8 = vpop.f32.mrf.mxu1 }
 0x344   :  { %v5105_v58 = vrot.slane %v5102_v8, 2  ;;  %v2118_v61 = vsel %vm683_vm0, %v5102_v8, 0.0  ;;  %v2141_v38 = vmul.f32 %v5102_v8, %v5102_v8 }
 0x345   :  { %v2119_v7 = vrot.slane %v2118_v61, 4 }
 0x346   :  { %v2125_v50 = vsel %vm683_vm0, %v5105_v58, 0.0  ;;  %v2142_v34 = vmul.f32 %v5105_v58, %v5105_v58  ;;  %v2143_v27 = vsel %vm683_vm0, %v2141_v38, 0.0 }
 0x347   :  { %v2120_v55 = vadd.f32 %v2119_v7, %v2118_v61  ;;  %v2126_v62 = vrot.slane %v2125_v50, 4  ;;  %v2144_v12 = vrot.slane %v2143_v27, 4 }
 0x348   :  { %v2150_v4 = vsel %vm683_vm0, %v2142_v34, 0.0  ;;  %v3452_v34 = vld [vmem:[%s5300_s2 + $0x90] sm:$0xff] }
 0x349   :  { %v2121_v23 = vrot.slane %v2120_v55, 2  ;;  %v2127_v11 = vadd.f32 %v2126_v62, %v2125_v50  ;;  %v2145_v29 = vadd.f32 %v2144_v12, %v2143_v27  ;;  %v2151_v18 = vrot.slane %v2150_v4, 4  ;;  %v5144_v50 = vld [vmem:[%s5299_s3] sm:$0xff]  ;;  %2460 = vmatpush.bf16.msrb.mxu3 %v3452_v34 }
 0x34b   :  { %v2122_v6 = vadd.f32 %v2121_v23, %v2120_v55  ;;  %v2128_v19 = vrot.slane %v2127_v11, 2  ;;  %v2146_v3 = vrot.slane %v2145_v29, 2  ;;  %v2152_v28 = vadd.f32 %v2151_v18, %v2150_v4  ;;  %v2113_v57 = vpop.f32.mrf.mxu1 }
 0x34d   :  { %v2123_v42 = vrot.slane %v2122_v6, 1  ;;  %v2129_v14 = vadd.f32 %v2128_v19, %v2127_v11  ;;  %v2147_v49 = vadd.f32 %v2146_v3, %v2145_v29  ;;  %v2153_v31 = vrot.slane %v2152_v28, 2  ;;  %v3451_v11 = vld [vmem:[%s5300_s2 + $0x88] sm:$0xff] }
 0x34e   :  { %2461 = vmatpush.bf16.msrb.mxu3 %v3451_v11 }
 0x34f   :  { %v2124_v40 = vadd.f32 %v2123_v42, %v2122_v6  ;;  %v2130_v20 = vrot.slane %v2129_v14, 1  ;;  %v2148_v59 = vrot.slane %v2147_v49, 1  ;;  %v2154_v39 = vadd.f32 %v2153_v31, %v2152_v28 }
 0x351   :  { %v2131_v44 = vadd.f32 %v2130_v20, %v2129_v14  ;;  %v2139_v10 = vmul.f32 %v5117_v53, %v2124_v40  ;;  %v2149_v24 = vadd.f32 %v2148_v59, %v2147_v49  ;;  %v2155_v25 = vrot.slane %v2154_v39, 1 }
 0x353   :  { %v2140_v5 = vmul.f32 %v5117_v53, %v2131_v44  ;;  %v2156_v13 = vadd.f32 %v2155_v25, %v2154_v39  ;;  %v2157_v52 = vmul.f32 %v2149_v24, %v5117_v53  ;;  %v2159_v2 = vmul.f32 %v2139_v10, %v2139_v10 }
 0x355   :  { %v2158_v17 = vmul.f32 %v2156_v13, %v5117_v53  ;;  %v2160_v36 = vmul.f32 %v2140_v5, %v2140_v5  ;;  %v2161_v22 = vsub.f32 %v2157_v52, %v2159_v2 }
 0x357   :  { %v2162_v35 = vsub.f32 %v2158_v17, %v2160_v36  ;;  %v2163_v46 = vmax.f32 %v2161_v22, 0.0 }
 0x359   :  { %v2164_v0 = vmax.f32 %v2162_v35, 0.0  ;;  %v2165_v21 = vadd.f32 1e-05, %v2163_v46 }
 0x35b   :  { %v2166_v32 = vadd.f32 1e-05, %v2164_v0  ;;  %3497 = vrsqrt.f32 %v2165_v21  ;;  %vm2173_vm15 = vweird.f32 %v2165_v21 }
 0x35d   :  { %3499 = vrsqrt.f32 %v2166_v32  ;;  %vm2183_vm3 = vweird.f32 %v2166_v32 }
 0x361   :  { %v3498_v15 = vpop.eup %3497 }
 0x362   :  { %v2168_v9 = vmul.f32 %v3498_v15, %v2165_v21  ;;  %vm2174_vm14 = vweird.f32 %v3498_v15 }
 0x363   :  { %v3500_v41 = vpop.eup %3499  ;;  %vm2175_vm2 = vmor %vm2173_vm15, %vm2174_vm14 }
 0x364   :  { %v2169_v48 = vmul.f32 %v3498_v15, %v2168_v9  ;;  %v2178_v37 = vmul.f32 %v3500_v41, %v2166_v32  ;;  %vm2184_vm1 = vweird.f32 %v3500_v41 }
 0x365   :  { %vm2185_vm4 = vmor %vm2183_vm3, %vm2184_vm1 }
 0x366   :  { %v2170_v54 = vmul.f32 0.5, %v2169_v48  ;;  %v2179_v47 = vmul.f32 %v3500_v41, %v2178_v37 }
 0x368   :  { %v2171_v16 = vsub.f32 1.5, %v2170_v54  ;;  %v2180_v33 = vmul.f32 0.5, %v2179_v47 }
 0x36a   :  { %v2172_v26 = vmul.f32 %v3498_v15, %v2171_v16  ;;  %v2181_v61 = vsub.f32 1.5, %v2180_v33 }
 0x36c   :  { %v2176_v38 = vsel %vm2175_vm2, %v3498_v15, %v2172_v26  ;;  %v2182_v7 = vmul.f32 %v3500_v41, %v2181_v61 }
 0x36d   :  { %v2187_v56 = vmul.f32 %v5144_v50, %v2176_v38 }
 0x36e   :  { %v2186_v27 = vsel %vm2185_vm4, %v3500_v41, %v2182_v7 }
 0x36f   :  { %v2188_v55 = vmul.f32 %v5144_v50, %v2186_v27  ;;  %v2189_v62 = vmul.f32 %v2187_v56, %v2139_v10  ;;  %v2199_v23 = vperm.slane %v2187_v56, 2 }
 0x371   :  { %v2190_v12 = vmul.f32 %v2188_v55, %v2140_v5  ;;  %v2193_v4 = vrot.slane %v2189_v62, 7  ;;  %v2200_v63 = vperm.slane %v2188_v55, 2  ;;  %v2201_v19 = vmul.f32 %v2199_v23, %v5102_v8 }
 0x373   :  { %v2194_v29 = vrot.slane %v2190_v12, 7  ;;  %v2197_v18 = vsub.f32 %v5144_v50, %v2193_v4  ;;  %v2202_v28 = vmul.f32 %v2200_v63, %v5105_v58  ;;  %v3450_v4 = vld [vmem:[%s5300_s2 + $0x80] sm:$0xff] }
 0x374   :  { %2462 = vmatpush.bf16.msrb.mxu3 %v3450_v4 }
 0x375   :  { %v2198_v6 = vsub.f32 %v5144_v50, %v2194_v29  ;;  %v2203_v3 = vperm.slane %v2197_v18, 3 }
 0x377   :  { %v2204_v57 = vperm.slane %v2198_v6, 3  ;;  %v2205_v42 = vadd.f32 %v2203_v3, %v2201_v19 }
 0x379   :  { %v2206_v14 = vadd.f32 %v2204_v57, %v2202_v28  ;;  %v2207_v49 = vmax.f32 %v2205_v42, 0.0 }
 0x37b   :  { %v2208_v31 = vmax.f32 %v2206_v14, 0.0  ;;  %2211 = vst [vmem:[#allocation1] ss:$4 sm:$0xff] %v2207_v49 }
 0x37d   :  { %2213 = vst [vmem:[#allocation1 + $0x1] ss:$4 sm:$0xff] %v2208_v31 }
 0x384   :  { %v2214_v40 = vld.sshfl [vmem:[#allocation1] sm:$0xff pattern:$0x73625140] }
 0x385   :  { %v2216_v20 = vpack.c.bf16 %v2214_v40, %v2214_v40 }
 0x387   :  { %2290 = vmatmul.bf16.vlgmr.msrb.gmra.mxu2 %v2216_v20 }
 0x40a   :  { %v5158_v59 = vpop.f32.mrf.mxu2 }
 0x40b   :  { %v5161_v39 = vrot.slane %v5158_v59, 2  ;;  %v2298_v8 = vsel %vm683_vm0, %v5158_v59, 0.0  ;;  %v2314_v58 = vmul.f32 %v5158_v59, %v5158_v59 }
 0x40c   :  { %v2299_v44 = vrot.slane %v2298_v8, 4 }
 0x40d   :  { %v2305_v10 = vsel %vm683_vm0, %v5161_v39, 0.0  ;;  %v2315_v24 = vmul.f32 %v5161_v39, %v5161_v39  ;;  %v2316_v25 = vsel %vm683_vm0, %v2314_v58, 0.0 }
 0x40e   :  { %v2300_v5 = vadd.f32 %v2299_v44, %v2298_v8  ;;  %v2306_v13 = vrot.slane %v2305_v10, 4  ;;  %v2317_v52 = vrot.slane %v2316_v25, 4 }
 0x40f   :  { %v2323_v2 = vsel %vm683_vm0, %v2315_v24, 0.0 }
 0x410   :  { %v2301_v17 = vrot.slane %v2300_v5, 2  ;;  %v2307_v36 = vadd.f32 %v2306_v13, %v2305_v10  ;;  %v2318_v22 = vadd.f32 %v2317_v52, %v2316_v25  ;;  %v2324_v35 = vrot.slane %v2323_v2, 4 }
 0x412   :  { %v2302_v46 = vadd.f32 %v2301_v17, %v2300_v5  ;;  %v2308_v0 = vrot.slane %v2307_v36, 2  ;;  %v2319_v21 = vrot.slane %v2318_v22, 2  ;;  %v2325_v32 = vadd.f32 %v2324_v35, %v2323_v2  ;;  %v2293_v1 = vpop.f32.mrf.mxu2 }
 0x413   :  { %v3465_v1 = vld [vmem:[%s5300_s2 + $0xf8] sm:$0xff] }
 0x414   :  { %v2303_v45 = vrot.slane %v2302_v46, 1  ;;  %v2309_v43 = vadd.f32 %v2308_v0, %v2307_v36  ;;  %v2320_v60 = vadd.f32 %v2319_v21, %v2318_v22  ;;  %v2326_v15 = vrot.slane %v2325_v32, 2  ;;  %2614 = vmatpush.bf16.msra.mxu1 %v3465_v1 }
 0x416   :  { %v2304_v9 = vadd.f32 %v2303_v45, %v2302_v46  ;;  %v2310_v41 = vrot.slane %v2309_v43, 1  ;;  %v2321_v48 = vrot.slane %v2320_v60, 1  ;;  %v2327_v37 = vadd.f32 %v2326_v15, %v2325_v32 }
 0x418   :  { %v2311_v54 = vadd.f32 %v2310_v41, %v2309_v43  ;;  %v2312_v47 = vmul.f32 %v2304_v9, %v5117_v53  ;;  %v2322_v30 = vadd.f32 %v2321_v48, %v2320_v60  ;;  %v2328_v16 = vrot.slane %v2327_v37, 1 }
 0x41a   :  { %v2313_v33 = vmul.f32 %v2311_v54, %v5117_v53  ;;  %v2329_v51 = vadd.f32 %v2328_v16, %v2327_v37  ;;  %v2330_v26 = vmul.f32 %v2322_v30, %v5117_v53  ;;  %v2332_v61 = vmul.f32 %v2312_v47, %v2312_v47  ;;  %v3463_v37 = vld [vmem:[%s5300_s2 + $0xe8] sm:$0xff] }
 0x41c   :  { %v2331_v38 = vmul.f32 %v2329_v51, %v5117_v53  ;;  %v2333_v7 = vmul.f32 %v2313_v33, %v2313_v33  ;;  %v2334_v56 = vsub.f32 %v2330_v26, %v2332_v61 }
 0x41e   :  { %v2335_v34 = vsub.f32 %v2331_v38, %v2333_v7  ;;  %v2336_v27 = vmax.f32 %v2334_v56, 0.0  ;;  %v3462_v38 = vld [vmem:[%s5300_s2 + $0xe0] sm:$0xff] }
 0x420   :  { %v2337_v55 = vmax.f32 %v2335_v34, 0.0  ;;  %v2338_v62 = vadd.f32 1e-05, %v2336_v27 }
 0x422   :  { %v2339_v12 = vadd.f32 1e-05, %v2337_v55  ;;  %3501 = vrsqrt.f32 %v2338_v62  ;;  %vm2346_vm6 = vweird.f32 %v2338_v62 }
 0x424   :  { %3503 = vrsqrt.f32 %v2339_v12  ;;  %vm2356_vm9 = vweird.f32 %v2339_v12 }
 0x428   :  { %v3502_v23 = vpop.eup %3501 }
 0x429   :  { %v2341_v11 = vmul.f32 %v3502_v23, %v2338_v62  ;;  %vm2347_vm5 = vweird.f32 %v3502_v23 }
 0x42a   :  { %v3504_v29 = vpop.eup %3503  ;;  %vm2348_vm8 = vmor %vm2346_vm6, %vm2347_vm5 }
 0x42b   :  { %v2342_v18 = vmul.f32 %v3502_v23, %v2341_v11  ;;  %v2351_v63 = vmul.f32 %v3504_v29, %v2339_v12  ;;  %vm2357_vm7 = vweird.f32 %v3504_v29  ;;  %v3461_v11 = vld [vmem:[%s5300_s2 + $0xd8] sm:$0xff] }
 0x42c   :  { %vm2358_vm10 = vmor %vm2356_vm9, %vm2357_vm7 }
 0x42d   :  { %v2343_v6 = vmul.f32 0.5, %v2342_v18  ;;  %v2352_v19 = vmul.f32 %v3504_v29, %v2351_v63 }
 0x42f   :  { %v2344_v3 = vsub.f32 1.5, %v2343_v6  ;;  %v2353_v28 = vmul.f32 0.5, %v2352_v19 }
 0x431   :  { %v2345_v57 = vmul.f32 %v3502_v23, %v2344_v3  ;;  %v2354_v42 = vsub.f32 1.5, %v2353_v28 }
 0x433   :  { %v2349_v14 = vsel %vm2348_vm8, %v3502_v23, %v2345_v57  ;;  %v2355_v49 = vmul.f32 %v3504_v29, %v2354_v42  ;;  %v3460_v42 = vld [vmem:[%s5300_s2 + $0xd0] sm:$0xff] }
 0x434   :  { %v2360_v31 = vmul.f32 %v5144_v50, %v2349_v14 }
 0x435   :  { %v2359_v40 = vsel %vm2358_vm10, %v3504_v29, %v2355_v49 }
 0x436   :  { %v2361_v20 = vmul.f32 %v5144_v50, %v2359_v40  ;;  %v2362_v8 = vmul.f32 %v2360_v31, %v2312_v47  ;;  %v2372_v10 = vperm.slane %v2360_v31, 4 }
 0x438   :  { %v2363_v58 = vmul.f32 %v2361_v20, %v2313_v33  ;;  %v2366_v44 = vrot.slane %v2362_v8, 7  ;;  %v2373_v5 = vperm.slane %v2361_v20, 4  ;;  %v2374_v52 = vmul.f32 %v2372_v10, %v5158_v59  ;;  %v3464_v59 = vld [vmem:[%s5300_s2 + $0xf0] sm:$0xff]  ;;  %v3459_v20 = vld [vmem:[%s5300_s2 + $0xc8] sm:$0xff] }
 0x439   :  { %2615 = vmatpush.bf16.msra.mxu1 %v3464_v59 }
 0x43a   :  { %v2367_v24 = vrot.slane %v2363_v58, 7  ;;  %v2370_v25 = vsub.f32 %v5144_v50, %v2366_v44  ;;  %v2375_v17 = vmul.f32 %v2373_v5, %v5161_v39 }
 0x43c   :  { %v2371_v13 = vsub.f32 %v5144_v50, %v2367_v24  ;;  %v2376_v2 = vperm.slane %v2370_v25, 5  ;;  %v3458_v25 = vld [vmem:[%s5300_s2 + $0xc0] sm:$0xff] }
 0x43d   :  { %2616 = vmatpush.bf16.msra.mxu1 %v3463_v37 }
 0x43e   :  { %v2377_v36 = vperm.slane %v2371_v13, 5  ;;  %v2378_v22 = vadd.f32 %v2376_v2, %v2374_v52 }
 0x440   :  { %v2379_v35 = vadd.f32 %v2377_v36, %v2375_v17  ;;  %v2380_v46 = vmax.f32 %v2378_v22, 0.0 }
 0x441   :  { %2617 = vmatpush.bf16.msra.mxu1 %v3462_v38 }
 0x442   :  { %v2381_v0 = vmax.f32 %v2379_v35, 0.0  ;;  %2384 = vst [vmem:[#allocation1] ss:$4 sm:$0xff] %v2380_v46 }
 0x444   :  { %2386 = vst [vmem:[#allocation1 + $0x1] ss:$4 sm:$0xff] %v2381_v0 }
 0x445   :  { %2618 = vmatpush.bf16.msra.mxu1 %v3461_v11 }
 0x449   :  { %2619 = vmatpush.bf16.msra.mxu1 %v3460_v42 }
 0x44b   :  { %v2387_v21 = vld.sshfl [vmem:[#allocation1] sm:$0xff pattern:$0x73625140] }
 0x44c   :  { %v2389_v32 = vpack.c.bf16 %v2387_v21, %v2387_v21 }
 0x44d   :  { %2620 = vmatpush.bf16.msra.mxu1 %v3459_v20 }
 0x44e   :  { %2463 = vmatmul.bf16.vlgmr.msrb.gmra.mxu3 %v2389_v32 }
 0x451   :  { %2621 = vmatpush.bf16.msra.mxu1 %v3458_v25 }
 0x4d1   :  { %v5192_v39 = vpop.f32.mrf.mxu3 }
 0x4d2   :  { %v5195_v45 = vrot.slane %v5192_v39, 2  ;;  %v2471_v43 = vsel %vm683_vm0, %v5192_v39, 0.0  ;;  %v2487_v60 = vmul.f32 %v5192_v39, %v5192_v39 }
 0x4d3   :  { %v2472_v15 = vrot.slane %v2471_v43, 4 }
 0x4d4   :  { %v2478_v9 = vsel %vm683_vm0, %v5195_v45, 0.0  ;;  %v2488_v41 = vmul.f32 %v5195_v45, %v5195_v45  ;;  %v2489_v48 = vsel %vm683_vm0, %v2487_v60, 0.0 }
 0x4d5   :  { %v2473_v54 = vadd.f32 %v2472_v15, %v2471_v43  ;;  %v2479_v47 = vrot.slane %v2478_v9, 4  ;;  %v2490_v30 = vrot.slane %v2489_v48, 4 }
 0x4d6   :  { %v2496_v16 = vsel %vm683_vm0, %v2488_v41, 0.0 }
 0x4d7   :  { %v2474_v33 = vrot.slane %v2473_v54, 2  ;;  %v2480_v51 = vadd.f32 %v2479_v47, %v2478_v9  ;;  %v2491_v26 = vadd.f32 %v2490_v30, %v2489_v48  ;;  %v2497_v61 = vrot.slane %v2496_v16, 4 }
 0x4d9   :  { %v2475_v7 = vadd.f32 %v2474_v33, %v2473_v54  ;;  %v2481_v56 = vrot.slane %v2480_v51, 2  ;;  %v2492_v34 = vrot.slane %v2491_v26, 2  ;;  %v2498_v27 = vadd.f32 %v2497_v61, %v2496_v16  ;;  %v2466_v55 = vpop.f32.mrf.mxu3 }
 0x4db   :  { %v2476_v62 = vrot.slane %v2475_v7, 1  ;;  %v2482_v12 = vadd.f32 %v2481_v56, %v2480_v51  ;;  %v2493_v4 = vadd.f32 %v2492_v34, %v2491_v26  ;;  %v2499_v23 = vrot.slane %v2498_v27, 2 }
 0x4dd   :  { %v2477_v29 = vadd.f32 %v2476_v62, %v2475_v7  ;;  %v2483_v18 = vrot.slane %v2482_v12, 1  ;;  %v2494_v63 = vrot.slane %v2493_v4, 1  ;;  %v2500_v6 = vadd.f32 %v2499_v23, %v2498_v27 }
 0x4df   :  { %v2484_v19 = vadd.f32 %v2483_v18, %v2482_v12  ;;  %v2485_v3 = vmul.f32 %v2477_v29, %v5117_v53  ;;  %v2495_v28 = vadd.f32 %v2494_v63, %v2493_v4  ;;  %v2501_v57 = vrot.slane %v2500_v6, 1  ;;  %v3473_v4 = vld [vmem:[%s5300_s2 + $0x138] sm:$0xff] }
 0x4e0   :  { %2788 = vmatpush.bf16.msra.mxu2 %v3473_v4 }
 0x4e1   :  { %v2486_v14 = vmul.f32 %v2484_v19, %v5117_v53  ;;  %v2502_v49 = vadd.f32 %v2501_v57, %v2500_v6  ;;  %v2503_v31 = vmul.f32 %v2495_v28, %v5117_v53  ;;  %v2505_v40 = vmul.f32 %v2485_v3, %v2485_v3  ;;  %v3472_v57 = vld [vmem:[%s5300_s2 + $0x130] sm:$0xff] }
 0x4e2   :  { %v2533_v43 = vsub.f32 0.0, %v2485_v3 }
 0x4e3   :  { %v2504_v8 = vmul.f32 %v2502_v49, %v5117_v53  ;;  %v2506_v58 = vmul.f32 %v2486_v14, %v2486_v14  ;;  %v2507_v44 = vsub.f32 %v2503_v31, %v2505_v40  ;;  %v2534_v9 = vsub.f32 0.0, %v2486_v14 }
 0x4e4   :  { %2789 = vmatpush.bf16.msra.mxu2 %v3472_v57 }
 0x4e5   :  { %v2508_v10 = vsub.f32 %v2504_v8, %v2506_v58  ;;  %v2509_v24 = vmax.f32 %v2507_v44, 0.0  ;;  %v3471_v44 = vld [vmem:[%s5300_s2 + $0x128] sm:$0xff] }
 0x4e7   :  { %v2510_v5 = vmax.f32 %v2508_v10, 0.0  ;;  %v2511_v13 = vadd.f32 1e-05, %v2509_v24 }
 0x4e8   :  { %2790 = vmatpush.bf16.msra.mxu2 %v3471_v44 }
 0x4e9   :  { %v2512_v52 = vadd.f32 1e-05, %v2510_v5  ;;  %3505 = vrsqrt.f32 %v2511_v13  ;;  %vm2519_vm12 = vweird.f32 %v2511_v13 }
 0x4eb   :  { %3507 = vrsqrt.f32 %v2512_v52  ;;  %vm2529_vm15 = vweird.f32 %v2512_v52 }
 0x4ef   :  { %v3506_v2 = vpop.eup %3505 }
 0x4f0   :  { %v2514_v17 = vmul.f32 %v3506_v2, %v2511_v13  ;;  %vm2520_vm11 = vweird.f32 %v3506_v2 }
 0x4f1   :  { %v3508_v36 = vpop.eup %3507  ;;  %vm2521_vm14 = vmor %vm2519_vm12, %vm2520_vm11 }
 0x4f2   :  { %v2515_v22 = vmul.f32 %v3506_v2, %v2514_v17  ;;  %v2524_v35 = vmul.f32 %v3508_v36, %v2512_v52  ;;  %vm2530_vm13 = vweird.f32 %v3508_v36 }
 0x4f3   :  { %vm2531_vm1 = vmor %vm2529_vm15, %vm2530_vm13 }
 0x4f4   :  { %v2516_v46 = vmul.f32 0.5, %v2515_v22  ;;  %v2525_v0 = vmul.f32 %v3508_v36, %v2524_v35 }
 0x4f6   :  { %v2517_v21 = vsub.f32 1.5, %v2516_v46  ;;  %v2526_v32 = vmul.f32 0.5, %v2525_v0 }
 0x4f8   :  { %v2518_v1 = vmul.f32 %v3506_v2, %v2517_v21  ;;  %v2527_v59 = vsub.f32 1.5, %v2526_v32  ;;  %v3469_v32 = vld [vmem:[%s5300_s2 + $0x118] sm:$0xff] }
 0x4fa   :  { %v2522_v60 = vsel %vm2521_vm14, %v3506_v2, %v2518_v1  ;;  %v2528_v15 = vmul.f32 %v3508_v36, %v2527_v59 }
 0x4fb   :  { %v2535_v41 = vmul.f32 %v2533_v43, %v2522_v60  ;;  %v2537_v48 = vmul.f32 %v2522_v60, %v5192_v39  ;;  %v3468_v60 = vld [vmem:[%s5300_s2 + $0x110] sm:$0xff] }
 0x4fc   :  { %v2532_v37 = vsel %vm2531_vm1, %v3508_v36, %v2528_v15  ;;  %v3470_v36 = vld [vmem:[%s5300_s2 + $0x120] sm:$0xff] }
 0x4fd   :  { %v2536_v54 = vmul.f32 %v2534_v9, %v2532_v37  ;;  %v2538_v47 = vmul.f32 %v2532_v37, %v5195_v45  ;;  %v5231_v30 = vadd.f32 %v2537_v48, %v2535_v41  ;;  %2791 = vmatpush.bf16.msra.mxu2 %v3470_v36  ;;  %v3466_v41 = vld [vmem:[%s5300_s2 + $0x100] sm:$0xff] }
 0x4ff   :  { %v5233_v16 = vadd.f32 %v2538_v47, %v2536_v54  ;;  %2543 = vst [vmem:[#allocation1] ss:$4 sm:$0xff] %v5231_v30 }
 0x501   :  { %2545 = vst [vmem:[#allocation1 + $0x1] ss:$4 sm:$0xff] %v5233_v16  ;;  %2792 = vmatpush.bf16.msra.mxu2 %v3469_v32 }
 0x505   :  { %2793 = vmatpush.bf16.msra.mxu2 %v3468_v60 }
 0x508   :  { %v2546_v33 = vld.sshfl [vmem:[#allocation1] sm:$0xff pattern:$0x73625140] }
 0x509   :  { %v2548_v51 = vpack.c.bf16 %v2546_v33, %v2546_v33 }
 0x50b   :  { %2622 = vmatmul.bf16.vlgmr.msra.gmra.mxu1 %v2548_v51 }
 0x588   :  { %v5237_v26 = vpop.f32.mrf.mxu1 }
 0x589   :  { %v5240_v61 = vrot.slane %v5237_v26, 2  ;;  %v2630_v39 = vsel %vm683_vm0, %v5237_v26, 0.0  ;;  %v2646_v45 = vmul.f32 %v5237_v26, %v5237_v26 }
 0x58a   :  { %v2631_v38 = vrot.slane %v2630_v39, 4 }
 0x58b   :  { %v2637_v7 = vsel %vm683_vm0, %v5240_v61, 0.0  ;;  %v2647_v56 = vmul.f32 %v5240_v61, %v5240_v61  ;;  %v2648_v34 = vsel %vm683_vm0, %v2646_v45, 0.0 }
 0x58c   :  { %v2632_v27 = vadd.f32 %v2631_v38, %v2630_v39  ;;  %v2638_v55 = vrot.slane %v2637_v7, 4  ;;  %v2649_v62 = vrot.slane %v2648_v34, 4 }
 0x58d   :  { %v2655_v12 = vsel %vm683_vm0, %v2647_v56, 0.0 }
 0x58e   :  { %v2633_v23 = vrot.slane %v2632_v27, 2  ;;  %v2639_v11 = vadd.f32 %v2638_v55, %v2637_v7  ;;  %v2650_v29 = vadd.f32 %v2649_v62, %v2648_v34  ;;  %v2656_v18 = vrot.slane %v2655_v12, 4 }
 0x590   :  { %v2634_v63 = vadd.f32 %v2633_v23, %v2632_v27  ;;  %v2640_v6 = vrot.slane %v2639_v11, 2  ;;  %v2651_v19 = vrot.slane %v2650_v29, 2  ;;  %v2657_v3 = vadd.f32 %v2656_v18, %v2655_v12  ;;  %v2625_v28 = vpop.f32.mrf.mxu1 }
 0x592   :  { %v2635_v42 = vrot.slane %v2634_v63, 1  ;;  %v2641_v14 = vadd.f32 %v2640_v6, %v2639_v11  ;;  %v2652_v49 = vadd.f32 %v2651_v19, %v2650_v29  ;;  %v2658_v31 = vrot.slane %v2657_v3, 2 }
 0x594   :  { %v2636_v40 = vadd.f32 %v2635_v42, %v2634_v63  ;;  %v2642_v20 = vrot.slane %v2641_v14, 1  ;;  %v2653_v8 = vrot.slane %v2652_v49, 1  ;;  %v2659_v58 = vadd.f32 %v2658_v31, %v2657_v3 }
 0x596   :  { %v2643_v10 = vadd.f32 %v2642_v20, %v2641_v14  ;;  %v2644_v24 = vmul.f32 %v2636_v40, %v5117_v53  ;;  %v2654_v25 = vadd.f32 %v2653_v8, %v2652_v49  ;;  %v2660_v5 = vrot.slane %v2659_v58, 1 }
 0x598   :  { %v2645_v13 = vmul.f32 %v2643_v10, %v5117_v53  ;;  %v2661_v52 = vadd.f32 %v2660_v5, %v2659_v58  ;;  %v2662_v2 = vmul.f32 %v2654_v25, %v5117_v53  ;;  %v2664_v17 = vmul.f32 %v2644_v24, %v2644_v24 }
 0x59a   :  { %v2663_v22 = vmul.f32 %v2661_v52, %v5117_v53  ;;  %v2665_v35 = vmul.f32 %v2645_v13, %v2645_v13  ;;  %v2666_v46 = vsub.f32 %v2662_v2, %v2664_v17  ;;  %v3467_v53 = vld [vmem:[%s5300_s2 + $0x108] sm:$0xff] }
 0x59b   :  { %2794 = vmatpush.bf16.msra.mxu2 %v3467_v53 }
 0x59c   :  { %v2667_v0 = vsub.f32 %v2663_v22, %v2665_v35  ;;  %v2668_v21 = vmax.f32 %v2666_v46, 0.0 }
 0x59e   :  { %v2669_v1 = vmax.f32 %v2667_v0, 0.0  ;;  %v2670_v59 = vadd.f32 1e-05, %v2668_v21 }
 0x59f   :  { %2795 = vmatpush.bf16.msra.mxu2 %v3466_v41 }
 0x5a0   :  { %v2671_v43 = vadd.f32 1e-05, %v2669_v1  ;;  %3509 = vrsqrt.f32 %v2670_v59  ;;  %vm2678_vm2 = vweird.f32 %v2670_v59 }
 0x5a2   :  { %3511 = vrsqrt.f32 %v2671_v43  ;;  %vm2688_vm5 = vweird.f32 %v2671_v43 }
 0x5a6   :  { %v3510_v15 = vpop.eup %3509 }
 0x5a7   :  { %v2673_v9 = vmul.f32 %v3510_v15, %v2670_v59  ;;  %vm2679_vm0 = vweird.f32 %v3510_v15 }
 0x5a8   :  { %v3512_v48 = vpop.eup %3511  ;;  %vm2680_vm4 = vmor %vm2678_vm2, %vm2679_vm0 }
 0x5a9   :  { %v2674_v37 = vmul.f32 %v3510_v15, %v2673_v9  ;;  %v2683_v54 = vmul.f32 %v3512_v48, %v2671_v43  ;;  %vm2689_vm3 = vweird.f32 %v3512_v48 }
 0x5aa   :  { %vm2690_vm6 = vmor %vm2688_vm5, %vm2689_vm3 }
 0x5ab   :  { %v2675_v47 = vmul.f32 0.5, %v2674_v37  ;;  %v2684_v33 = vmul.f32 %v3512_v48, %v2683_v54 }
 0x5ad   :  { %v2676_v51 = vsub.f32 1.5, %v2675_v47  ;;  %v2685_v39 = vmul.f32 0.5, %v2684_v33 }
 0x5af   :  { %v2677_v45 = vmul.f32 %v3510_v15, %v2676_v51  ;;  %v2686_v38 = vsub.f32 1.5, %v2685_v39 }
 0x5b1   :  { %v2681_v7 = vsel %vm2680_vm4, %v3510_v15, %v2677_v45  ;;  %v2687_v56 = vmul.f32 %v3512_v48, %v2686_v38 }
 0x5b2   :  { %v2692_v34 = vmul.f32 %v5144_v50, %v2681_v7 }
 0x5b3   :  { %v2691_v27 = vsel %vm2690_vm6, %v3512_v48, %v2687_v56 }
 0x5b4   :  { %v2693_v55 = vmul.f32 %v5144_v50, %v2691_v27  ;;  %v2694_v62 = vmul.f32 %v2692_v34, %v2644_v24  ;;  %v2704_v23 = vperm.slane %v2692_v34, 6 }
 0x5b6   :  { %v2695_v12 = vmul.f32 %v2693_v55, %v2645_v13  ;;  %v2698_v4 = vrot.slane %v2694_v62, 7  ;;  %v2705_v18 = vperm.slane %v2693_v55, 6  ;;  %v2706_v6 = vmul.f32 %v2704_v23, %v5237_v26  ;;  %v3486_v26 = vld [vmem:[%s5299_s3 + $0x8] ss:$0 sm:$0xff] }
 0x5b8   :  { %v2699_v11 = vrot.slane %v2695_v12, 7  ;;  %v2702_v29 = vsub.f32 %v5144_v50, %v2698_v4  ;;  %v2707_v3 = vmul.f32 %v2705_v18, %v5240_v61 }
 0x5ba   :  { %v2703_v63 = vsub.f32 %v5144_v50, %v2699_v11  ;;  %v2708_v19 = vperm.slane %v2702_v29, 7 }
 0x5bc   :  { %v2709_v28 = vperm.slane %v2703_v63, 7  ;;  %v2710_v57 = vadd.f32 %v2708_v19, %v2706_v6 }
 0x5be   :  { %v2711_v42 = vadd.f32 %v2709_v28, %v2707_v3  ;;  %v2712_v14 = vmax.f32 %v2710_v57, 0.0 }
 0x5c0   :  { %v2713_v49 = vmax.f32 %v2711_v42, 0.0  ;;  %2716 = vst [vmem:[#allocation1] ss:$4 sm:$0xff] %v2712_v14 }
 0x5c2   :  { %2718 = vst [vmem:[#allocation1 + $0x1] ss:$4 sm:$0xff] %v2713_v49 }
 0x5c9   :  { %v2719_v31 = vld.sshfl [vmem:[#allocation1] sm:$0xff pattern:$0x73625140] }
 0x5ca   :  { %v2721_v40 = vpack.c.bf16 %v2719_v31, %v2719_v31  ;;  %2802 = vst [vmem:[#allocation1] ss:$4 sm:$0xff] %v5231_v30 }
 0x5cb   :  { %2804 = vst [vmem:[#allocation1 + $0x1] ss:$4 sm:$0xff] %v5233_v16 }
 0x5cc   :  { %2796 = vmatmul.bf16.vlgmr.msra.gmra.mxu2 %v2721_v40 }
 0x5d2   :  { %v2805_v50 = vld.sshfl [vmem:[#allocation1] sm:$0xff pattern:$0x73625140] }
 0x5d3   :  { %2807 = vst [vmem:[%s5301_s5] sm:$0xf] %v2805_v50 }
 0x64f   :  { %v2797_v61 = vpop.f32.mrf.mxu2 }
 0x650   :  { %v2798_v20 = vadd.f32 %v3486_v26, %v2797_v61 }
 0x652   :  { %2801 = vst [vmem:[%s5302_s4] sm:$0xf] %v2798_v20 }
 0x657   :  { %v2799_v8 = vpop.f32.mrf.mxu2 }

</bundles_post_ra>
